<compile_context>
chip_gen: v7x
topology: tpu7x:2x2x1
jax: 0.10.0
libtpu: 0.0.40
codegen_flags: <defaults>
</compile_context>

<pallas_src>
import functools

import jax
import jax.numpy as jnp
from jax.experimental import pallas as pl
from jax.experimental.pallas import tpu as pltpu


# --------------------------------------------------------------------------
# VMEM budgeting (generation aware)
# --------------------------------------------------------------------------
@functools.lru_cache(maxsize=None)
def _vmem_capacity_bytes():
    try:
        return int(pltpu.get_tpu_info().vmem_capacity_bytes)
    except Exception:
        return 64 * 1024 * 1024          # conservative fallback (v7x per-core)


def _vmem_limit_bytes():
    # ~25% headroom for Mosaic internal scratch / spills.
    return (_vmem_capacity_bytes() * 3) // 4


def _step_budget_bytes():
    # Fraction of the compiler VMEM limit our accounted buffers may use.
    return (_vmem_limit_bytes() * 4) // 5


def _largest_divisor_leq(n, cap):
    cap = max(1, min(int(cap), n))
    for d in range(cap, 0, -1):
        if n % d == 0:
            return d
    return 1


def _pick_row_tile(H, step_bytes_fn, *, row_tile=None, min_tiles=1):
    """Largest divisor of H whose accounted per-step VMEM fits the budget.

    Prefers a tile count >= min_tiles so a parallel grid axis stays alive for
    megacore / v7x dual-TensorCore balancing even when N == 1.
    """
    if row_tile is not None:
        return _largest_divisor_leq(H, row_tile)
    budget = _step_budget_bytes()
    fitting = [th for th in range(1, H + 1)
               if H % th == 0 and step_bytes_fn(th) <= budget]
    if not fitting:
        return 1
    preferred = [th for th in fitting if H // th >= min_tiles]
    return max(preferred) if preferred else max(fitting)


def _pick_cout_tile(cout, cap=256):
    """Output-channel tile: <= cap, multiple of 128 unless Cout already fits."""
    if cout <= cap:
        return cout
    for tn in range(cap, 127, -128):
        if cout % tn == 0:
            return tn
    return cout


# --------------------------------------------------------------------------
# Pallas kernels
# --------------------------------------------------------------------------
def _upconv2x2_kernel(x_ref, w_ref, b_ref, o_ref):
    # x: (1, th, W, Cin)   w: (Cin, 4*Cout) columns ordered (kh, kw, co)
    # b: (1, 4*Cout)       o: (1, th, 2, W, 2*Cout)
    # o is a row-major relabeling of (N, 2H, 2W, Cout): keeping 2*Cout on the
    # lane axis avoids the relayout a (..., 2W, Cout) store would force and
    # keeps stores lane-dense.
    _, th, W, Cin = x_ref.shape
    c2 = o_ref.shape[-1]                                  # 2*Cout
    x_mat = x_ref[...].reshape(th * W, Cin).astype(w_ref.dtype)
    y = jnp.dot(x_mat, w_ref[...], preferred_element_type=jnp.float32)
    y = y + b_ref[...]                                    # (1, 4*Cout) broadcasts
    for kh in range(2):                                   # kh -> interleaved rows
        o_ref[0:1, :, kh:kh + 1, :, :] = (
            y[:, kh * c2:(kh + 1) * c2]
            .reshape(1, th, 1, W, c2).astype(o_ref.dtype))


def _fill_zero_padded(pad_ref, core_ref, top_ref, bot_ref, h, nh):
    # Assemble a zero-padded (th+2, W+2, C) slab in VMEM from the core row
    # block and the two 1-row halos.  Only the borders are zero-filled (no
    # full-slab memset); every pad cell is written each step so the grid can
    # stay fully parallel.
    th, W, C = core_ref.shape[1], core_ref.shape[2], core_ref.shape[3]
    zcol = jnp.zeros((th + 2, 1, C), pad_ref.dtype)
    pad_ref[:, 0:1, :] = zcol
    pad_ref[:, W + 1:W + 2, :] = zcol
    pad_ref[1:th + 1, 1:W + 1, :] = core_ref[0].astype(pad_ref.dtype)
    zrow = jnp.zeros((1, W, C), pad_ref.dtype)

    @pl.when(h > 0)
    def _():
        pad_ref[0:1, 1:W + 1, :] = top_ref[0].astype(pad_ref.dtype)

    @pl.when(h == 0)
    def _():
        pad_ref[0:1, 1:W + 1, :] = zrow

    @pl.when(h < nh - 1)
    def _():
        pad_ref[th + 1:th + 2, 1:W + 1, :] = bot_ref[0].astype(pad_ref.dtype)

    @pl.when(h == nh - 1)
    def _():
        pad_ref[th + 1:th + 2, 1:W + 1, :] = zrow


def _accum_conv_taps(acc, pad_ref, w_ref, th, W):
    # 3x3 conv as 9 (th*W, C) @ (C, tn) MXU matmuls into one f32 accumulator.
    # The W (sublane) shifts are hoisted: 3 shifted slabs instead of 9 cuts.
    C = pad_ref.shape[-1]
    for dx in range(3):
        slab = pad_ref[:, dx:dx + W, :].astype(w_ref.dtype)   # (th+2, W, C)
        for dy in range(3):
            patch = slab[dy:dy + th].reshape(th * W, C)
            acc = acc + jnp.dot(patch, w_ref[dy * 3 + dx],
                                preferred_element_type=jnp.float32)
    return acc


def _make_conv3x3_relu_kernel(n_in):
    def kernel(*refs):
        data = refs[:3 * n_in]                     # (core, top, bot) per input
        w_refs = refs[3 * n_in:4 * n_in]           # (9, C_i, tn) per input
        b_ref = refs[4 * n_in]                     # (1, tn)
        o_ref = refs[4 * n_in + 1]                 # (1, th, W, tn)
        pad_refs = refs[4 * n_in + 2:]             # compute-dtype scratch
        _, th, W, tn = o_ref.shape
        h = pl.program_id(2)
        nh = pl.num_programs(2)
        acc = jnp.zeros((th * W, tn), jnp.float32)
        for i in range(n_in):
            _fill_zero_padded(pad_refs[i], data[3 * i], data[3 * i + 1],
                              data[3 * i + 2], h, nh)
            acc = _accum_conv_taps(acc, pad_refs[i], w_refs[i], th, W)
        acc = jnp.maximum(acc + b_ref[...], 0.0)   # bias + fused ReLU (f32)
        o_ref[...] = acc.reshape(1, th, W, tn).astype(o_ref.dtype)
    return kernel


# --------------------------------------------------------------------------
# Pallas wrappers
# --------------------------------------------------------------------------
def conv3x3_relu(xs, ws, b, *, row_tile=None, cout_tile=None):
    """Fused multi-input 3x3 conv (padding=1, bias) + ReLU.

    xs: list of NHWC inputs sharing (N, H, W) -- treated as if concatenated
    along channels (the concat is fused: one accumulator, one matmul per tap
    per input).  ws[i]: (9, C_i, Cout).  b: (Cout,).
    """
    n_in = len(xs)
    N, H, W, _ = xs[0].shape
    Cout = int(ws[0].shape[-1])
    in_chs = [int(x.shape[-1]) for x in xs]
    bpe = jnp.dtype(xs[0].dtype).itemsize

    tn = _pick_cout_tile(Cout) if cout_tile is None else int(cout_tile)
    nco = Cout // tn

    def step_bytes(th):
        act = sum(2 * (th + 2) * W * c * bpe for c in in_chs)    # core+halos, x2 buf
        pad = sum((th + 2) * (W + 2) * c * bpe for c in in_chs)  # scratch slabs
        out = 2 * th * W * tn * bpe                              # output, x2 buf
        wts = sum(2 * 9 * c * tn * bpe for c in in_chs)          # weights, x2 buf
        accv = th * W * tn * 4                                   # live f32 acc
        return act + pad + out + wts + accv

    th = _pick_row_tile(H, step_bytes, row_tile=row_tile,
                        min_tiles=2 if N * nco < 2 else 1)
    nh = H // th

    core_map = lambda n, co, h: (n, h, 0, 0)
    top_map = lambda n, co, h: (n, jnp.maximum(h * th - 1, 0), 0, 0)
    bot_map = lambda n, co, h: (n, jnp.minimum(h * th + th, H - 1), 0, 0)

    inputs, in_specs, scratch = [], [], []
    for x, c in zip(xs, in_chs):
        in_specs += [pl.BlockSpec((1, th, W, c), core_map),
                     pl.BlockSpec((1, 1, W, c), top_map),
                     pl.BlockSpec((1, 1, W, c), bot_map)]
        inputs += [x, x, x]
        scratch.append(pltpu.VMEM((th + 2, W + 2, c), xs[0].dtype))
    for w in ws:
        in_specs.append(pl.BlockSpec((9, int(w.shape[1]), tn),
                                     lambda n, co, h: (0, 0, co)))
        inputs.append(w)
    in_specs.append(pl.BlockSpec((1, tn), lambda n, co, h: (0, co)))
    inputs.append(b.reshape(1, Cout).astype(jnp.float32))

    flops = 2 * 9 * N * H * W * sum(in_chs) * Cout
    bytes_accessed = (sum(N * H * W * c for c in in_chs) * bpe
                      + 9 * sum(in_chs) * Cout * bpe
                      + N * H * W * Cout * bpe + Cout * 4)

    return pl.pallas_call(
        _make_conv3x3_relu_kernel(n_in),
        out_shape=jax.ShapeDtypeStruct((N, H, W, Cout), xs[0].dtype),
        grid=(N, nco, nh),
        in_specs=in_specs,
        out_specs=pl.BlockSpec((1, th, W, tn), lambda n, co, h: (n, h, 0, co)),
        scratch_shapes=scratch,
        compiler_params=pltpu.CompilerParams(
            dimension_semantics=("parallel", "parallel", "parallel"),
            vmem_limit_bytes=_vmem_limit_bytes()),
        cost_estimate=pl.CostEstimate(flops=flops, transcendentals=0,
                                      bytes_accessed=bytes_accessed),
    )(*inputs)


def conv_transpose2x2_stride2(x, w, b, *, row_tile=None):
    """ConvTranspose2d(Cin, Cout, kernel=2, stride=2) on an NHWC input.

    w: torch layout (Cin, Cout, 2, 2); b: (Cout,).  One fused
    (th*W, Cin) @ (Cin, 4*Cout) matmul per step; the kernel stores directly
    into the interleaved memory layout and the trailing reshape is
    bit-preserving.
    """
    N, H, W, Cin = x.shape
    Cout = int(w.shape[1])
    bpe = jnp.dtype(x.dtype).itemsize
    # (Cin, kh*2*Cout + kw*Cout + co)
    w_k = jnp.transpose(w, (0, 2, 3, 1)).reshape(Cin, 4 * Cout).astype(x.dtype)
    b4 = jnp.tile(b.astype(jnp.float32), 4).reshape(1, 4 * Cout)

    def step_bytes(th):
        xin = 2 * th * W * Cin * bpe            # input block, x2 buf
        out = 2 * th * W * 4 * Cout * bpe       # output block, x2 buf
        wts = 2 * Cin * 4 * Cout * bpe          # weights, x2 buf
        yv = th * W * 4 * Cout * 4              # live f32 matmul result
        return xin + out + wts + yv

    th = _pick_row_tile(H, step_bytes, row_tile=row_tile,
                        min_tiles=2 if N < 2 else 1)
    nh = H // th

    flops = 2 * N * H * W * Cin * 4 * Cout
    bytes_accessed = (N * H * W * Cin * bpe + Cin * 4 * Cout * bpe
                      + N * H * W * 4 * Cout * bpe + 4 * Cout * 4)

    out5 = pl.pallas_call(
        _upconv2x2_kernel,
        out_shape=jax.ShapeDtypeStruct((N, H, 2, W, 2 * Cout), x.dtype),
        grid=(N, nh),
        in_specs=[
            pl.BlockSpec((1, th, W, Cin), lambda n, h: (n, h, 0, 0)),
            pl.BlockSpec((Cin, 4 * Cout), lambda n, h: (0, 0)),
            pl.BlockSpec((1, 4 * Cout), lambda n, h: (0, 0)),
        ],
        out_specs=pl.BlockSpec((1, th, 2, W, 2 * Cout),
                               lambda n, h: (n, h, 0, 0, 0)),
        compiler_params=pltpu.CompilerParams(
            dimension_semantics=("parallel", "parallel"),
            vmem_limit_bytes=_vmem_limit_bytes()),
        cost_estimate=pl.CostEstimate(flops=flops, transcendentals=0,
                                      bytes_accessed=bytes_accessed),
    )(x, w_k, b4)
    # Bit-identical row-major relabeling: (N, H, 2, W, 2*Cout) -> (N, 2H, 2W, Cout).
    return out5.reshape(N, 2 * H, 2 * W, Cout)


# --------------------------------------------------------------------------
# Decoder
# --------------------------------------------------------------------------
def init_decoder_params(key, chs):
    params = []
    for i in range(len(chs) - 1):
        key, k1, k2, k3, k4, k5, k6 = jax.random.split(key, 7)
        cin, cout = chs[i], chs[i + 1]
        params.append(dict(
            up_w=jax.random.normal(k1, (cin, cin, 2, 2), jnp.float32) * 0.05,
            up_b=jax.random.normal(k2, (cin,), jnp.float32) * 0.05,
            c1_w=jax.random.normal(k3, (9, 2 * cin, cout), jnp.float32) * 0.05,
            c1_b=jax.random.normal(k4, (cout,), jnp.float32) * 0.05,
            c2_w=jax.random.normal(k5, (9, cout, cout), jnp.float32) * 0.05,
            c2_b=jax.random.normal(k6, (cout,), jnp.float32) * 0.05,
        ))
    return params


def decoder_forward(params, x_nchw, encoder_features_nchw, *,
                    row_tile=None, use_bf16=False):
    """Matches Decoder.forward: NCHW in, NCHW out.

    use_bf16: feed bf16 activations/weights to the MXU and store bf16
    intermediates (f32 accumulation and f32 bias/ReLU) -- halves HBM/VMEM
    bytes, the right default on bandwidth-starved v5e.
    """
    cdt = jnp.bfloat16 if use_bf16 else jnp.float32
    x = jnp.transpose(x_nchw, (0, 2, 3, 1)).astype(cdt)           # -> NHWC
    for i, p in enumerate(params):
        cin = p["up_w"].shape[0]
        x = conv_transpose2x2_stride2(x, p["up_w"].astype(cdt), p["up_b"],
                                      row_tile=row_tile)
        enc = jnp.transpose(encoder_features_nchw[i], (0, 2, 3, 1)).astype(cdt)
        # Block.conv1 + ReLU with the channel concat fused into the kernel:
        # first half of c1_w multiplies the upsampled half, second the skip.
        w1_up = p["c1_w"][:, :cin, :].astype(cdt)
        w1_enc = p["c1_w"][:, cin:, :].astype(cdt)
        x = conv3x3_relu([x, enc], [w1_up, w1_enc], p["c1_b"], row_tile=row_tile)
        # Block.conv2 + ReLU
        x = conv3x3_relu([x], [p["c2_w"].astype(cdt)], p["c2_b"],
                         row_tile=row_tile)
    return jnp.transpose(x, (0, 3, 1, 2))                         # -> NCHW


# --------------------------------------------------------------------------
# Pure-JAX reference (for correctness check)
# --------------------------------------------------------------------------
def _ref_decoder(params, x_nchw, enc_feats):
    x = jnp.transpose(x_nchw, (0, 2, 3, 1))
    for i, p in enumerate(params):
        N, H, W, _ = x.shape
        Cout = p["up_w"].shape[1]
        t = jnp.einsum('nhwi,iokl->nhwklo', x, p["up_w"])
        t = t.transpose(0, 1, 3, 2, 4, 5).reshape(N, 2 * H, 2 * W, Cout) + p["up_b"]
        enc = jnp.transpose(enc_feats[i], (0, 2, 3, 1))
        x = jnp.concatenate([t, enc], axis=-1)
        for wk, bk in (("c1_w", "c1_b"), ("c2_w", "c2_b")):
            w = p[wk].reshape(3, 3, p[wk].shape[1], p[wk].shape[2])
            x = jax.lax.conv_general_dilated(
                x, w, (1, 1), 'SAME',
                dimension_numbers=('NHWC', 'HWIO', 'NHWC')) + p[bk]
            x = jnp.maximum(x, 0.0)
    return jnp.transpose(x, (0, 3, 1, 2))


# --------------------------------------------------------------------------
if __name__ == "__main__":
    chs = (16, 8, 4)          # small analogue of (1024, 512, 256, 128, 64)
    N, H0, W0 = 2, 4, 4

    params = init_decoder_params(jax.random.PRNGKey(0), chs)

    keys = jax.random.split(jax.random.PRNGKey(0), len(chs) + 1)
    x = jax.random.normal(keys[0], (N, chs[0], H0, W0), jnp.float32)
    enc_feats = []
    h = H0
    for i in range(len(chs) - 1):
        h *= 2
        enc_feats.append(jax.random.normal(keys[i + 1], (N, chs[i], h, h), jnp.float32))

    ref = jax.block_until_ready(_ref_decoder(params, x, enc_feats))
    expected_shape = (N, chs[-1], H0 * 2 ** (len(chs) - 1), W0 * 2 ** (len(chs) - 1))
    assert ref.shape == expected_shape, (ref.shape, expected_shape)

    # f32 path with forced small row tiles -> exercises the halo logic (nh > 1).
    fwd = jax.jit(functools.partial(decoder_forward, row_tile=4))
    out = jax.block_until_ready(fwd(params, x, enc_feats))
    assert out.shape == expected_shape, (out.shape, expected_shape)
    assert jnp.allclose(out, ref, atol=1e-4, rtol=1e-4), \
        float(jnp.max(jnp.abs(out - ref)))

    # f32 path with automatic (VMEM-budget) tiling.
    out2 = jax.block_until_ready(jax.jit(decoder_forward)(params, x, enc_feats))
    assert jnp.allclose(out2, ref, atol=1e-4, rtol=1e-4), \
        float(jnp.max(jnp.abs(out2 - ref)))

    # bf16 MXU inputs / bf16 intermediates (f32 accumulation) -- looser tolerance.
    fwd_bf16 = jax.jit(functools.partial(decoder_forward, row_tile=4, use_bf16=True))
    out3 = jax.block_until_ready(fwd_bf16(params, x, enc_feats)).astype(jnp.float32)
    assert jnp.allclose(out3, ref, atol=1e-1, rtol=1e-1), \
        float(jnp.max(jnp.abs(out3 - ref)))

    print("KERNEL_OK")
</pallas_src>

<mosaic_0001>
module attributes {stable_mosaic.version = 11 : i64} {
  func.func @_upconv2x2_kernel(%arg0: i32, %arg1: i32, %arg2: memref<1x4x4x16xf32, #tpu.memory_space<vmem>>, %arg3: memref<16x64xf32, #tpu.memory_space<vmem>>, %arg4: memref<1x64xf32, #tpu.memory_space<vmem>>, %arg5: memref<1x4x2x4x32xf32, #tpu.memory_space<vmem>>) attributes {dimension_semantics = [#tpu.dimension_semantics<parallel>, #tpu.dimension_semantics<parallel>], iteration_bounds = array<i64: 2, 1>, scalar_prefetch = 0 : i64, scratch_operands = 0 : i64, tpu.core_type = #tpu.core_type<tc>, window_params = [{transform_indices = @transform_0, window_bounds = array<i64: 1, 4, 4, 16>}, {pipeline_mode = #tpu.pipeline_mode<synchronous>, transform_indices = @transform_1, window_bounds = array<i64: 16, 64>}, {pipeline_mode = #tpu.pipeline_mode<synchronous>, transform_indices = @transform_2, window_bounds = array<i64: 1, 64>}, {transform_indices = @transform_3, window_bounds = array<i64: 1, 4, 2, 4, 32>}]} {
    %c0 = arith.constant 0 : index
    %c0_0 = arith.constant 0 : index
    %c0_1 = arith.constant 0 : index
    %c0_2 = arith.constant 0 : index
    %0 = vector.load %arg2[%c0, %c0_0, %c0_1, %c0_2] : memref<1x4x4x16xf32, #tpu.memory_space<vmem>>, vector<1x4x4x16xf32>
    %1 = vector.shape_cast %0 : vector<1x4x4x16xf32> to vector<16x16xf32>
    %c0_3 = arith.constant 0 : index
    %c0_4 = arith.constant 0 : index
    %2 = vector.load %arg3[%c0_3, %c0_4] : memref<16x64xf32, #tpu.memory_space<vmem>>, vector<16x64xf32>
    %cst = arith.constant dense<0.000000e+00> : vector<16x64xf32>
    %3 = tpu.matmul %1, %2, %cst {dimension_numbers = #tpu.dot_dimension_numbers<[1], [0], [0], [1], [0, 0, 1, 1], [], []>} : vector<16x16xf32>, vector<16x64xf32>, vector<16x64xf32> -> vector<16x64xf32>
    %c0_5 = arith.constant 0 : index
    %c0_6 = arith.constant 0 : index
    %4 = vector.load %arg4[%c0_5, %c0_6] : memref<1x64xf32, #tpu.memory_space<vmem>>, vector<1x64xf32>
    %5 = vector.broadcast %4 : vector<1x64xf32> to vector<16x64xf32>
    %6 = arith.addf %3, %5 : vector<16x64xf32>
    %7 = vector.extract_strided_slice %6 {offsets = [0, 0], sizes = [16, 32], strides = [1, 1]} : vector<16x64xf32> to vector<16x32xf32>
    %8 = vector.shape_cast %7 : vector<16x32xf32> to vector<1x4x1x4x32xf32>
    %c0_7 = arith.constant 0 : index
    %c0_8 = arith.constant 0 : index
    %c0_9 = arith.constant 0 : index
    %c0_10 = arith.constant 0 : index
    %c0_11 = arith.constant 0 : index
    %9 = vector.load %arg5[%c0_7, %c0_8, %c0_9, %c0_10, %c0_11] : memref<1x4x2x4x32xf32, #tpu.memory_space<vmem>>, vector<1x4x1x4x32xf32>
    tpu.vector_store %arg5[%c0_7, %c0_8, %c0_9, %c0_10, %c0_11], %8 {strides = array<i32>} : memref<1x4x2x4x32xf32, #tpu.memory_space<vmem>>, vector<1x4x1x4x32xf32>,
    %10 = vector.extract_strided_slice %6 {offsets = [0, 32], sizes = [16, 32], strides = [1, 1]} : vector<16x64xf32> to vector<16x32xf32>
    %11 = vector.shape_cast %10 : vector<16x32xf32> to vector<1x4x1x4x32xf32>
    %c0_12 = arith.constant 0 : index
    %c0_13 = arith.constant 0 : index
    %c1 = arith.constant 1 : index
    %c0_14 = arith.constant 0 : index
    %c0_15 = arith.constant 0 : index
    %12 = vector.load %arg5[%c0_12, %c0_13, %c1, %c0_14, %c0_15] : memref<1x4x2x4x32xf32, #tpu.memory_space<vmem>>, vector<1x4x1x4x32xf32>
    tpu.vector_store %arg5[%c0_12, %c0_13, %c1, %c0_14, %c0_15], %11 {strides = array<i32>} : memref<1x4x2x4x32xf32, #tpu.memory_space<vmem>>, vector<1x4x1x4x32xf32>,
    return
  }
  func.func @transform_0(%arg0: i32, %arg1: i32) -> (i32, i32, i32, i32) {
    %c0_i32 = arith.constant 0 : i32
    %c0_i32_0 = arith.constant 0 : i32
    %c0_i32_1 = arith.constant 0 : i32
    return %arg0, %arg1, %c0_i32, %c0_i32_0 : i32, i32, i32, i32
  }
  func.func @transform_1(%arg0: i32, %arg1: i32) -> (i32, i32) {
    %c0_i32 = arith.constant 0 : i32
    %c0_i32_0 = arith.constant 0 : i32
    %c0_i32_1 = arith.constant 0 : i32
    return %c0_i32, %c0_i32_0 : i32, i32
  }
  func.func @transform_2(%arg0: i32, %arg1: i32) -> (i32, i32) {
    %c0_i32 = arith.constant 0 : i32
    %c0_i32_0 = arith.constant 0 : i32
    %c0_i32_1 = arith.constant 0 : i32
    return %c0_i32, %c0_i32_0 : i32, i32
  }
  func.func @transform_3(%arg0: i32, %arg1: i32) -> (i32, i32, i32, i32, i32) {
    %c0_i32 = arith.constant 0 : i32
    %c0_i32_0 = arith.constant 0 : i32
    %c0_i32_1 = arith.constant 0 : i32
    %c0_i32_2 = arith.constant 0 : i32
    return %arg0, %arg1, %c0_i32, %c0_i32_0, %c0_i32_1 : i32, i32, i32, i32, i32
  }
}

module attributes {stable_mosaic.version = 11 : i64} {
  func.func @kernel(%arg0: i32, %arg1: i32, %arg2: i32, %arg3: memref<1x4x8x8xf32, #tpu.memory_space<vmem>>, %arg4: memref<1x1x8x8xf32, #tpu.memory_space<vmem>>, %arg5: memref<1x1x8x8xf32, #tpu.memory_space<vmem>>, %arg6: memref<9x8x8xf32, #tpu.memory_space<vmem>>, %arg7: memref<1x8xf32, #tpu.memory_space<vmem>>, %arg8: memref<1x4x8x8xf32, #tpu.memory_space<vmem>>, %arg9: memref<6x10x8xf32, #tpu.memory_space<vmem>>) attributes {dimension_semantics = [#tpu.dimension_semantics<parallel>, #tpu.dimension_semantics<parallel>, #tpu.dimension_semantics<parallel>], iteration_bounds = array<i64: 2, 1, 2>, scalar_prefetch = 0 : i64, scratch_operands = 1 : i64, tpu.core_type = #tpu.core_type<tc>, window_params = [{transform_indices = @transform_0, window_bounds = array<i64: 1, 4, 8, 8>}, {transform_indices = @transform_1, window_bounds = array<i64: 1, 1, 8, 8>}, {transform_indices = @transform_2, window_bounds = array<i64: 1, 1, 8, 8>}, {transform_indices = @transform_3, window_bounds = array<i64: 9, 8, 8>}, {transform_indices = @transform_4, window_bounds = array<i64: 1, 8>}, {transform_indices = @transform_5, window_bounds = array<i64: 1, 4, 8, 8>}]} {
    %cst = arith.constant 0.000000e+00 : f32
    %0 = vector.broadcast %cst : f32 to vector<32x8xf32>
    %cst_0 = arith.constant 0.000000e+00 : f32
    %1 = vector.broadcast %cst_0 : f32 to vector<6x1x8xf32>
    %c0 = arith.constant 0 : index
    %c0_1 = arith.constant 0 : index
    %c0_2 = arith.constant 0 : index
    %2 = vector.load %arg9[%c0, %c0_1, %c0_2] : memref<6x10x8xf32, #tpu.memory_space<vmem>>, vector<6x1x8xf32>
    tpu.vector_store %arg9[%c0, %c0_1, %c0_2], %1 {strides = array<i32>} : memref<6x10x8xf32, #tpu.memory_space<vmem>>, vector<6x1x8xf32>,
    %c0_3 = arith.constant 0 : index
    %c9 = arith.constant 9 : index
    %c0_4 = arith.constant 0 : index
    %3 = vector.load %arg9[%c0_3, %c9, %c0_4] : memref<6x10x8xf32, #tpu.memory_space<vmem>>, vector<6x1x8xf32>
    tpu.vector_store %arg9[%c0_3, %c9, %c0_4], %1 {strides = array<i32>} : memref<6x10x8xf32, #tpu.memory_space<vmem>>, vector<6x1x8xf32>,
    %c0_5 = arith.constant 0 : index
    %c0_6 = arith.constant 0 : index
    %c0_7 = arith.constant 0 : index
    %c0_8 = arith.constant 0 : index
    %4 = vector.load %arg3[%c0_5, %c0_6, %c0_7, %c0_8] : memref<1x4x8x8xf32, #tpu.memory_space<vmem>>, vector<1x4x8x8xf32>
    %5 = vector.shape_cast %4 : vector<1x4x8x8xf32> to vector<4x8x8xf32>
    %c1 = arith.constant 1 : index
    %c1_9 = arith.constant 1 : index
    %c0_10 = arith.constant 0 : index
    %6 = vector.load %arg9[%c1, %c1_9, %c0_10] : memref<6x10x8xf32, #tpu.memory_space<vmem>>, vector<4x8x8xf32>
    tpu.vector_store %arg9[%c1, %c1_9, %c0_10], %5 {strides = array<i32>} : memref<6x10x8xf32, #tpu.memory_space<vmem>>, vector<4x8x8xf32>,
    %cst_11 = arith.constant 0.000000e+00 : f32
    %7 = vector.broadcast %cst_11 : f32 to vector<1x8x8xf32>
    %c0_i32 = arith.constant 0 : i32
    %8 = arith.cmpi sgt, %arg2, %c0_i32 : i32
    %9 = arith.extui %8 : i1 to i32
    %c0_i32_12 = arith.constant 0 : i32
    %10 = arith.cmpi ne, %9, %c0_i32_12 : i32
    scf.if %10 {
      %c0_63 = arith.constant 0 : index
      %c0_64 = arith.constant 0 : index
      %c0_65 = arith.constant 0 : index
      %c0_66 = arith.constant 0 : index
      %84 = vector.load %arg4[%c0_63, %c0_64, %c0_65, %c0_66] : memref<1x1x8x8xf32, #tpu.memory_space<vmem>>, vector<1x1x8x8xf32>
      %85 = vector.shape_cast %84 : vector<1x1x8x8xf32> to vector<1x8x8xf32>
      %c0_67 = arith.constant 0 : index
      %c1_68 = arith.constant 1 : index
      %c0_69 = arith.constant 0 : index
      %86 = vector.load %arg9[%c0_67, %c1_68, %c0_69] : memref<6x10x8xf32, #tpu.memory_space<vmem>>, vector<1x8x8xf32>
      tpu.vector_store %arg9[%c0_67, %c1_68, %c0_69], %85 {strides = array<i32>} : memref<6x10x8xf32, #tpu.memory_space<vmem>>, vector<1x8x8xf32>,
    } else {
    }
    %c0_i32_13 = arith.constant 0 : i32
    %11 = arith.cmpi eq, %arg2, %c0_i32_13 : i32
    %12 = arith.extui %11 : i1 to i32
    %c0_i32_14 = arith.constant 0 : i32
    %13 = arith.cmpi ne, %12, %c0_i32_14 : i32
    scf.if %13 {
      %c0_63 = arith.constant 0 : index
      %c1_64 = arith.constant 1 : index
      %c0_65 = arith.constant 0 : index
      %84 = vector.load %arg9[%c0_63, %c1_64, %c0_65] : memref<6x10x8xf32, #tpu.memory_space<vmem>>, vector<1x8x8xf32>
      tpu.vector_store %arg9[%c0_63, %c1_64, %c0_65], %7 {strides = array<i32>} : memref<6x10x8xf32, #tpu.memory_space<vmem>>, vector<1x8x8xf32>,
    } else {
    }
    %c1_i32 = arith.constant 1 : i32
    %14 = arith.cmpi slt, %arg2, %c1_i32 : i32
    %15 = arith.extui %14 : i1 to i32
    %c0_i32_15 = arith.constant 0 : i32
    %16 = arith.cmpi ne, %15, %c0_i32_15 : i32
    scf.if %16 {
      %c0_63 = arith.constant 0 : index
      %c0_64 = arith.constant 0 : index
      %c0_65 = arith.constant 0 : index
      %c0_66 = arith.constant 0 : index
      %84 = vector.load %arg5[%c0_63, %c0_64, %c0_65, %c0_66] : memref<1x1x8x8xf32, #tpu.memory_space<vmem>>, vector<1x1x8x8xf32>
      %85 = vector.shape_cast %84 : vector<1x1x8x8xf32> to vector<1x8x8xf32>
      %c5_67 = arith.constant 5 : index
      %c1_68 = arith.constant 1 : index
      %c0_69 = arith.constant 0 : index
      %86 = vector.load %arg9[%c5_67, %c1_68, %c0_69] : memref<6x10x8xf32, #tpu.memory_space<vmem>>, vector<1x8x8xf32>
      tpu.vector_store %arg9[%c5_67, %c1_68, %c0_69], %85 {strides = array<i32>} : memref<6x10x8xf32, #tpu.memory_space<vmem>>, vector<1x8x8xf32>,
    } else {
    }
    %c1_i32_16 = arith.constant 1 : i32
    %17 = arith.cmpi eq, %arg2, %c1_i32_16 : i32
    %18 = arith.extui %17 : i1 to i32
    %c0_i32_17 = arith.constant 0 : i32
    %19 = arith.cmpi ne, %18, %c0_i32_17 : i32
    scf.if %19 {
      %c5_63 = arith.constant 5 : index
      %c1_64 = arith.constant 1 : index
      %c0_65 = arith.constant 0 : index
      %84 = vector.load %arg9[%c5_63, %c1_64, %c0_65] : memref<6x10x8xf32, #tpu.memory_space<vmem>>, vector<1x8x8xf32>
      tpu.vector_store %arg9[%c5_63, %c1_64, %c0_65], %7 {strides = array<i32>} : memref<6x10x8xf32, #tpu.memory_space<vmem>>, vector<1x8x8xf32>,
    } else {
    }
    %c0_18 = arith.constant 0 : index
    %c0_19 = arith.constant 0 : index
    %c0_20 = arith.constant 0 : index
    %20 = vector.load %arg9[%c0_18, %c0_19, %c0_20] : memref<6x10x8xf32, #tpu.memory_space<vmem>>, vector<6x8x8xf32>
    %21 = vector.extract_strided_slice %20 {offsets = [0, 0, 0], sizes = [4, 8, 8], strides = [1, 1, 1]} : vector<6x8x8xf32> to vector<4x8x8xf32>
    %22 = vector.shape_cast %21 : vector<4x8x8xf32> to vector<32x8xf32>
    %c0_21 = arith.constant 0 : index
    %c0_22 = arith.constant 0 : index
    %c0_23 = arith.constant 0 : index
    %23 = vector.load %arg6[%c0_21, %c0_22, %c0_23] : memref<9x8x8xf32, #tpu.memory_space<vmem>>, vector<1x8x8xf32>
    %24 = vector.shape_cast %23 : vector<1x8x8xf32> to vector<8x8xf32>
    %cst_24 = arith.constant dense<0.000000e+00> : vector<32x8xf32>
    %25 = tpu.matmul %22, %24, %cst_24 {dimension_numbers = #tpu.dot_dimension_numbers<[1], [0], [0], [1], [0, 0, 1, 1], [], []>} : vector<32x8xf32>, vector<8x8xf32>, vector<32x8xf32> -> vector<32x8xf32>
    %26 = arith.addf %0, %25 : vector<32x8xf32>
    %27 = vector.extract_strided_slice %20 {offsets = [1, 0, 0], sizes = [4, 8, 8], strides = [1, 1, 1]} : vector<6x8x8xf32> to vector<4x8x8xf32>
    %28 = vector.shape_cast %27 : vector<4x8x8xf32> to vector<32x8xf32>
    %c3 = arith.constant 3 : index
    %c0_25 = arith.constant 0 : index
    %c0_26 = arith.constant 0 : index
    %29 = vector.load %arg6[%c3, %c0_25, %c0_26] : memref<9x8x8xf32, #tpu.memory_space<vmem>>, vector<1x8x8xf32>
    %30 = vector.shape_cast %29 : vector<1x8x8xf32> to vector<8x8xf32>
    %cst_27 = arith.constant dense<0.000000e+00> : vector<32x8xf32>
    %31 = tpu.matmul %28, %30, %cst_27 {dimension_numbers = #tpu.dot_dimension_numbers<[1], [0], [0], [1], [0, 0, 1, 1], [], []>} : vector<32x8xf32>, vector<8x8xf32>, vector<32x8xf32> -> vector<32x8xf32>
    %32 = arith.addf %26, %31 : vector<32x8xf32>
    %33 = vector.extract_strided_slice %20 {offsets = [2, 0, 0], sizes = [4, 8, 8], strides = [1, 1, 1]} : vector<6x8x8xf32> to vector<4x8x8xf32>
    %34 = vector.shape_cast %33 : vector<4x8x8xf32> to vector<32x8xf32>
    %c6 = arith.constant 6 : index
    %c0_28 = arith.constant 0 : index
    %c0_29 = arith.constant 0 : index
    %35 = vector.load %arg6[%c6, %c0_28, %c0_29] : memref<9x8x8xf32, #tpu.memory_space<vmem>>, vector<1x8x8xf32>
    %36 = vector.shape_cast %35 : vector<1x8x8xf32> to vector<8x8xf32>
    %cst_30 = arith.constant dense<0.000000e+00> : vector<32x8xf32>
    %37 = tpu.matmul %34, %36, %cst_30 {dimension_numbers = #tpu.dot_dimension_numbers<[1], [0], [0], [1], [0, 0, 1, 1], [], []>} : vector<32x8xf32>, vector<8x8xf32>, vector<32x8xf32> -> vector<32x8xf32>
    %38 = arith.addf %32, %37 : vector<32x8xf32>
    %c0_31 = arith.constant 0 : index
    %c1_32 = arith.constant 1 : index
    %c0_33 = arith.constant 0 : index
    %39 = vector.load %arg9[%c0_31, %c1_32, %c0_33] : memref<6x10x8xf32, #tpu.memory_space<vmem>>, vector<6x8x8xf32>
    %40 = vector.extract_strided_slice %39 {offsets = [0, 0, 0], sizes = [4, 8, 8], strides = [1, 1, 1]} : vector<6x8x8xf32> to vector<4x8x8xf32>
    %41 = vector.shape_cast %40 : vector<4x8x8xf32> to vector<32x8xf32>
    %c1_34 = arith.constant 1 : index
    %c0_35 = arith.constant 0 : index
    %c0_36 = arith.constant 0 : index
    %42 = vector.load %arg6[%c1_34, %c0_35, %c0_36] : memref<9x8x8xf32, #tpu.memory_space<vmem>>, vector<1x8x8xf32>
    %43 = vector.shape_cast %42 : vector<1x8x8xf32> to vector<8x8xf32>
    %cst_37 = arith.constant dense<0.000000e+00> : vector<32x8xf32>
    %44 = tpu.matmul %41, %43, %cst_37 {dimension_numbers = #tpu.dot_dimension_numbers<[1], [0], [0], [1], [0, 0, 1, 1], [], []>} : vector<32x8xf32>, vector<8x8xf32>, vector<32x8xf32> -> vector<32x8xf32>
    %45 = arith.addf %38, %44 : vector<32x8xf32>
    %46 = vector.extract_strided_slice %39 {offsets = [1, 0, 0], sizes = [4, 8, 8], strides = [1, 1, 1]} : vector<6x8x8xf32> to vector<4x8x8xf32>
    %47 = vector.shape_cast %46 : vector<4x8x8xf32> to vector<32x8xf32>
    %c4 = arith.constant 4 : index
    %c0_38 = arith.constant 0 : index
    %c0_39 = arith.constant 0 : index
    %48 = vector.load %arg6[%c4, %c0_38, %c0_39] : memref<9x8x8xf32, #tpu.memory_space<vmem>>, vector<1x8x8xf32>
    %49 = vector.shape_cast %48 : vector<1x8x8xf32> to vector<8x8xf32>
    %cst_40 = arith.constant dense<0.000000e+00> : vector<32x8xf32>
    %50 = tpu.matmul %47, %49, %cst_40 {dimension_numbers = #tpu.dot_dimension_numbers<[1], [0], [0], [1], [0, 0, 1, 1], [], []>} : vector<32x8xf32>, vector<8x8xf32>, vector<32x8xf32> -> vector<32x8xf32>
    %51 = arith.addf %45, %50 : vector<32x8xf32>
    %52 = vector.extract_strided_slice %39 {offsets = [2, 0, 0], sizes = [4, 8, 8], strides = [1, 1, 1]} : vector<6x8x8xf32> to vector<4x8x8xf32>
    %53 = vector.shape_cast %52 : vector<4x8x8xf32> to vector<32x8xf32>
    %c7 = arith.constant 7 : index
    %c0_41 = arith.constant 0 : index
    %c0_42 = arith.constant 0 : index
    %54 = vector.load %arg6[%c7, %c0_41, %c0_42] : memref<9x8x8xf32, #tpu.memory_space<vmem>>, vector<1x8x8xf32>
    %55 = vector.shape_cast %54 : vector<1x8x8xf32> to vector<8x8xf32>
    %cst_43 = arith.constant dense<0.000000e+00> : vector<32x8xf32>
    %56 = tpu.matmul %53, %55, %cst_43 {dimension_numbers = #tpu.dot_dimension_numbers<[1], [0], [0], [1], [0, 0, 1, 1], [], []>} : vector<32x8xf32>, vector<8x8xf32>, vector<32x8xf32> -> vector<32x8xf32>
    %57 = arith.addf %51, %56 : vector<32x8xf32>
    %c0_44 = arith.constant 0 : index
    %c2 = arith.constant 2 : index
    %c0_45 = arith.constant 0 : index
    %58 = vector.load %arg9[%c0_44, %c2, %c0_45] : memref<6x10x8xf32, #tpu.memory_space<vmem>>, vector<6x8x8xf32>
    %59 = vector.extract_strided_slice %58 {offsets = [0, 0, 0], sizes = [4, 8, 8], strides = [1, 1, 1]} : vector<6x8x8xf32> to vector<4x8x8xf32>
    %60 = vector.shape_cast %59 : vector<4x8x8xf32> to vector<32x8xf32>
    %c2_46 = arith.constant 2 : index
    %c0_47 = arith.constant 0 : index
    %c0_48 = arith.constant 0 : index
    %61 = vector.load %arg6[%c2_46, %c0_47, %c0_48] : memref<9x8x8xf32, #tpu.memory_space<vmem>>, vector<1x8x8xf32>
    %62 = vector.shape_cast %61 : vector<1x8x8xf32> to vector<8x8xf32>
    %cst_49 = arith.constant dense<0.000000e+00> : vector<32x8xf32>
    %63 = tpu.matmul %60, %62, %cst_49 {dimension_numbers = #tpu.dot_dimension_numbers<[1], [0], [0], [1], [0, 0, 1, 1], [], []>} : vector<32x8xf32>, vector<8x8xf32>, vector<32x8xf32> -> vector<32x8xf32>
    %64 = arith.addf %57, %63 : vector<32x8xf32>
    %65 = vector.extract_strided_slice %58 {offsets = [1, 0, 0], sizes = [4, 8, 8], strides = [1, 1, 1]} : vector<6x8x8xf32> to vector<4x8x8xf32>
    %66 = vector.shape_cast %65 : vector<4x8x8xf32> to vector<32x8xf32>
    %c5 = arith.constant 5 : index
    %c0_50 = arith.constant 0 : index
    %c0_51 = arith.constant 0 : index
    %67 = vector.load %arg6[%c5, %c0_50, %c0_51] : memref<9x8x8xf32, #tpu.memory_space<vmem>>, vector<1x8x8xf32>
    %68 = vector.shape_cast %67 : vector<1x8x8xf32> to vector<8x8xf32>
    %cst_52 = arith.constant dense<0.000000e+00> : vector<32x8xf32>
    %69 = tpu.matmul %66, %68, %cst_52 {dimension_numbers = #tpu.dot_dimension_numbers<[1], [0], [0], [1], [0, 0, 1, 1], [], []>} : vector<32x8xf32>, vector<8x8xf32>, vector<32x8xf32> -> vector<32x8xf32>
    %70 = arith.addf %64, %69 : vector<32x8xf32>
    %71 = vector.extract_strided_slice %58 {offsets = [2, 0, 0], sizes = [4, 8, 8], strides = [1, 1, 1]} : vector<6x8x8xf32> to vector<4x8x8xf32>
    %72 = vector.shape_cast %71 : vector<4x8x8xf32> to vector<32x8xf32>
    %c8 = arith.constant 8 : index
    %c0_53 = arith.constant 0 : index
    %c0_54 = arith.constant 0 : index
    %73 = vector.load %arg6[%c8, %c0_53, %c0_54] : memref<9x8x8xf32, #tpu.memory_space<vmem>>, vector<1x8x8xf32>
    %74 = vector.shape_cast %73 : vector<1x8x8xf32> to vector<8x8xf32>
    %cst_55 = arith.constant dense<0.000000e+00> : vector<32x8xf32>
    %75 = tpu.matmul %72, %74, %cst_55 {dimension_numbers = #tpu.dot_dimension_numbers<[1], [0], [0], [1], [0, 0, 1, 1], [], []>} : vector<32x8xf32>, vector<8x8xf32>, vector<32x8xf32> -> vector<32x8xf32>
    %76 = arith.addf %70, %75 : vector<32x8xf32>
    %c0_56 = arith.constant 0 : index
    %c0_57 = arith.constant 0 : index
    %77 = vector.load %arg7[%c0_56, %c0_57] : memref<1x8xf32, #tpu.memory_space<vmem>>, vector<1x8xf32>
    %78 = vector.broadcast %77 : vector<1x8xf32> to vector<32x8xf32>
    %79 = arith.addf %76, %78 : vector<32x8xf32>
    %cst_58 = arith.constant 0.000000e+00 : f32
    %80 = vector.broadcast %cst_58 : f32 to vector<32x8xf32>
    %81 = arith.maximumf %79, %80 : vector<32x8xf32>
    %82 = vector.shape_cast %81 : vector<32x8xf32> to vector<1x4x8x8xf32>
    %c0_59 = arith.constant 0 : index
    %c0_60 = arith.constant 0 : index
    %c0_61 = arith.constant 0 : index
    %c0_62 = arith.constant 0 : index
    %83 = vector.load %arg8[%c0_59, %c0_60, %c0_61, %c0_62] : memref<1x4x8x8xf32, #tpu.memory_space<vmem>>, vector<1x4x8x8xf32>
    tpu.vector_store %arg8[%c0_59, %c0_60, %c0_61, %c0_62], %82 {strides = array<i32>} : memref<1x4x8x8xf32, #tpu.memory_space<vmem>>, vector<1x4x8x8xf32>,
    return
  }
  func.func @transform_0(%arg0: i32, %arg1: i32, %arg2: i32) -> (i32, i32, i32, i32) {
    %c0_i32 = arith.constant 0 : i32
    %c0_i32_0 = arith.constant 0 : i32
    %c0_i32_1 = arith.constant 0 : i32
    return %arg0, %arg2, %c0_i32, %c0_i32_0 : i32, i32, i32, i32
  }
  func.func @transform_1(%arg0: i32, %arg1: i32, %arg2: i32) -> (i32, i32, i32, i32) {
    %c4_i32 = arith.constant 4 : i32
    %0 = arith.muli %arg2, %c4_i32 : i32
    %c1_i32 = arith.constant 1 : i32
    %1 = arith.subi %0, %c1_i32 : i32
    %c0_i32 = arith.constant 0 : i32
    %2 = arith.maxsi %1, %c0_i32 : i32
    %c0_i32_0 = arith.constant 0 : i32
    %c0_i32_1 = arith.constant 0 : i32
    %c0_i32_2 = arith.constant 0 : i32
    return %arg0, %2, %c0_i32_0, %c0_i32_1 : i32, i32, i32, i32
  }
  func.func @transform_2(%arg0: i32, %arg1: i32, %arg2: i32) -> (i32, i32, i32, i32) {
    %c4_i32 = arith.constant 4 : i32
    %0 = arith.muli %arg2, %c4_i32 : i32
    %c4_i32_0 = arith.constant 4 : i32
    %1 = arith.addi %0, %c4_i32_0 : i32
    %c7_i32 = arith.constant 7 : i32
    %2 = arith.minsi %1, %c7_i32 : i32
    %c0_i32 = arith.constant 0 : i32
    %c0_i32_1 = arith.constant 0 : i32
    %c0_i32_2 = arith.constant 0 : i32
    return %arg0, %2, %c0_i32, %c0_i32_1 : i32, i32, i32, i32
  }
  func.func @transform_3(%arg0: i32, %arg1: i32, %arg2: i32) -> (i32, i32, i32) {
    %c0_i32 = arith.constant 0 : i32
    %c0_i32_0 = arith.constant 0 : i32
    %c0_i32_1 = arith.constant 0 : i32
    return %c0_i32, %c0_i32_0, %arg1 : i32, i32, i32
  }
  func.func @transform_4(%arg0: i32, %arg1: i32, %arg2: i32) -> (i32, i32) {
    %c0_i32 = arith.constant 0 : i32
    %c0_i32_0 = arith.constant 0 : i32
    return %c0_i32, %arg1 : i32, i32
  }
  func.func @transform_5(%arg0: i32, %arg1: i32, %arg2: i32) -> (i32, i32, i32, i32) {
    %c0_i32 = arith.constant 0 : i32
    %c0_i32_0 = arith.constant 0 : i32
    return %arg0, %arg2, %c0_i32, %arg1 : i32, i32, i32, i32
  }
}

module attributes {stable_mosaic.version = 11 : i64} {
  func.func @kernel(%arg0: i32, %arg1: i32, %arg2: i32, %arg3: memref<1x4x8x16xf32, #tpu.memory_space<vmem>>, %arg4: memref<1x1x8x16xf32, #tpu.memory_space<vmem>>, %arg5: memref<1x1x8x16xf32, #tpu.memory_space<vmem>>, %arg6: memref<1x4x8x16xf32, #tpu.memory_space<vmem>>, %arg7: memref<1x1x8x16xf32, #tpu.memory_space<vmem>>, %arg8: memref<1x1x8x16xf32, #tpu.memory_space<vmem>>, %arg9: memref<9x16x8xf32, #tpu.memory_space<vmem>>, %arg10: memref<9x16x8xf32, #tpu.memory_space<vmem>>, %arg11: memref<1x8xf32, #tpu.memory_space<vmem>>, %arg12: memref<1x4x8x8xf32, #tpu.memory_space<vmem>>, %arg13: memref<6x10x16xf32, #tpu.memory_space<vmem>>, %arg14: memref<6x10x16xf32, #tpu.memory_space<vmem>>) attributes {dimension_semantics = [#tpu.dimension_semantics<parallel>, #tpu.dimension_semantics<parallel>, #tpu.dimension_semantics<parallel>], iteration_bounds = array<i64: 2, 1, 2>, scalar_prefetch = 0 : i64, scratch_operands = 2 : i64, tpu.core_type = #tpu.core_type<tc>, window_params = [{transform_indices = @transform_0, window_bounds = array<i64: 1, 4, 8, 16>}, {transform_indices = @transform_1, window_bounds = array<i64: 1, 1, 8, 16>}, {transform_indices = @transform_2, window_bounds = array<i64: 1, 1, 8, 16>}, {transform_indices = @transform_3, window_bounds = array<i64: 1, 4, 8, 16>}, {transform_indices = @transform_4, window_bounds = array<i64: 1, 1, 8, 16>}, {transform_indices = @transform_5, window_bounds = array<i64: 1, 1, 8, 16>}, {transform_indices = @transform_6, window_bounds = array<i64: 9, 16, 8>}, {transform_indices = @transform_7, window_bounds = array<i64: 9, 16, 8>}, {transform_indices = @transform_8, window_bounds = array<i64: 1, 8>}, {transform_indices = @transform_9, window_bounds = array<i64: 1, 4, 8, 8>}]} {
    %cst = arith.constant 0.000000e+00 : f32
    %0 = vector.broadcast %cst : f32 to vector<32x8xf32>
    %cst_0 = arith.constant 0.000000e+00 : f32
    %1 = vector.broadcast %cst_0 : f32 to vector<6x1x16xf32>
    %c0 = arith.constant 0 : index
    %c0_1 = arith.constant 0 : index
    %c0_2 = arith.constant 0 : index
    %2 = vector.load %arg13[%c0, %c0_1, %c0_2] : memref<6x10x16xf32, #tpu.memory_space<vmem>>, vector<6x1x16xf32>
    tpu.vector_store %arg13[%c0, %c0_1, %c0_2], %1 {strides = array<i32>} : memref<6x10x16xf32, #tpu.memory_space<vmem>>, vector<6x1x16xf32>,
    %c0_3 = arith.constant 0 : index
    %c9 = arith.constant 9 : index
    %c0_4 = arith.constant 0 : index
    %3 = vector.load %arg13[%c0_3, %c9, %c0_4] : memref<6x10x16xf32, #tpu.memory_space<vmem>>, vector<6x1x16xf32>
    tpu.vector_store %arg13[%c0_3, %c9, %c0_4], %1 {strides = array<i32>} : memref<6x10x16xf32, #tpu.memory_space<vmem>>, vector<6x1x16xf32>,
    %c0_5 = arith.constant 0 : index
    %c0_6 = arith.constant 0 : index
    %c0_7 = arith.constant 0 : index
    %c0_8 = arith.constant 0 : index
    %4 = vector.load %arg3[%c0_5, %c0_6, %c0_7, %c0_8] : memref<1x4x8x16xf32, #tpu.memory_space<vmem>>, vector<1x4x8x16xf32>
    %5 = vector.shape_cast %4 : vector<1x4x8x16xf32> to vector<4x8x16xf32>
    %c1 = arith.constant 1 : index
    %c1_9 = arith.constant 1 : index
    %c0_10 = arith.constant 0 : index
    %6 = vector.load %arg13[%c1, %c1_9, %c0_10] : memref<6x10x16xf32, #tpu.memory_space<vmem>>, vector<4x8x16xf32>
    tpu.vector_store %arg13[%c1, %c1_9, %c0_10], %5 {strides = array<i32>} : memref<6x10x16xf32, #tpu.memory_space<vmem>>, vector<4x8x16xf32>,
    %cst_11 = arith.constant 0.000000e+00 : f32
    %7 = vector.broadcast %cst_11 : f32 to vector<1x8x16xf32>
    %c0_i32 = arith.constant 0 : i32
    %8 = arith.cmpi sgt, %arg2, %c0_i32 : i32
    %9 = arith.extui %8 : i1 to i32
    %c0_i32_12 = arith.constant 0 : i32
    %10 = arith.cmpi ne, %9, %c0_i32_12 : i32
    scf.if %10 {
      %c0_131 = arith.constant 0 : index
      %c0_132 = arith.constant 0 : index
      %c0_133 = arith.constant 0 : index
      %c0_134 = arith.constant 0 : index
      %160 = vector.load %arg4[%c0_131, %c0_132, %c0_133, %c0_134] : memref<1x1x8x16xf32, #tpu.memory_space<vmem>>, vector<1x1x8x16xf32>
      %161 = vector.shape_cast %160 : vector<1x1x8x16xf32> to vector<1x8x16xf32>
      %c0_135 = arith.constant 0 : index
      %c1_136 = arith.constant 1 : index
      %c0_137 = arith.constant 0 : index
      %162 = vector.load %arg13[%c0_135, %c1_136, %c0_137] : memref<6x10x16xf32, #tpu.memory_space<vmem>>, vector<1x8x16xf32>
      tpu.vector_store %arg13[%c0_135, %c1_136, %c0_137], %161 {strides = array<i32>} : memref<6x10x16xf32, #tpu.memory_space<vmem>>, vector<1x8x16xf32>,
    } else {
    }
    %c0_i32_13 = arith.constant 0 : i32
    %11 = arith.cmpi eq, %arg2, %c0_i32_13 : i32
    %12 = arith.extui %11 : i1 to i32
    %c0_i32_14 = arith.constant 0 : i32
    %13 = arith.cmpi ne, %12, %c0_i32_14 : i32
    scf.if %13 {
      %c0_131 = arith.constant 0 : index
      %c1_132 = arith.constant 1 : index
      %c0_133 = arith.constant 0 : index
      %160 = vector.load %arg13[%c0_131, %c1_132, %c0_133] : memref<6x10x16xf32, #tpu.memory_space<vmem>>, vector<1x8x16xf32>
      tpu.vector_store %arg13[%c0_131, %c1_132, %c0_133], %7 {strides = array<i32>} : memref<6x10x16xf32, #tpu.memory_space<vmem>>, vector<1x8x16xf32>,
    } else {
    }
    %c1_i32 = arith.constant 1 : i32
    %14 = arith.cmpi slt, %arg2, %c1_i32 : i32
    %15 = arith.extui %14 : i1 to i32
    %c0_i32_15 = arith.constant 0 : i32
    %16 = arith.cmpi ne, %15, %c0_i32_15 : i32
    scf.if %16 {
      %c0_131 = arith.constant 0 : index
      %c0_132 = arith.constant 0 : index
      %c0_133 = arith.constant 0 : index
      %c0_134 = arith.constant 0 : index
      %160 = vector.load %arg5[%c0_131, %c0_132, %c0_133, %c0_134] : memref<1x1x8x16xf32, #tpu.memory_space<vmem>>, vector<1x1x8x16xf32>
      %161 = vector.shape_cast %160 : vector<1x1x8x16xf32> to vector<1x8x16xf32>
      %c5_135 = arith.constant 5 : index
      %c1_136 = arith.constant 1 : index
      %c0_137 = arith.constant 0 : index
      %162 = vector.load %arg13[%c5_135, %c1_136, %c0_137] : memref<6x10x16xf32, #tpu.memory_space<vmem>>, vector<1x8x16xf32>
      tpu.vector_store %arg13[%c5_135, %c1_136, %c0_137], %161 {strides = array<i32>} : memref<6x10x16xf32, #tpu.memory_space<vmem>>, vector<1x8x16xf32>,
    } else {
    }
    %c1_i32_16 = arith.constant 1 : i32
    %17 = arith.cmpi eq, %arg2, %c1_i32_16 : i32
    %18 = arith.extui %17 : i1 to i32
    %c0_i32_17 = arith.constant 0 : i32
    %19 = arith.cmpi ne, %18, %c0_i32_17 : i32
    scf.if %19 {
      %c5_131 = arith.constant 5 : index
      %c1_132 = arith.constant 1 : index
      %c0_133 = arith.constant 0 : index
      %160 = vector.load %arg13[%c5_131, %c1_132, %c0_133] : memref<6x10x16xf32, #tpu.memory_space<vmem>>, vector<1x8x16xf32>
      tpu.vector_store %arg13[%c5_131, %c1_132, %c0_133], %7 {strides = array<i32>} : memref<6x10x16xf32, #tpu.memory_space<vmem>>, vector<1x8x16xf32>,
    } else {
    }
    %c0_18 = arith.constant 0 : index
    %c0_19 = arith.constant 0 : index
    %c0_20 = arith.constant 0 : index
    %20 = vector.load %arg13[%c0_18, %c0_19, %c0_20] : memref<6x10x16xf32, #tpu.memory_space<vmem>>, vector<6x8x16xf32>
    %21 = vector.extract_strided_slice %20 {offsets = [0, 0, 0], sizes = [4, 8, 16], strides = [1, 1, 1]} : vector<6x8x16xf32> to vector<4x8x16xf32>
    %22 = vector.shape_cast %21 : vector<4x8x16xf32> to vector<32x16xf32>
    %c0_21 = arith.constant 0 : index
    %c0_22 = arith.constant 0 : index
    %c0_23 = arith.constant 0 : index
    %23 = vector.load %arg9[%c0_21, %c0_22, %c0_23] : memref<9x16x8xf32, #tpu.memory_space<vmem>>, vector<1x16x8xf32>
    %24 = vector.shape_cast %23 : vector<1x16x8xf32> to vector<16x8xf32>
    %cst_24 = arith.constant dense<0.000000e+00> : vector<32x8xf32>
    %25 = tpu.matmul %22, %24, %cst_24 {dimension_numbers = #tpu.dot_dimension_numbers<[1], [0], [0], [1], [0, 0, 1, 1], [], []>} : vector<32x16xf32>, vector<16x8xf32>, vector<32x8xf32> -> vector<32x8xf32>
    %26 = arith.addf %0, %25 : vector<32x8xf32>
    %27 = vector.extract_strided_slice %20 {offsets = [1, 0, 0], sizes = [4, 8, 16], strides = [1, 1, 1]} : vector<6x8x16xf32> to vector<4x8x16xf32>
    %28 = vector.shape_cast %27 : vector<4x8x16xf32> to vector<32x16xf32>
    %c3 = arith.constant 3 : index
    %c0_25 = arith.constant 0 : index
    %c0_26 = arith.constant 0 : index
    %29 = vector.load %arg9[%c3, %c0_25, %c0_26] : memref<9x16x8xf32, #tpu.memory_space<vmem>>, vector<1x16x8xf32>
    %30 = vector.shape_cast %29 : vector<1x16x8xf32> to vector<16x8xf32>
    %cst_27 = arith.constant dense<0.000000e+00> : vector<32x8xf32>
    %31 = tpu.matmul %28, %30, %cst_27 {dimension_numbers = #tpu.dot_dimension_numbers<[1], [0], [0], [1], [0, 0, 1, 1], [], []>} : vector<32x16xf32>, vector<16x8xf32>, vector<32x8xf32> -> vector<32x8xf32>
    %32 = arith.addf %26, %31 : vector<32x8xf32>
    %33 = vector.extract_strided_slice %20 {offsets = [2, 0, 0], sizes = [4, 8, 16], strides = [1, 1, 1]} : vector<6x8x16xf32> to vector<4x8x16xf32>
    %34 = vector.shape_cast %33 : vector<4x8x16xf32> to vector<32x16xf32>
    %c6 = arith.constant 6 : index
    %c0_28 = arith.constant 0 : index
    %c0_29 = arith.constant 0 : index
    %35 = vector.load %arg9[%c6, %c0_28, %c0_29] : memref<9x16x8xf32, #tpu.memory_space<vmem>>, vector<1x16x8xf32>
    %36 = vector.shape_cast %35 : vector<1x16x8xf32> to vector<16x8xf32>
    %cst_30 = arith.constant dense<0.000000e+00> : vector<32x8xf32>
    %37 = tpu.matmul %34, %36, %cst_30 {dimension_numbers = #tpu.dot_dimension_numbers<[1], [0], [0], [1], [0, 0, 1, 1], [], []>} : vector<32x16xf32>, vector<16x8xf32>, vector<32x8xf32> -> vector<32x8xf32>
    %38 = arith.addf %32, %37 : vector<32x8xf32>
    %c0_31 = arith.constant 0 : index
    %c1_32 = arith.constant 1 : index
    %c0_33 = arith.constant 0 : index
    %39 = vector.load %arg13[%c0_31, %c1_32, %c0_33] : memref<6x10x16xf32, #tpu.memory_space<vmem>>, vector<6x8x16xf32>
    %40 = vector.extract_strided_slice %39 {offsets = [0, 0, 0], sizes = [4, 8, 16], strides = [1, 1, 1]} : vector<6x8x16xf32> to vector<4x8x16xf32>
    %41 = vector.shape_cast %40 : vector<4x8x16xf32> to vector<32x16xf32>
    %c1_34 = arith.constant 1 : index
    %c0_35 = arith.constant 0 : index
    %c0_36 = arith.constant 0 : index
    %42 = vector.load %arg9[%c1_34, %c0_35, %c0_36] : memref<9x16x8xf32, #tpu.memory_space<vmem>>, vector<1x16x8xf32>
    %43 = vector.shape_cast %42 : vector<1x16x8xf32> to vector<16x8xf32>
    %cst_37 = arith.constant dense<0.000000e+00> : vector<32x8xf32>
    %44 = tpu.matmul %41, %43, %cst_37 {dimension_numbers = #tpu.dot_dimension_numbers<[1], [0], [0], [1], [0, 0, 1, 1], [], []>} : vector<32x16xf32>, vector<16x8xf32>, vector<32x8xf32> -> vector<32x8xf32>
    %45 = arith.addf %38, %44 : vector<32x8xf32>
    %46 = vector.extract_strided_slice %39 {offsets = [1, 0, 0], sizes = [4, 8, 16], strides = [1, 1, 1]} : vector<6x8x16xf32> to vector<4x8x16xf32>
    %47 = vector.shape_cast %46 : vector<4x8x16xf32> to vector<32x16xf32>
    %c4 = arith.constant 4 : index
    %c0_38 = arith.constant 0 : index
    %c0_39 = arith.constant 0 : index
    %48 = vector.load %arg9[%c4, %c0_38, %c0_39] : memref<9x16x8xf32, #tpu.memory_space<vmem>>, vector<1x16x8xf32>
    %49 = vector.shape_cast %48 : vector<1x16x8xf32> to vector<16x8xf32>
    %cst_40 = arith.constant dense<0.000000e+00> : vector<32x8xf32>
    %50 = tpu.matmul %47, %49, %cst_40 {dimension_numbers = #tpu.dot_dimension_numbers<[1], [0], [0], [1], [0, 0, 1, 1], [], []>} : vector<32x16xf32>, vector<16x8xf32>, vector<32x8xf32> -> vector<32x8xf32>
    %51 = arith.addf %45, %50 : vector<32x8xf32>
    %52 = vector.extract_strided_slice %39 {offsets = [2, 0, 0], sizes = [4, 8, 16], strides = [1, 1, 1]} : vector<6x8x16xf32> to vector<4x8x16xf32>
    %53 = vector.shape_cast %52 : vector<4x8x16xf32> to vector<32x16xf32>
    %c7 = arith.constant 7 : index
    %c0_41 = arith.constant 0 : index
    %c0_42 = arith.constant 0 : index
    %54 = vector.load %arg9[%c7, %c0_41, %c0_42] : memref<9x16x8xf32, #tpu.memory_space<vmem>>, vector<1x16x8xf32>
    %55 = vector.shape_cast %54 : vector<1x16x8xf32> to vector<16x8xf32>
    %cst_43 = arith.constant dense<0.000000e+00> : vector<32x8xf32>
    %56 = tpu.matmul %53, %55, %cst_43 {dimension_numbers = #tpu.dot_dimension_numbers<[1], [0], [0], [1], [0, 0, 1, 1], [], []>} : vector<32x16xf32>, vector<16x8xf32>, vector<32x8xf32> -> vector<32x8xf32>
    %57 = arith.addf %51, %56 : vector<32x8xf32>
    %c0_44 = arith.constant 0 : index
    %c2 = arith.constant 2 : index
    %c0_45 = arith.constant 0 : index
    %58 = vector.load %arg13[%c0_44, %c2, %c0_45] : memref<6x10x16xf32, #tpu.memory_space<vmem>>, vector<6x8x16xf32>
    %59 = vector.extract_strided_slice %58 {offsets = [0, 0, 0], sizes = [4, 8, 16], strides = [1, 1, 1]} : vector<6x8x16xf32> to vector<4x8x16xf32>
    %60 = vector.shape_cast %59 : vector<4x8x16xf32> to vector<32x16xf32>
    %c2_46 = arith.constant 2 : index
    %c0_47 = arith.constant 0 : index
    %c0_48 = arith.constant 0 : index
    %61 = vector.load %arg9[%c2_46, %c0_47, %c0_48] : memref<9x16x8xf32, #tpu.memory_space<vmem>>, vector<1x16x8xf32>
    %62 = vector.shape_cast %61 : vector<1x16x8xf32> to vector<16x8xf32>
    %cst_49 = arith.constant dense<0.000000e+00> : vector<32x8xf32>
    %63 = tpu.matmul %60, %62, %cst_49 {dimension_numbers = #tpu.dot_dimension_numbers<[1], [0], [0], [1], [0, 0, 1, 1], [], []>} : vector<32x16xf32>, vector<16x8xf32>, vector<32x8xf32> -> vector<32x8xf32>
    %64 = arith.addf %57, %63 : vector<32x8xf32>
    %65 = vector.extract_strided_slice %58 {offsets = [1, 0, 0], sizes = [4, 8, 16], strides = [1, 1, 1]} : vector<6x8x16xf32> to vector<4x8x16xf32>
    %66 = vector.shape_cast %65 : vector<4x8x16xf32> to vector<32x16xf32>
    %c5 = arith.constant 5 : index
    %c0_50 = arith.constant 0 : index
    %c0_51 = arith.constant 0 : index
    %67 = vector.load %arg9[%c5, %c0_50, %c0_51] : memref<9x16x8xf32, #tpu.memory_space<vmem>>, vector<1x16x8xf32>
    %68 = vector.shape_cast %67 : vector<1x16x8xf32> to vector<16x8xf32>
    %cst_52 = arith.constant dense<0.000000e+00> : vector<32x8xf32>
    %69 = tpu.matmul %66, %68, %cst_52 {dimension_numbers = #tpu.dot_dimension_numbers<[1], [0], [0], [1], [0, 0, 1, 1], [], []>} : vector<32x16xf32>, vector<16x8xf32>, vector<32x8xf32> -> vector<32x8xf32>
    %70 = arith.addf %64, %69 : vector<32x8xf32>
    %71 = vector.extract_strided_slice %58 {offsets = [2, 0, 0], sizes = [4, 8, 16], strides = [1, 1, 1]} : vector<6x8x16xf32> to vector<4x8x16xf32>
    %72 = vector.shape_cast %71 : vector<4x8x16xf32> to vector<32x16xf32>
    %c8 = arith.constant 8 : index
    %c0_53 = arith.constant 0 : index
    %c0_54 = arith.constant 0 : index
    %73 = vector.load %arg9[%c8, %c0_53, %c0_54] : memref<9x16x8xf32, #tpu.memory_space<vmem>>, vector<1x16x8xf32>
    %74 = vector.shape_cast %73 : vector<1x16x8xf32> to vector<16x8xf32>
    %cst_55 = arith.constant dense<0.000000e+00> : vector<32x8xf32>
    %75 = tpu.matmul %72, %74, %cst_55 {dimension_numbers = #tpu.dot_dimension_numbers<[1], [0], [0], [1], [0, 0, 1, 1], [], []>} : vector<32x16xf32>, vector<16x8xf32>, vector<32x8xf32> -> vector<32x8xf32>
    %76 = arith.addf %70, %75 : vector<32x8xf32>
    %cst_56 = arith.constant 0.000000e+00 : f32
    %77 = vector.broadcast %cst_56 : f32 to vector<6x1x16xf32>
    %c0_57 = arith.constant 0 : index
    %c0_58 = arith.constant 0 : index
    %c0_59 = arith.constant 0 : index
    %78 = vector.load %arg14[%c0_57, %c0_58, %c0_59] : memref<6x10x16xf32, #tpu.memory_space<vmem>>, vector<6x1x16xf32>
    tpu.vector_store %arg14[%c0_57, %c0_58, %c0_59], %77 {strides = array<i32>} : memref<6x10x16xf32, #tpu.memory_space<vmem>>, vector<6x1x16xf32>,
    %c0_60 = arith.constant 0 : index
    %c9_61 = arith.constant 9 : index
    %c0_62 = arith.constant 0 : index
    %79 = vector.load %arg14[%c0_60, %c9_61, %c0_62] : memref<6x10x16xf32, #tpu.memory_space<vmem>>, vector<6x1x16xf32>
    tpu.vector_store %arg14[%c0_60, %c9_61, %c0_62], %77 {strides = array<i32>} : memref<6x10x16xf32, #tpu.memory_space<vmem>>, vector<6x1x16xf32>,
    %c0_63 = arith.constant 0 : index
    %c0_64 = arith.constant 0 : index
    %c0_65 = arith.constant 0 : index
    %c0_66 = arith.constant 0 : index
    %80 = vector.load %arg6[%c0_63, %c0_64, %c0_65, %c0_66] : memref<1x4x8x16xf32, #tpu.memory_space<vmem>>, vector<1x4x8x16xf32>
    %81 = vector.shape_cast %80 : vector<1x4x8x16xf32> to vector<4x8x16xf32>
    %c1_67 = arith.constant 1 : index
    %c1_68 = arith.constant 1 : index
    %c0_69 = arith.constant 0 : index
    %82 = vector.load %arg14[%c1_67, %c1_68, %c0_69] : memref<6x10x16xf32, #tpu.memory_space<vmem>>, vector<4x8x16xf32>
    tpu.vector_store %arg14[%c1_67, %c1_68, %c0_69], %81 {strides = array<i32>} : memref<6x10x16xf32, #tpu.memory_space<vmem>>, vector<4x8x16xf32>,
    %cst_70 = arith.constant 0.000000e+00 : f32
    %83 = vector.broadcast %cst_70 : f32 to vector<1x8x16xf32>
    %c0_i32_71 = arith.constant 0 : i32
    %84 = arith.cmpi sgt, %arg2, %c0_i32_71 : i32
    %85 = arith.extui %84 : i1 to i32
    %c0_i32_72 = arith.constant 0 : i32
    %86 = arith.cmpi ne, %85, %c0_i32_72 : i32
    scf.if %86 {
      %c0_131 = arith.constant 0 : index
      %c0_132 = arith.constant 0 : index
      %c0_133 = arith.constant 0 : index
      %c0_134 = arith.constant 0 : index
      %160 = vector.load %arg7[%c0_131, %c0_132, %c0_133, %c0_134] : memref<1x1x8x16xf32, #tpu.memory_space<vmem>>, vector<1x1x8x16xf32>
      %161 = vector.shape_cast %160 : vector<1x1x8x16xf32> to vector<1x8x16xf32>
      %c0_135 = arith.constant 0 : index
      %c1_136 = arith.constant 1 : index
      %c0_137 = arith.constant 0 : index
      %162 = vector.load %arg14[%c0_135, %c1_136, %c0_137] : memref<6x10x16xf32, #tpu.memory_space<vmem>>, vector<1x8x16xf32>
      tpu.vector_store %arg14[%c0_135, %c1_136, %c0_137], %161 {strides = array<i32>} : memref<6x10x16xf32, #tpu.memory_space<vmem>>, vector<1x8x16xf32>,
    } else {
    }
    %c0_i32_73 = arith.constant 0 : i32
    %87 = arith.cmpi eq, %arg2, %c0_i32_73 : i32
    %88 = arith.extui %87 : i1 to i32
    %c0_i32_74 = arith.constant 0 : i32
    %89 = arith.cmpi ne, %88, %c0_i32_74 : i32
    scf.if %89 {
      %c0_131 = arith.constant 0 : index
      %c1_132 = arith.constant 1 : index
      %c0_133 = arith.constant 0 : index
      %160 = vector.load %arg14[%c0_131, %c1_132, %c0_133] : memref<6x10x16xf32, #tpu.memory_space<vmem>>, vector<1x8x16xf32>
      tpu.vector_store %arg14[%c0_131, %c1_132, %c0_133], %83 {strides = array<i32>} : memref<6x10x16xf32, #tpu.memory_space<vmem>>, vector<1x8x16xf32>,
    } else {
    }
    %c1_i32_75 = arith.constant 1 : i32
    %90 = arith.cmpi slt, %arg2, %c1_i32_75 : i32
    %91 = arith.extui %90 : i1 to i32
    %c0_i32_76 = arith.constant 0 : i32
    %92 = arith.cmpi ne, %91, %c0_i32_76 : i32
    scf.if %92 {
      %c0_131 = arith.constant 0 : index
      %c0_132 = arith.constant 0 : index
      %c0_133 = arith.constant 0 : index
      %c0_134 = arith.constant 0 : index
      %160 = vector.load %arg8[%c0_131, %c0_132, %c0_133, %c0_134] : memref<1x1x8x16xf32, #tpu.memory_space<vmem>>, vector<1x1x8x16xf32>
      %161 = vector.shape_cast %160 : vector<1x1x8x16xf32> to vector<1x8x16xf32>
      %c5_135 = arith.constant 5 : index
      %c1_136 = arith.constant 1 : index
      %c0_137 = arith.constant 0 : index
      %162 = vector.load %arg14[%c5_135, %c1_136, %c0_137] : memref<6x10x16xf32, #tpu.memory_space<vmem>>, vector<1x8x16xf32>
      tpu.vector_store %arg14[%c5_135, %c1_136, %c0_137], %161 {strides = array<i32>} : memref<6x10x16xf32, #tpu.memory_space<vmem>>, vector<1x8x16xf32>,
    } else {
    }
    %c1_i32_77 = arith.constant 1 : i32
    %93 = arith.cmpi eq, %arg2, %c1_i32_77 : i32
    %94 = arith.extui %93 : i1 to i32
    %c0_i32_78 = arith.constant 0 : i32
    %95 = arith.cmpi ne, %94, %c0_i32_78 : i32
    scf.if %95 {
      %c5_131 = arith.constant 5 : index
      %c1_132 = arith.constant 1 : index
      %c0_133 = arith.constant 0 : index
      %160 = vector.load %arg14[%c5_131, %c1_132, %c0_133] : memref<6x10x16xf32, #tpu.memory_space<vmem>>, vector<1x8x16xf32>
      tpu.vector_store %arg14[%c5_131, %c1_132, %c0_133], %83 {strides = array<i32>} : memref<6x10x16xf32, #tpu.memory_space<vmem>>, vector<1x8x16xf32>,
    } else {
    }
    %c0_79 = arith.constant 0 : index
    %c0_80 = arith.constant 0 : index
    %c0_81 = arith.constant 0 : index
    %96 = vector.load %arg14[%c0_79, %c0_80, %c0_81] : memref<6x10x16xf32, #tpu.memory_space<vmem>>, vector<6x8x16xf32>
    %97 = vector.extract_strided_slice %96 {offsets = [0, 0, 0], sizes = [4, 8, 16], strides = [1, 1, 1]} : vector<6x8x16xf32> to vector<4x8x16xf32>
    %98 = vector.shape_cast %97 : vector<4x8x16xf32> to vector<32x16xf32>
    %c0_82 = arith.constant 0 : index
    %c0_83 = arith.constant 0 : index
    %c0_84 = arith.constant 0 : index
    %99 = vector.load %arg10[%c0_82, %c0_83, %c0_84] : memref<9x16x8xf32, #tpu.memory_space<vmem>>, vector<1x16x8xf32>
    %100 = vector.shape_cast %99 : vector<1x16x8xf32> to vector<16x8xf32>
    %cst_85 = arith.constant dense<0.000000e+00> : vector<32x8xf32>
    %101 = tpu.matmul %98, %100, %cst_85 {dimension_numbers = #tpu.dot_dimension_numbers<[1], [0], [0], [1], [0, 0, 1, 1], [], []>} : vector<32x16xf32>, vector<16x8xf32>, vector<32x8xf32> -> vector<32x8xf32>
    %102 = arith.addf %76, %101 : vector<32x8xf32>
    %103 = vector.extract_strided_slice %96 {offsets = [1, 0, 0], sizes = [4, 8, 16], strides = [1, 1, 1]} : vector<6x8x16xf32> to vector<4x8x16xf32>
    %104 = vector.shape_cast %103 : vector<4x8x16xf32> to vector<32x16xf32>
    %c3_86 = arith.constant 3 : index
    %c0_87 = arith.constant 0 : index
    %c0_88 = arith.constant 0 : index
    %105 = vector.load %arg10[%c3_86, %c0_87, %c0_88] : memref<9x16x8xf32, #tpu.memory_space<vmem>>, vector<1x16x8xf32>
    %106 = vector.shape_cast %105 : vector<1x16x8xf32> to vector<16x8xf32>
    %cst_89 = arith.constant dense<0.000000e+00> : vector<32x8xf32>
    %107 = tpu.matmul %104, %106, %cst_89 {dimension_numbers = #tpu.dot_dimension_numbers<[1], [0], [0], [1], [0, 0, 1, 1], [], []>} : vector<32x16xf32>, vector<16x8xf32>, vector<32x8xf32> -> vector<32x8xf32>
    %108 = arith.addf %102, %107 : vector<32x8xf32>
    %109 = vector.extract_strided_slice %96 {offsets = [2, 0, 0], sizes = [4, 8, 16], strides = [1, 1, 1]} : vector<6x8x16xf32> to vector<4x8x16xf32>
    %110 = vector.shape_cast %109 : vector<4x8x16xf32> to vector<32x16xf32>
    %c6_90 = arith.constant 6 : index
    %c0_91 = arith.constant 0 : index
    %c0_92 = arith.constant 0 : index
    %111 = vector.load %arg10[%c6_90, %c0_91, %c0_92] : memref<9x16x8xf32, #tpu.memory_space<vmem>>, vector<1x16x8xf32>
    %112 = vector.shape_cast %111 : vector<1x16x8xf32> to vector<16x8xf32>
    %cst_93 = arith.constant dense<0.000000e+00> : vector<32x8xf32>
    %113 = tpu.matmul %110, %112, %cst_93 {dimension_numbers = #tpu.dot_dimension_numbers<[1], [0], [0], [1], [0, 0, 1, 1], [], []>} : vector<32x16xf32>, vector<16x8xf32>, vector<32x8xf32> -> vector<32x8xf32>
    %114 = arith.addf %108, %113 : vector<32x8xf32>
    %c0_94 = arith.constant 0 : index
    %c1_95 = arith.constant 1 : index
    %c0_96 = arith.constant 0 : index
    %115 = vector.load %arg14[%c0_94, %c1_95, %c0_96] : memref<6x10x16xf32, #tpu.memory_space<vmem>>, vector<6x8x16xf32>
    %116 = vector.extract_strided_slice %115 {offsets = [0, 0, 0], sizes = [4, 8, 16], strides = [1, 1, 1]} : vector<6x8x16xf32> to vector<4x8x16xf32>
    %117 = vector.shape_cast %116 : vector<4x8x16xf32> to vector<32x16xf32>
    %c1_97 = arith.constant 1 : index
    %c0_98 = arith.constant 0 : index
    %c0_99 = arith.constant 0 : index
    %118 = vector.load %arg10[%c1_97, %c0_98, %c0_99] : memref<9x16x8xf32, #tpu.memory_space<vmem>>, vector<1x16x8xf32>
    %119 = vector.shape_cast %118 : vector<1x16x8xf32> to vector<16x8xf32>
    %cst_100 = arith.constant dense<0.000000e+00> : vector<32x8xf32>
    %120 = tpu.matmul %117, %119, %cst_100 {dimension_numbers = #tpu.dot_dimension_numbers<[1], [0], [0], [1], [0, 0, 1, 1], [], []>} : vector<32x16xf32>, vector<16x8xf32>, vector<32x8xf32> -> vector<32x8xf32>
    %121 = arith.addf %114, %120 : vector<32x8xf32>
    %122 = vector.extract_strided_slice %115 {offsets = [1, 0, 0], sizes = [4, 8, 16], strides = [1, 1, 1]} : vector<6x8x16xf32> to vector<4x8x16xf32>
    %123 = vector.shape_cast %122 : vector<4x8x16xf32> to vector<32x16xf32>
    %c4_101 = arith.constant 4 : index
    %c0_102 = arith.constant 0 : index
    %c0_103 = arith.constant 0 : index
    %124 = vector.load %arg10[%c4_101, %c0_102, %c0_103] : memref<9x16x8xf32, #tpu.memory_space<vmem>>, vector<1x16x8xf32>
    %125 = vector.shape_cast %124 : vector<1x16x8xf32> to vector<16x8xf32>
    %cst_104 = arith.constant dense<0.000000e+00> : vector<32x8xf32>
    %126 = tpu.matmul %123, %125, %cst_104 {dimension_numbers = #tpu.dot_dimension_numbers<[1], [0], [0], [1], [0, 0, 1, 1], [], []>} : vector<32x16xf32>, vector<16x8xf32>, vector<32x8xf32> -> vector<32x8xf32>
    %127 = arith.addf %121, %126 : vector<32x8xf32>
    %128 = vector.extract_strided_slice %115 {offsets = [2, 0, 0], sizes = [4, 8, 16], strides = [1, 1, 1]} : vector<6x8x16xf32> to vector<4x8x16xf32>
    %129 = vector.shape_cast %128 : vector<4x8x16xf32> to vector<32x16xf32>
    %c7_105 = arith.constant 7 : index
    %c0_106 = arith.constant 0 : index
    %c0_107 = arith.constant 0 : index
    %130 = vector.load %arg10[%c7_105, %c0_106, %c0_107] : memref<9x16x8xf32, #tpu.memory_space<vmem>>, vector<1x16x8xf32>
    %131 = vector.shape_cast %130 : vector<1x16x8xf32> to vector<16x8xf32>
    %cst_108 = arith.constant dense<0.000000e+00> : vector<32x8xf32>
    %132 = tpu.matmul %129, %131, %cst_108 {dimension_numbers = #tpu.dot_dimension_numbers<[1], [0], [0], [1], [0, 0, 1, 1], [], []>} : vector<32x16xf32>, vector<16x8xf32>, vector<32x8xf32> -> vector<32x8xf32>
    %133 = arith.addf %127, %132 : vector<32x8xf32>
    %c0_109 = arith.constant 0 : index
    %c2_110 = arith.constant 2 : index
    %c0_111 = arith.constant 0 : index
    %134 = vector.load %arg14[%c0_109, %c2_110, %c0_111] : memref<6x10x16xf32, #tpu.memory_space<vmem>>, vector<6x8x16xf32>
    %135 = vector.extract_strided_slice %134 {offsets = [0, 0, 0], sizes = [4, 8, 16], strides = [1, 1, 1]} : vector<6x8x16xf32> to vector<4x8x16xf32>
    %136 = vector.shape_cast %135 : vector<4x8x16xf32> to vector<32x16xf32>
    %c2_112 = arith.constant 2 : index
    %c0_113 = arith.constant 0 : index
    %c0_114 = arith.constant 0 : index
    %137 = vector.load %arg10[%c2_112, %c0_113, %c0_114] : memref<9x16x8xf32, #tpu.memory_space<vmem>>, vector<1x16x8xf32>
    %138 = vector.shape_cast %137 : vector<1x16x8xf32> to vector<16x8xf32>
    %cst_115 = arith.constant dense<0.000000e+00> : vector<32x8xf32>
    %139 = tpu.matmul %136, %138, %cst_115 {dimension_numbers = #tpu.dot_dimension_numbers<[1], [0], [0], [1], [0, 0, 1, 1], [], []>} : vector<32x16xf32>, vector<16x8xf32>, vector<32x8xf32> -> vector<32x8xf32>
    %140 = arith.addf %133, %139 : vector<32x8xf32>
    %141 = vector.extract_strided_slice %134 {offsets = [1, 0, 0], sizes = [4, 8, 16], strides = [1, 1, 1]} : vector<6x8x16xf32> to vector<4x8x16xf32>
    %142 = vector.shape_cast %141 : vector<4x8x16xf32> to vector<32x16xf32>
    %c5_116 = arith.constant 5 : index
    %c0_117 = arith.constant 0 : index
    %c0_118 = arith.constant 0 : index
    %143 = vector.load %arg10[%c5_116, %c0_117, %c0_118] : memref<9x16x8xf32, #tpu.memory_space<vmem>>, vector<1x16x8xf32>
    %144 = vector.shape_cast %143 : vector<1x16x8xf32> to vector<16x8xf32>
    %cst_119 = arith.constant dense<0.000000e+00> : vector<32x8xf32>
    %145 = tpu.matmul %142, %144, %cst_119 {dimension_numbers = #tpu.dot_dimension_numbers<[1], [0], [0], [1], [0, 0, 1, 1], [], []>} : vector<32x16xf32>, vector<16x8xf32>, vector<32x8xf32> -> vector<32x8xf32>
    %146 = arith.addf %140, %145 : vector<32x8xf32>
    %147 = vector.extract_strided_slice %134 {offsets = [2, 0, 0], sizes = [4, 8, 16], strides = [1, 1, 1]} : vector<6x8x16xf32> to vector<4x8x16xf32>
    %148 = vector.shape_cast %147 : vector<4x8x16xf32> to vector<32x16xf32>
    %c8_120 = arith.constant 8 : index
    %c0_121 = arith.constant 0 : index
    %c0_122 = arith.constant 0 : index
    %149 = vector.load %arg10[%c8_120, %c0_121, %c0_122] : memref<9x16x8xf32, #tpu.memory_space<vmem>>, vector<1x16x8xf32>
    %150 = vector.shape_cast %149 : vector<1x16x8xf32> to vector<16x8xf32>
    %cst_123 = arith.constant dense<0.000000e+00> : vector<32x8xf32>
    %151 = tpu.matmul %148, %150, %cst_123 {dimension_numbers = #tpu.dot_dimension_numbers<[1], [0], [0], [1], [0, 0, 1, 1], [], []>} : vector<32x16xf32>, vector<16x8xf32>, vector<32x8xf32> -> vector<32x8xf32>
    %152 = arith.addf %146, %151 : vector<32x8xf32>
    %c0_124 = arith.constant 0 : index
    %c0_125 = arith.constant 0 : index
    %153 = vector.load %arg11[%c0_124, %c0_125] : memref<1x8xf32, #tpu.memory_space<vmem>>, vector<1x8xf32>
    %154 = vector.broadcast %153 : vector<1x8xf32> to vector<32x8xf32>
    %155 = arith.addf %152, %154 : vector<32x8xf32>
    %cst_126 = arith.constant 0.000000e+00 : f32
    %156 = vector.broadcast %cst_126 : f32 to vector<32x8xf32>
    %157 = arith.maximumf %155, %156 : vector<32x8xf32>
    %158 = vector.shape_cast %157 : vector<32x8xf32> to vector<1x4x8x8xf32>
    %c0_127 = arith.constant 0 : index
    %c0_128 = arith.constant 0 : index
    %c0_129 = arith.constant 0 : index
    %c0_130 = arith.constant 0 : index
    %159 = vector.load %arg12[%c0_127, %c0_128, %c0_129, %c0_130] : memref<1x4x8x8xf32, #tpu.memory_space<vmem>>, vector<1x4x8x8xf32>
    tpu.vector_store %arg12[%c0_127, %c0_128, %c0_129, %c0_130], %158 {strides = array<i32>} : memref<1x4x8x8xf32, #tpu.memory_space<vmem>>, vector<1x4x8x8xf32>,
    return
  }
  func.func @transform_0(%arg0: i32, %arg1: i32, %arg2: i32) -> (i32, i32, i32, i32) {
    %c0_i32 = arith.constant 0 : i32
    %c0_i32_0 = arith.constant 0 : i32
    %c0_i32_1 = arith.constant 0 : i32
    return %arg0, %arg2, %c0_i32, %c0_i32_0 : i32, i32, i32, i32
  }
  func.func @transform_1(%arg0: i32, %arg1: i32, %arg2: i32) -> (i32, i32, i32, i32) {
    %c4_i32 = arith.constant 4 : i32
    %0 = arith.muli %arg2, %c4_i32 : i32
    %c1_i32 = arith.constant 1 : i32
    %1 = arith.subi %0, %c1_i32 : i32
    %c0_i32 = arith.constant 0 : i32
    %2 = arith.maxsi %1, %c0_i32 : i32
    %c0_i32_0 = arith.constant 0 : i32
    %c0_i32_1 = arith.constant 0 : i32
    %c0_i32_2 = arith.constant 0 : i32
    return %arg0, %2, %c0_i32_0, %c0_i32_1 : i32, i32, i32, i32
  }
  func.func @transform_2(%arg0: i32, %arg1: i32, %arg2: i32) -> (i32, i32, i32, i32) {
    %c4_i32 = arith.constant 4 : i32
    %0 = arith.muli %arg2, %c4_i32 : i32
    %c4_i32_0 = arith.constant 4 : i32
    %1 = arith.addi %0, %c4_i32_0 : i32
    %c7_i32 = arith.constant 7 : i32
    %2 = arith.minsi %1, %c7_i32 : i32
    %c0_i32 = arith.constant 0 : i32
    %c0_i32_1 = arith.constant 0 : i32
    %c0_i32_2 = arith.constant 0 : i32
    return %arg0, %2, %c0_i32, %c0_i32_1 : i32, i32, i32, i32
  }
  func.func @transform_3(%arg0: i32, %arg1: i32, %arg2: i32) -> (i32, i32, i32, i32) {
    %c0_i32 = arith.constant 0 : i32
    %c0_i32_0 = arith.constant 0 : i32
    %c0_i32_1 = arith.constant 0 : i32
    return %arg0, %arg2, %c0_i32, %c0_i32_0 : i32, i32, i32, i32
  }
  func.func @transform_4(%arg0: i32, %arg1: i32, %arg2: i32) -> (i32, i32, i32, i32) {
    %c4_i32 = arith.constant 4 : i32
    %0 = arith.muli %arg2, %c4_i32 : i32
    %c1_i32 = arith.constant 1 : i32
    %1 = arith.subi %0, %c1_i32 : i32
    %c0_i32 = arith.constant 0 : i32
    %2 = arith.maxsi %1, %c0_i32 : i32
    %c0_i32_0 = arith.constant 0 : i32
    %c0_i32_1 = arith.constant 0 : i32
    %c0_i32_2 = arith.constant 0 : i32
    return %arg0, %2, %c0_i32_0, %c0_i32_1 : i32, i32, i32, i32
  }
  func.func @transform_5(%arg0: i32, %arg1: i32, %arg2: i32) -> (i32, i32, i32, i32) {
    %c4_i32 = arith.constant 4 : i32
    %0 = arith.muli %arg2, %c4_i32 : i32
    %c4_i32_0 = arith.constant 4 : i32
    %1 = arith.addi %0, %c4_i32_0 : i32
    %c7_i32 = arith.constant 7 : i32
    %2 = arith.minsi %1, %c7_i32 : i32
    %c0_i32 = arith.constant 0 : i32
    %c0_i32_1 = arith.constant 0 : i32
    %c0_i32_2 = arith.constant 0 : i32
    return %arg0, %2, %c0_i32, %c0_i32_1 : i32, i32, i32, i32
  }
  func.func @transform_6(%arg0: i32, %arg1: i32, %arg2: i32) -> (i32, i32, i32) {
    %c0_i32 = arith.constant 0 : i32
    %c0_i32_0 = arith.constant 0 : i32
    %c0_i32_1 = arith.constant 0 : i32
    return %c0_i32, %c0_i32_0, %arg1 : i32, i32, i32
  }
  func.func @transform_7(%arg0: i32, %arg1: i32, %arg2: i32) -> (i32, i32, i32) {
    %c0_i32 = arith.constant 0 : i32
    %c0_i32_0 = arith.constant 0 : i32
    %c0_i32_1 = arith.constant 0 : i32
    return %c0_i32, %c0_i32_0, %arg1 : i32, i32, i32
  }
  func.func @transform_8(%arg0: i32, %arg1: i32, %arg2: i32) -> (i32, i32) {
    %c0_i32 = arith.constant 0 : i32
    %c0_i32_0 = arith.constant 0 : i32
    return %c0_i32, %arg1 : i32, i32
  }
  func.func @transform_9(%arg0: i32, %arg1: i32, %arg2: i32) -> (i32, i32, i32, i32) {
    %c0_i32 = arith.constant 0 : i32
    %c0_i32_0 = arith.constant 0 : i32
    return %arg0, %arg2, %c0_i32, %arg1 : i32, i32, i32, i32
  }
}

module attributes {stable_mosaic.version = 11 : i64} {
  func.func @_upconv2x2_kernel(%arg0: i32, %arg1: i32, %arg2: memref<1x4x8x8xf32, #tpu.memory_space<vmem>>, %arg3: memref<8x32xf32, #tpu.memory_space<vmem>>, %arg4: memref<1x32xf32, #tpu.memory_space<vmem>>, %arg5: memref<1x4x2x8x16xf32, #tpu.memory_space<vmem>>) attributes {dimension_semantics = [#tpu.dimension_semantics<parallel>, #tpu.dimension_semantics<parallel>], iteration_bounds = array<i64: 2, 2>, scalar_prefetch = 0 : i64, scratch_operands = 0 : i64, tpu.core_type = #tpu.core_type<tc>, window_params = [{transform_indices = @transform_0, window_bounds = array<i64: 1, 4, 8, 8>}, {pipeline_mode = #tpu.pipeline_mode<synchronous>, transform_indices = @transform_1, window_bounds = array<i64: 8, 32>}, {pipeline_mode = #tpu.pipeline_mode<synchronous>, transform_indices = @transform_2, window_bounds = array<i64: 1, 32>}, {transform_indices = @transform_3, window_bounds = array<i64: 1, 4, 2, 8, 16>}]} {
    %c0 = arith.constant 0 : index
    %c0_0 = arith.constant 0 : index
    %c0_1 = arith.constant 0 : index
    %c0_2 = arith.constant 0 : index
    %0 = vector.load %arg2[%c0, %c0_0, %c0_1, %c0_2] : memref<1x4x8x8xf32, #tpu.memory_space<vmem>>, vector<1x4x8x8xf32>
    %1 = vector.shape_cast %0 : vector<1x4x8x8xf32> to vector<32x8xf32>
    %c0_3 = arith.constant 0 : index
    %c0_4 = arith.constant 0 : index
    %2 = vector.load %arg3[%c0_3, %c0_4] : memref<8x32xf32, #tpu.memory_space<vmem>>, vector<8x32xf32>
    %cst = arith.constant dense<0.000000e+00> : vector<32x32xf32>
    %3 = tpu.matmul %1, %2, %cst {dimension_numbers = #tpu.dot_dimension_numbers<[1], [0], [0], [1], [0, 0, 1, 1], [], []>} : vector<32x8xf32>, vector<8x32xf32>, vector<32x32xf32> -> vector<32x32xf32>
    %c0_5 = arith.constant 0 : index
    %c0_6 = arith.constant 0 : index
    %4 = vector.load %arg4[%c0_5, %c0_6] : memref<1x32xf32, #tpu.memory_space<vmem>>, vector<1x32xf32>
    %5 = vector.broadcast %4 : vector<1x32xf32> to vector<32x32xf32>
    %6 = arith.addf %3, %5 : vector<32x32xf32>
    %7 = vector.extract_strided_slice %6 {offsets = [0, 0], sizes = [32, 16], strides = [1, 1]} : vector<32x32xf32> to vector<32x16xf32>
    %8 = vector.shape_cast %7 : vector<32x16xf32> to vector<1x4x1x8x16xf32>
    %c0_7 = arith.constant 0 : index
    %c0_8 = arith.constant 0 : index
    %c0_9 = arith.constant 0 : index
    %c0_10 = arith.constant 0 : index
    %c0_11 = arith.constant 0 : index
    %9 = vector.load %arg5[%c0_7, %c0_8, %c0_9, %c0_10, %c0_11] : memref<1x4x2x8x16xf32, #tpu.memory_space<vmem>>, vector<1x4x1x8x16xf32>
    tpu.vector_store %arg5[%c0_7, %c0_8, %c0_9, %c0_10, %c0_11], %8 {strides = array<i32>} : memref<1x4x2x8x16xf32, #tpu.memory_space<vmem>>, vector<1x4x1x8x16xf32>,
    %10 = vector.extract_strided_slice %6 {offsets = [0, 16], sizes = [32, 16], strides = [1, 1]} : vector<32x32xf32> to vector<32x16xf32>
    %11 = vector.shape_cast %10 : vector<32x16xf32> to vector<1x4x1x8x16xf32>
    %c0_12 = arith.constant 0 : index
    %c0_13 = arith.constant 0 : index
    %c1 = arith.constant 1 : index
    %c0_14 = arith.constant 0 : index
    %c0_15 = arith.constant 0 : index
    %12 = vector.load %arg5[%c0_12, %c0_13, %c1, %c0_14, %c0_15] : memref<1x4x2x8x16xf32, #tpu.memory_space<vmem>>, vector<1x4x1x8x16xf32>
    tpu.vector_store %arg5[%c0_12, %c0_13, %c1, %c0_14, %c0_15], %11 {strides = array<i32>} : memref<1x4x2x8x16xf32, #tpu.memory_space<vmem>>, vector<1x4x1x8x16xf32>,
    return
  }
  func.func @transform_0(%arg0: i32, %arg1: i32) -> (i32, i32, i32, i32) {
    %c0_i32 = arith.constant 0 : i32
    %c0_i32_0 = arith.constant 0 : i32
    %c0_i32_1 = arith.constant 0 : i32
    return %arg0, %arg1, %c0_i32, %c0_i32_0 : i32, i32, i32, i32
  }
  func.func @transform_1(%arg0: i32, %arg1: i32) -> (i32, i32) {
    %c0_i32 = arith.constant 0 : i32
    %c0_i32_0 = arith.constant 0 : i32
    %c0_i32_1 = arith.constant 0 : i32
    return %c0_i32, %c0_i32_0 : i32, i32
  }
  func.func @transform_2(%arg0: i32, %arg1: i32) -> (i32, i32) {
    %c0_i32 = arith.constant 0 : i32
    %c0_i32_0 = arith.constant 0 : i32
    %c0_i32_1 = arith.constant 0 : i32
    return %c0_i32, %c0_i32_0 : i32, i32
  }
  func.func @transform_3(%arg0: i32, %arg1: i32) -> (i32, i32, i32, i32, i32) {
    %c0_i32 = arith.constant 0 : i32
    %c0_i32_0 = arith.constant 0 : i32
    %c0_i32_1 = arith.constant 0 : i32
    %c0_i32_2 = arith.constant 0 : i32
    return %arg0, %arg1, %c0_i32, %c0_i32_0, %c0_i32_1 : i32, i32, i32, i32, i32
  }
}

module attributes {stable_mosaic.version = 11 : i64} {
  func.func @kernel(%arg0: i32, %arg1: i32, %arg2: i32, %arg3: memref<1x4x16x8xf32, #tpu.memory_space<vmem>>, %arg4: memref<1x1x16x8xf32, #tpu.memory_space<vmem>>, %arg5: memref<1x1x16x8xf32, #tpu.memory_space<vmem>>, %arg6: memref<1x4x16x8xf32, #tpu.memory_space<vmem>>, %arg7: memref<1x1x16x8xf32, #tpu.memory_space<vmem>>, %arg8: memref<1x1x16x8xf32, #tpu.memory_space<vmem>>, %arg9: memref<9x8x4xf32, #tpu.memory_space<vmem>>, %arg10: memref<9x8x4xf32, #tpu.memory_space<vmem>>, %arg11: memref<1x4xf32, #tpu.memory_space<vmem>>, %arg12: memref<1x4x16x4xf32, #tpu.memory_space<vmem>>, %arg13: memref<6x18x8xf32, #tpu.memory_space<vmem>>, %arg14: memref<6x18x8xf32, #tpu.memory_space<vmem>>) attributes {dimension_semantics = [#tpu.dimension_semantics<parallel>, #tpu.dimension_semantics<parallel>, #tpu.dimension_semantics<parallel>], iteration_bounds = array<i64: 2, 1, 4>, scalar_prefetch = 0 : i64, scratch_operands = 2 : i64, tpu.core_type = #tpu.core_type<tc>, window_params = [{transform_indices = @transform_0, window_bounds = array<i64: 1, 4, 16, 8>}, {transform_indices = @transform_1, window_bounds = array<i64: 1, 1, 16, 8>}, {transform_indices = @transform_2, window_bounds = array<i64: 1, 1, 16, 8>}, {transform_indices = @transform_3, window_bounds = array<i64: 1, 4, 16, 8>}, {transform_indices = @transform_4, window_bounds = array<i64: 1, 1, 16, 8>}, {transform_indices = @transform_5, window_bounds = array<i64: 1, 1, 16, 8>}, {transform_indices = @transform_6, window_bounds = array<i64: 9, 8, 4>}, {transform_indices = @transform_7, window_bounds = array<i64: 9, 8, 4>}, {transform_indices = @transform_8, window_bounds = array<i64: 1, 4>}, {transform_indices = @transform_9, window_bounds = array<i64: 1, 4, 16, 4>}]} {
    %cst = arith.constant 0.000000e+00 : f32
    %0 = vector.broadcast %cst : f32 to vector<64x4xf32>
    %cst_0 = arith.constant 0.000000e+00 : f32
    %1 = vector.broadcast %cst_0 : f32 to vector<6x1x8xf32>
    %c0 = arith.constant 0 : index
    %c0_1 = arith.constant 0 : index
    %c0_2 = arith.constant 0 : index
    %2 = vector.load %arg13[%c0, %c0_1, %c0_2] : memref<6x18x8xf32, #tpu.memory_space<vmem>>, vector<6x1x8xf32>
    tpu.vector_store %arg13[%c0, %c0_1, %c0_2], %1 {strides = array<i32>} : memref<6x18x8xf32, #tpu.memory_space<vmem>>, vector<6x1x8xf32>,
    %c0_3 = arith.constant 0 : index
    %c17 = arith.constant 17 : index
    %c0_4 = arith.constant 0 : index
    %3 = vector.load %arg13[%c0_3, %c17, %c0_4] : memref<6x18x8xf32, #tpu.memory_space<vmem>>, vector<6x1x8xf32>
    tpu.vector_store %arg13[%c0_3, %c17, %c0_4], %1 {strides = array<i32>} : memref<6x18x8xf32, #tpu.memory_space<vmem>>, vector<6x1x8xf32>,
    %c0_5 = arith.constant 0 : index
    %c0_6 = arith.constant 0 : index
    %c0_7 = arith.constant 0 : index
    %c0_8 = arith.constant 0 : index
    %4 = vector.load %arg3[%c0_5, %c0_6, %c0_7, %c0_8] : memref<1x4x16x8xf32, #tpu.memory_space<vmem>>, vector<1x4x16x8xf32>
    %5 = vector.shape_cast %4 : vector<1x4x16x8xf32> to vector<4x16x8xf32>
    %c1 = arith.constant 1 : index
    %c1_9 = arith.constant 1 : index
    %c0_10 = arith.constant 0 : index
    %6 = vector.load %arg13[%c1, %c1_9, %c0_10] : memref<6x18x8xf32, #tpu.memory_space<vmem>>, vector<4x16x8xf32>
    tpu.vector_store %arg13[%c1, %c1_9, %c0_10], %5 {strides = array<i32>} : memref<6x18x8xf32, #tpu.memory_space<vmem>>, vector<4x16x8xf32>,
    %cst_11 = arith.constant 0.000000e+00 : f32
    %7 = vector.broadcast %cst_11 : f32 to vector<1x16x8xf32>
    %c0_i32 = arith.constant 0 : i32
    %8 = arith.cmpi sgt, %arg2, %c0_i32 : i32
    %9 = arith.extui %8 : i1 to i32
    %c0_i32_12 = arith.constant 0 : i32
    %10 = arith.cmpi ne, %9, %c0_i32_12 : i32
    scf.if %10 {
      %c0_131 = arith.constant 0 : index
      %c0_132 = arith.constant 0 : index
      %c0_133 = arith.constant 0 : index
      %c0_134 = arith.constant 0 : index
      %160 = vector.load %arg4[%c0_131, %c0_132, %c0_133, %c0_134] : memref<1x1x16x8xf32, #tpu.memory_space<vmem>>, vector<1x1x16x8xf32>
      %161 = vector.shape_cast %160 : vector<1x1x16x8xf32> to vector<1x16x8xf32>
      %c0_135 = arith.constant 0 : index
      %c1_136 = arith.constant 1 : index
      %c0_137 = arith.constant 0 : index
      %162 = vector.load %arg13[%c0_135, %c1_136, %c0_137] : memref<6x18x8xf32, #tpu.memory_space<vmem>>, vector<1x16x8xf32>
      tpu.vector_store %arg13[%c0_135, %c1_136, %c0_137], %161 {strides = array<i32>} : memref<6x18x8xf32, #tpu.memory_space<vmem>>, vector<1x16x8xf32>,
    } else {
    }
    %c0_i32_13 = arith.constant 0 : i32
    %11 = arith.cmpi eq, %arg2, %c0_i32_13 : i32
    %12 = arith.extui %11 : i1 to i32
    %c0_i32_14 = arith.constant 0 : i32
    %13 = arith.cmpi ne, %12, %c0_i32_14 : i32
    scf.if %13 {
      %c0_131 = arith.constant 0 : index
      %c1_132 = arith.constant 1 : index
      %c0_133 = arith.constant 0 : index
      %160 = vector.load %arg13[%c0_131, %c1_132, %c0_133] : memref<6x18x8xf32, #tpu.memory_space<vmem>>, vector<1x16x8xf32>
      tpu.vector_store %arg13[%c0_131, %c1_132, %c0_133], %7 {strides = array<i32>} : memref<6x18x8xf32, #tpu.memory_space<vmem>>, vector<1x16x8xf32>,
    } else {
    }
    %c3_i32 = arith.constant 3 : i32
    %14 = arith.cmpi slt, %arg2, %c3_i32 : i32
    %15 = arith.extui %14 : i1 to i32
    %c0_i32_15 = arith.constant 0 : i32
    %16 = arith.cmpi ne, %15, %c0_i32_15 : i32
    scf.if %16 {
      %c0_131 = arith.constant 0 : index
      %c0_132 = arith.constant 0 : index
      %c0_133 = arith.constant 0 : index
      %c0_134 = arith.constant 0 : index
      %160 = vector.load %arg5[%c0_131, %c0_132, %c0_133, %c0_134] : memref<1x1x16x8xf32, #tpu.memory_space<vmem>>, vector<1x1x16x8xf32>
      %161 = vector.shape_cast %160 : vector<1x1x16x8xf32> to vector<1x16x8xf32>
      %c5_135 = arith.constant 5 : index
      %c1_136 = arith.constant 1 : index
      %c0_137 = arith.constant 0 : index
      %162 = vector.load %arg13[%c5_135, %c1_136, %c0_137] : memref<6x18x8xf32, #tpu.memory_space<vmem>>, vector<1x16x8xf32>
      tpu.vector_store %arg13[%c5_135, %c1_136, %c0_137], %161 {strides = array<i32>} : memref<6x18x8xf32, #tpu.memory_space<vmem>>, vector<1x16x8xf32>,
    } else {
    }
    %c3_i32_16 = arith.constant 3 : i32
    %17 = arith.cmpi eq, %arg2, %c3_i32_16 : i32
    %18 = arith.extui %17 : i1 to i32
    %c0_i32_17 = arith.constant 0 : i32
    %19 = arith.cmpi ne, %18, %c0_i32_17 : i32
    scf.if %19 {
      %c5_131 = arith.constant 5 : index
      %c1_132 = arith.constant 1 : index
      %c0_133 = arith.constant 0 : index
      %160 = vector.load %arg13[%c5_131, %c1_132, %c0_133] : memref<6x18x8xf32, #tpu.memory_space<vmem>>, vector<1x16x8xf32>
      tpu.vector_store %arg13[%c5_131, %c1_132, %c0_133], %7 {strides = array<i32>} : memref<6x18x8xf32, #tpu.memory_space<vmem>>, vector<1x16x8xf32>,
    } else {
    }
    %c0_18 = arith.constant 0 : index
    %c0_19 = arith.constant 0 : index
    %c0_20 = arith.constant 0 : index
    %20 = vector.load %arg13[%c0_18, %c0_19, %c0_20] : memref<6x18x8xf32, #tpu.memory_space<vmem>>, vector<6x16x8xf32>
    %21 = vector.extract_strided_slice %20 {offsets = [0, 0, 0], sizes = [4, 16, 8], strides = [1, 1, 1]} : vector<6x16x8xf32> to vector<4x16x8xf32>
    %22 = vector.shape_cast %21 : vector<4x16x8xf32> to vector<64x8xf32>
    %c0_21 = arith.constant 0 : index
    %c0_22 = arith.constant 0 : index
    %c0_23 = arith.constant 0 : index
    %23 = vector.load %arg9[%c0_21, %c0_22, %c0_23] : memref<9x8x4xf32, #tpu.memory_space<vmem>>, vector<1x8x4xf32>
    %24 = vector.shape_cast %23 : vector<1x8x4xf32> to vector<8x4xf32>
    %cst_24 = arith.constant dense<0.000000e+00> : vector<64x4xf32>
    %25 = tpu.matmul %22, %24, %cst_24 {dimension_numbers = #tpu.dot_dimension_numbers<[1], [0], [0], [1], [0, 0, 1, 1], [], []>} : vector<64x8xf32>, vector<8x4xf32>, vector<64x4xf32> -> vector<64x4xf32>
    %26 = arith.addf %0, %25 : vector<64x4xf32>
    %27 = vector.extract_strided_slice %20 {offsets = [1, 0, 0], sizes = [4, 16, 8], strides = [1, 1, 1]} : vector<6x16x8xf32> to vector<4x16x8xf32>
    %28 = vector.shape_cast %27 : vector<4x16x8xf32> to vector<64x8xf32>
    %c3 = arith.constant 3 : index
    %c0_25 = arith.constant 0 : index
    %c0_26 = arith.constant 0 : index
    %29 = vector.load %arg9[%c3, %c0_25, %c0_26] : memref<9x8x4xf32, #tpu.memory_space<vmem>>, vector<1x8x4xf32>
    %30 = vector.shape_cast %29 : vector<1x8x4xf32> to vector<8x4xf32>
    %cst_27 = arith.constant dense<0.000000e+00> : vector<64x4xf32>
    %31 = tpu.matmul %28, %30, %cst_27 {dimension_numbers = #tpu.dot_dimension_numbers<[1], [0], [0], [1], [0, 0, 1, 1], [], []>} : vector<64x8xf32>, vector<8x4xf32>, vector<64x4xf32> -> vector<64x4xf32>
    %32 = arith.addf %26, %31 : vector<64x4xf32>
    %33 = vector.extract_strided_slice %20 {offsets = [2, 0, 0], sizes = [4, 16, 8], strides = [1, 1, 1]} : vector<6x16x8xf32> to vector<4x16x8xf32>
    %34 = vector.shape_cast %33 : vector<4x16x8xf32> to vector<64x8xf32>
    %c6 = arith.constant 6 : index
    %c0_28 = arith.constant 0 : index
    %c0_29 = arith.constant 0 : index
    %35 = vector.load %arg9[%c6, %c0_28, %c0_29] : memref<9x8x4xf32, #tpu.memory_space<vmem>>, vector<1x8x4xf32>
    %36 = vector.shape_cast %35 : vector<1x8x4xf32> to vector<8x4xf32>
    %cst_30 = arith.constant dense<0.000000e+00> : vector<64x4xf32>
    %37 = tpu.matmul %34, %36, %cst_30 {dimension_numbers = #tpu.dot_dimension_numbers<[1], [0], [0], [1], [0, 0, 1, 1], [], []>} : vector<64x8xf32>, vector<8x4xf32>, vector<64x4xf32> -> vector<64x4xf32>
    %38 = arith.addf %32, %37 : vector<64x4xf32>
    %c0_31 = arith.constant 0 : index
    %c1_32 = arith.constant 1 : index
    %c0_33 = arith.constant 0 : index
    %39 = vector.load %arg13[%c0_31, %c1_32, %c0_33] : memref<6x18x8xf32, #tpu.memory_space<vmem>>, vector<6x16x8xf32>
    %40 = vector.extract_strided_slice %39 {offsets = [0, 0, 0], sizes = [4, 16, 8], strides = [1, 1, 1]} : vector<6x16x8xf32> to vector<4x16x8xf32>
    %41 = vector.shape_cast %40 : vector<4x16x8xf32> to vector<64x8xf32>
    %c1_34 = arith.constant 1 : index
    %c0_35 = arith.constant 0 : index
    %c0_36 = arith.constant 0 : index
    %42 = vector.load %arg9[%c1_34, %c0_35, %c0_36] : memref<9x8x4xf32, #tpu.memory_space<vmem>>, vector<1x8x4xf32>
    %43 = vector.shape_cast %42 : vector<1x8x4xf32> to vector<8x4xf32>
    %cst_37 = arith.constant dense<0.000000e+00> : vector<64x4xf32>
    %44 = tpu.matmul %41, %43, %cst_37 {dimension_numbers = #tpu.dot_dimension_numbers<[1], [0], [0], [1], [0, 0, 1, 1], [], []>} : vector<64x8xf32>, vector<8x4xf32>, vector<64x4xf32> -> vector<64x4xf32>
    %45 = arith.addf %38, %44 : vector<64x4xf32>
    %46 = vector.extract_strided_slice %39 {offsets = [1, 0, 0], sizes = [4, 16, 8], strides = [1, 1, 1]} : vector<6x16x8xf32> to vector<4x16x8xf32>
    %47 = vector.shape_cast %46 : vector<4x16x8xf32> to vector<64x8xf32>
    %c4 = arith.constant 4 : index
    %c0_38 = arith.constant 0 : index
    %c0_39 = arith.constant 0 : index
    %48 = vector.load %arg9[%c4, %c0_38, %c0_39] : memref<9x8x4xf32, #tpu.memory_space<vmem>>, vector<1x8x4xf32>
    %49 = vector.shape_cast %48 : vector<1x8x4xf32> to vector<8x4xf32>
    %cst_40 = arith.constant dense<0.000000e+00> : vector<64x4xf32>
    %50 = tpu.matmul %47, %49, %cst_40 {dimension_numbers = #tpu.dot_dimension_numbers<[1], [0], [0], [1], [0, 0, 1, 1], [], []>} : vector<64x8xf32>, vector<8x4xf32>, vector<64x4xf32> -> vector<64x4xf32>
    %51 = arith.addf %45, %50 : vector<64x4xf32>
    %52 = vector.extract_strided_slice %39 {offsets = [2, 0, 0], sizes = [4, 16, 8], strides = [1, 1, 1]} : vector<6x16x8xf32> to vector<4x16x8xf32>
    %53 = vector.shape_cast %52 : vector<4x16x8xf32> to vector<64x8xf32>
    %c7 = arith.constant 7 : index
    %c0_41 = arith.constant 0 : index
    %c0_42 = arith.constant 0 : index
    %54 = vector.load %arg9[%c7, %c0_41, %c0_42] : memref<9x8x4xf32, #tpu.memory_space<vmem>>, vector<1x8x4xf32>
    %55 = vector.shape_cast %54 : vector<1x8x4xf32> to vector<8x4xf32>
    %cst_43 = arith.constant dense<0.000000e+00> : vector<64x4xf32>
    %56 = tpu.matmul %53, %55, %cst_43 {dimension_numbers = #tpu.dot_dimension_numbers<[1], [0], [0], [1], [0, 0, 1, 1], [], []>} : vector<64x8xf32>, vector<8x4xf32>, vector<64x4xf32> -> vector<64x4xf32>
    %57 = arith.addf %51, %56 : vector<64x4xf32>
    %c0_44 = arith.constant 0 : index
    %c2 = arith.constant 2 : index
    %c0_45 = arith.constant 0 : index
    %58 = vector.load %arg13[%c0_44, %c2, %c0_45] : memref<6x18x8xf32, #tpu.memory_space<vmem>>, vector<6x16x8xf32>
    %59 = vector.extract_strided_slice %58 {offsets = [0, 0, 0], sizes = [4, 16, 8], strides = [1, 1, 1]} : vector<6x16x8xf32> to vector<4x16x8xf32>
    %60 = vector.shape_cast %59 : vector<4x16x8xf32> to vector<64x8xf32>
    %c2_46 = arith.constant 2 : index
    %c0_47 = arith.constant 0 : index
    %c0_48 = arith.constant 0 : index
    %61 = vector.load %arg9[%c2_46, %c0_47, %c0_48] : memref<9x8x4xf32, #tpu.memory_space<vmem>>, vector<1x8x4xf32>
    %62 = vector.shape_cast %61 : vector<1x8x4xf32> to vector<8x4xf32>
    %cst_49 = arith.constant dense<0.000000e+00> : vector<64x4xf32>
    %63 = tpu.matmul %60, %62, %cst_49 {dimension_numbers = #tpu.dot_dimension_numbers<[1], [0], [0], [1], [0, 0, 1, 1], [], []>} : vector<64x8xf32>, vector<8x4xf32>, vector<64x4xf32> -> vector<64x4xf32>
    %64 = arith.addf %57, %63 : vector<64x4xf32>
    %65 = vector.extract_strided_slice %58 {offsets = [1, 0, 0], sizes = [4, 16, 8], strides = [1, 1, 1]} : vector<6x16x8xf32> to vector<4x16x8xf32>
    %66 = vector.shape_cast %65 : vector<4x16x8xf32> to vector<64x8xf32>
    %c5 = arith.constant 5 : index
    %c0_50 = arith.constant 0 : index
    %c0_51 = arith.constant 0 : index
    %67 = vector.load %arg9[%c5, %c0_50, %c0_51] : memref<9x8x4xf32, #tpu.memory_space<vmem>>, vector<1x8x4xf32>
    %68 = vector.shape_cast %67 : vector<1x8x4xf32> to vector<8x4xf32>
    %cst_52 = arith.constant dense<0.000000e+00> : vector<64x4xf32>
    %69 = tpu.matmul %66, %68, %cst_52 {dimension_numbers = #tpu.dot_dimension_numbers<[1], [0], [0], [1], [0, 0, 1, 1], [], []>} : vector<64x8xf32>, vector<8x4xf32>, vector<64x4xf32> -> vector<64x4xf32>
    %70 = arith.addf %64, %69 : vector<64x4xf32>
    %71 = vector.extract_strided_slice %58 {offsets = [2, 0, 0], sizes = [4, 16, 8], strides = [1, 1, 1]} : vector<6x16x8xf32> to vector<4x16x8xf32>
    %72 = vector.shape_cast %71 : vector<4x16x8xf32> to vector<64x8xf32>
    %c8 = arith.constant 8 : index
    %c0_53 = arith.constant 0 : index
    %c0_54 = arith.constant 0 : index
    %73 = vector.load %arg9[%c8, %c0_53, %c0_54] : memref<9x8x4xf32, #tpu.memory_space<vmem>>, vector<1x8x4xf32>
    %74 = vector.shape_cast %73 : vector<1x8x4xf32> to vector<8x4xf32>
    %cst_55 = arith.constant dense<0.000000e+00> : vector<64x4xf32>
    %75 = tpu.matmul %72, %74, %cst_55 {dimension_numbers = #tpu.dot_dimension_numbers<[1], [0], [0], [1], [0, 0, 1, 1], [], []>} : vector<64x8xf32>, vector<8x4xf32>, vector<64x4xf32> -> vector<64x4xf32>
    %76 = arith.addf %70, %75 : vector<64x4xf32>
    %cst_56 = arith.constant 0.000000e+00 : f32
    %77 = vector.broadcast %cst_56 : f32 to vector<6x1x8xf32>
    %c0_57 = arith.constant 0 : index
    %c0_58 = arith.constant 0 : index
    %c0_59 = arith.constant 0 : index
    %78 = vector.load %arg14[%c0_57, %c0_58, %c0_59] : memref<6x18x8xf32, #tpu.memory_space<vmem>>, vector<6x1x8xf32>
    tpu.vector_store %arg14[%c0_57, %c0_58, %c0_59], %77 {strides = array<i32>} : memref<6x18x8xf32, #tpu.memory_space<vmem>>, vector<6x1x8xf32>,
    %c0_60 = arith.constant 0 : index
    %c17_61 = arith.constant 17 : index
    %c0_62 = arith.constant 0 : index
    %79 = vector.load %arg14[%c0_60, %c17_61, %c0_62] : memref<6x18x8xf32, #tpu.memory_space<vmem>>, vector<6x1x8xf32>
    tpu.vector_store %arg14[%c0_60, %c17_61, %c0_62], %77 {strides = array<i32>} : memref<6x18x8xf32, #tpu.memory_space<vmem>>, vector<6x1x8xf32>,
    %c0_63 = arith.constant 0 : index
    %c0_64 = arith.constant 0 : index
    %c0_65 = arith.constant 0 : index
    %c0_66 = arith.constant 0 : index
    %80 = vector.load %arg6[%c0_63, %c0_64, %c0_65, %c0_66] : memref<1x4x16x8xf32, #tpu.memory_space<vmem>>, vector<1x4x16x8xf32>
    %81 = vector.shape_cast %80 : vector<1x4x16x8xf32> to vector<4x16x8xf32>
    %c1_67 = arith.constant 1 : index
    %c1_68 = arith.constant 1 : index
    %c0_69 = arith.constant 0 : index
    %82 = vector.load %arg14[%c1_67, %c1_68, %c0_69] : memref<6x18x8xf32, #tpu.memory_space<vmem>>, vector<4x16x8xf32>
    tpu.vector_store %arg14[%c1_67, %c1_68, %c0_69], %81 {strides = array<i32>} : memref<6x18x8xf32, #tpu.memory_space<vmem>>, vector<4x16x8xf32>,
    %cst_70 = arith.constant 0.000000e+00 : f32
    %83 = vector.broadcast %cst_70 : f32 to vector<1x16x8xf32>
    %c0_i32_71 = arith.constant 0 : i32
    %84 = arith.cmpi sgt, %arg2, %c0_i32_71 : i32
    %85 = arith.extui %84 : i1 to i32
    %c0_i32_72 = arith.constant 0 : i32
    %86 = arith.cmpi ne, %85, %c0_i32_72 : i32
    scf.if %86 {
      %c0_131 = arith.constant 0 : index
      %c0_132 = arith.constant 0 : index
      %c0_133 = arith.constant 0 : index
      %c0_134 = arith.constant 0 : index
      %160 = vector.load %arg7[%c0_131, %c0_132, %c0_133, %c0_134] : memref<1x1x16x8xf32, #tpu.memory_space<vmem>>, vector<1x1x16x8xf32>
      %161 = vector.shape_cast %160 : vector<1x1x16x8xf32> to vector<1x16x8xf32>
      %c0_135 = arith.constant 0 : index
      %c1_136 = arith.constant 1 : index
      %c0_137 = arith.constant 0 : index
      %162 = vector.load %arg14[%c0_135, %c1_136, %c0_137] : memref<6x18x8xf32, #tpu.memory_space<vmem>>, vector<1x16x8xf32>
      tpu.vector_store %arg14[%c0_135, %c1_136, %c0_137], %161 {strides = array<i32>} : memref<6x18x8xf32, #tpu.memory_space<vmem>>, vector<1x16x8xf32>,
    } else {
    }
    %c0_i32_73 = arith.constant 0 : i32
    %87 = arith.cmpi eq, %arg2, %c0_i32_73 : i32
    %88 = arith.extui %87 : i1 to i32
    %c0_i32_74 = arith.constant 0 : i32
    %89 = arith.cmpi ne, %88, %c0_i32_74 : i32
    scf.if %89 {
      %c0_131 = arith.constant 0 : index
      %c1_132 = arith.constant 1 : index
      %c0_133 = arith.constant 0 : index
      %160 = vector.load %arg14[%c0_131, %c1_132, %c0_133] : memref<6x18x8xf32, #tpu.memory_space<vmem>>, vector<1x16x8xf32>
      tpu.vector_store %arg14[%c0_131, %c1_132, %c0_133], %83 {strides = array<i32>} : memref<6x18x8xf32, #tpu.memory_space<vmem>>, vector<1x16x8xf32>,
    } else {
    }
    %c3_i32_75 = arith.constant 3 : i32
    %90 = arith.cmpi slt, %arg2, %c3_i32_75 : i32
    %91 = arith.extui %90 : i1 to i32
    %c0_i32_76 = arith.constant 0 : i32
    %92 = arith.cmpi ne, %91, %c0_i32_76 : i32
    scf.if %92 {
      %c0_131 = arith.constant 0 : index
      %c0_132 = arith.constant 0 : index
      %c0_133 = arith.constant 0 : index
      %c0_134 = arith.constant 0 : index
      %160 = vector.load %arg8[%c0_131, %c0_132, %c0_133, %c0_134] : memref<1x1x16x8xf32, #tpu.memory_space<vmem>>, vector<1x1x16x8xf32>
      %161 = vector.shape_cast %160 : vector<1x1x16x8xf32> to vector<1x16x8xf32>
      %c5_135 = arith.constant 5 : index
      %c1_136 = arith.constant 1 : index
      %c0_137 = arith.constant 0 : index
      %162 = vector.load %arg14[%c5_135, %c1_136, %c0_137] : memref<6x18x8xf32, #tpu.memory_space<vmem>>, vector<1x16x8xf32>
      tpu.vector_store %arg14[%c5_135, %c1_136, %c0_137], %161 {strides = array<i32>} : memref<6x18x8xf32, #tpu.memory_space<vmem>>, vector<1x16x8xf32>,
    } else {
    }
    %c3_i32_77 = arith.constant 3 : i32
    %93 = arith.cmpi eq, %arg2, %c3_i32_77 : i32
    %94 = arith.extui %93 : i1 to i32
    %c0_i32_78 = arith.constant 0 : i32
    %95 = arith.cmpi ne, %94, %c0_i32_78 : i32
    scf.if %95 {
      %c5_131 = arith.constant 5 : index
      %c1_132 = arith.constant 1 : index
      %c0_133 = arith.constant 0 : index
      %160 = vector.load %arg14[%c5_131, %c1_132, %c0_133] : memref<6x18x8xf32, #tpu.memory_space<vmem>>, vector<1x16x8xf32>
      tpu.vector_store %arg14[%c5_131, %c1_132, %c0_133], %83 {strides = array<i32>} : memref<6x18x8xf32, #tpu.memory_space<vmem>>, vector<1x16x8xf32>,
    } else {
    }
    %c0_79 = arith.constant 0 : index
    %c0_80 = arith.constant 0 : index
    %c0_81 = arith.constant 0 : index
    %96 = vector.load %arg14[%c0_79, %c0_80, %c0_81] : memref<6x18x8xf32, #tpu.memory_space<vmem>>, vector<6x16x8xf32>
    %97 = vector.extract_strided_slice %96 {offsets = [0, 0, 0], sizes = [4, 16, 8], strides = [1, 1, 1]} : vector<6x16x8xf32> to vector<4x16x8xf32>
    %98 = vector.shape_cast %97 : vector<4x16x8xf32> to vector<64x8xf32>
    %c0_82 = arith.constant 0 : index
    %c0_83 = arith.constant 0 : index
    %c0_84 = arith.constant 0 : index
    %99 = vector.load %arg10[%c0_82, %c0_83, %c0_84] : memref<9x8x4xf32, #tpu.memory_space<vmem>>, vector<1x8x4xf32>
    %100 = vector.shape_cast %99 : vector<1x8x4xf32> to vector<8x4xf32>
    %cst_85 = arith.constant dense<0.000000e+00> : vector<64x4xf32>
    %101 = tpu.matmul %98, %100, %cst_85 {dimension_numbers = #tpu.dot_dimension_numbers<[1], [0], [0], [1], [0, 0, 1, 1], [], []>} : vector<64x8xf32>, vector<8x4xf32>, vector<64x4xf32> -> vector<64x4xf32>
    %102 = arith.addf %76, %101 : vector<64x4xf32>
    %103 = vector.extract_strided_slice %96 {offsets = [1, 0, 0], sizes = [4, 16, 8], strides = [1, 1, 1]} : vector<6x16x8xf32> to vector<4x16x8xf32>
    %104 = vector.shape_cast %103 : vector<4x16x8xf32> to vector<64x8xf32>
    %c3_86 = arith.constant 3 : index
    %c0_87 = arith.constant 0 : index
    %c0_88 = arith.constant 0 : index
    %105 = vector.load %arg10[%c3_86, %c0_87, %c0_88] : memref<9x8x4xf32, #tpu.memory_space<vmem>>, vector<1x8x4xf32>
    %106 = vector.shape_cast %105 : vector<1x8x4xf32> to vector<8x4xf32>
    %cst_89 = arith.constant dense<0.000000e+00> : vector<64x4xf32>
    %107 = tpu.matmul %104, %106, %cst_89 {dimension_numbers = #tpu.dot_dimension_numbers<[1], [0], [0], [1], [0, 0, 1, 1], [], []>} : vector<64x8xf32>, vector<8x4xf32>, vector<64x4xf32> -> vector<64x4xf32>
    %108 = arith.addf %102, %107 : vector<64x4xf32>
    %109 = vector.extract_strided_slice %96 {offsets = [2, 0, 0], sizes = [4, 16, 8], strides = [1, 1, 1]} : vector<6x16x8xf32> to vector<4x16x8xf32>
    %110 = vector.shape_cast %109 : vector<4x16x8xf32> to vector<64x8xf32>
    %c6_90 = arith.constant 6 : index
    %c0_91 = arith.constant 0 : index
    %c0_92 = arith.constant 0 : index
    %111 = vector.load %arg10[%c6_90, %c0_91, %c0_92] : memref<9x8x4xf32, #tpu.memory_space<vmem>>, vector<1x8x4xf32>
    %112 = vector.shape_cast %111 : vector<1x8x4xf32> to vector<8x4xf32>
    %cst_93 = arith.constant dense<0.000000e+00> : vector<64x4xf32>
    %113 = tpu.matmul %110, %112, %cst_93 {dimension_numbers = #tpu.dot_dimension_numbers<[1], [0], [0], [1], [0, 0, 1, 1], [], []>} : vector<64x8xf32>, vector<8x4xf32>, vector<64x4xf32> -> vector<64x4xf32>
    %114 = arith.addf %108, %113 : vector<64x4xf32>
    %c0_94 = arith.constant 0 : index
    %c1_95 = arith.constant 1 : index
    %c0_96 = arith.constant 0 : index
    %115 = vector.load %arg14[%c0_94, %c1_95, %c0_96] : memref<6x18x8xf32, #tpu.memory_space<vmem>>, vector<6x16x8xf32>
    %116 = vector.extract_strided_slice %115 {offsets = [0, 0, 0], sizes = [4, 16, 8], strides = [1, 1, 1]} : vector<6x16x8xf32> to vector<4x16x8xf32>
    %117 = vector.shape_cast %116 : vector<4x16x8xf32> to vector<64x8xf32>
    %c1_97 = arith.constant 1 : index
    %c0_98 = arith.constant 0 : index
    %c0_99 = arith.constant 0 : index
    %118 = vector.load %arg10[%c1_97, %c0_98, %c0_99] : memref<9x8x4xf32, #tpu.memory_space<vmem>>, vector<1x8x4xf32>
    %119 = vector.shape_cast %118 : vector<1x8x4xf32> to vector<8x4xf32>
    %cst_100 = arith.constant dense<0.000000e+00> : vector<64x4xf32>
    %120 = tpu.matmul %117, %119, %cst_100 {dimension_numbers = #tpu.dot_dimension_numbers<[1], [0], [0], [1], [0, 0, 1, 1], [], []>} : vector<64x8xf32>, vector<8x4xf32>, vector<64x4xf32> -> vector<64x4xf32>
    %121 = arith.addf %114, %120 : vector<64x4xf32>
    %122 = vector.extract_strided_slice %115 {offsets = [1, 0, 0], sizes = [4, 16, 8], strides = [1, 1, 1]} : vector<6x16x8xf32> to vector<4x16x8xf32>
    %123 = vector.shape_cast %122 : vector<4x16x8xf32> to vector<64x8xf32>
    %c4_101 = arith.constant 4 : index
    %c0_102 = arith.constant 0 : index
    %c0_103 = arith.constant 0 : index
    %124 = vector.load %arg10[%c4_101, %c0_102, %c0_103] : memref<9x8x4xf32, #tpu.memory_space<vmem>>, vector<1x8x4xf32>
    %125 = vector.shape_cast %124 : vector<1x8x4xf32> to vector<8x4xf32>
    %cst_104 = arith.constant dense<0.000000e+00> : vector<64x4xf32>
    %126 = tpu.matmul %123, %125, %cst_104 {dimension_numbers = #tpu.dot_dimension_numbers<[1], [0], [0], [1], [0, 0, 1, 1], [], []>} : vector<64x8xf32>, vector<8x4xf32>, vector<64x4xf32> -> vector<64x4xf32>
    %127 = arith.addf %121, %126 : vector<64x4xf32>
    %128 = vector.extract_strided_slice %115 {offsets = [2, 0, 0], sizes = [4, 16, 8], strides = [1, 1, 1]} : vector<6x16x8xf32> to vector<4x16x8xf32>
    %129 = vector.shape_cast %128 : vector<4x16x8xf32> to vector<64x8xf32>
    %c7_105 = arith.constant 7 : index
    %c0_106 = arith.constant 0 : index
    %c0_107 = arith.constant 0 : index
    %130 = vector.load %arg10[%c7_105, %c0_106, %c0_107] : memref<9x8x4xf32, #tpu.memory_space<vmem>>, vector<1x8x4xf32>
    %131 = vector.shape_cast %130 : vector<1x8x4xf32> to vector<8x4xf32>
    %cst_108 = arith.constant dense<0.000000e+00> : vector<64x4xf32>
    %132 = tpu.matmul %129, %131, %cst_108 {dimension_numbers = #tpu.dot_dimension_numbers<[1], [0], [0], [1], [0, 0, 1, 1], [], []>} : vector<64x8xf32>, vector<8x4xf32>, vector<64x4xf32> -> vector<64x4xf32>
    %133 = arith.addf %127, %132 : vector<64x4xf32>
    %c0_109 = arith.constant 0 : index
    %c2_110 = arith.constant 2 : index
    %c0_111 = arith.constant 0 : index
    %134 = vector.load %arg14[%c0_109, %c2_110, %c0_111] : memref<6x18x8xf32, #tpu.memory_space<vmem>>, vector<6x16x8xf32>
    %135 = vector.extract_strided_slice %134 {offsets = [0, 0, 0], sizes = [4, 16, 8], strides = [1, 1, 1]} : vector<6x16x8xf32> to vector<4x16x8xf32>
    %136 = vector.shape_cast %135 : vector<4x16x8xf32> to vector<64x8xf32>
    %c2_112 = arith.constant 2 : index
    %c0_113 = arith.constant 0 : index
    %c0_114 = arith.constant 0 : index
    %137 = vector.load %arg10[%c2_112, %c0_113, %c0_114] : memref<9x8x4xf32, #tpu.memory_space<vmem>>, vector<1x8x4xf32>
    %138 = vector.shape_cast %137 : vector<1x8x4xf32> to vector<8x4xf32>
    %cst_115 = arith.constant dense<0.000000e+00> : vector<64x4xf32>
    %139 = tpu.matmul %136, %138, %cst_115 {dimension_numbers = #tpu.dot_dimension_numbers<[1], [0], [0], [1], [0, 0, 1, 1], [], []>} : vector<64x8xf32>, vector<8x4xf32>, vector<64x4xf32> -> vector<64x4xf32>
    %140 = arith.addf %133, %139 : vector<64x4xf32>
    %141 = vector.extract_strided_slice %134 {offsets = [1, 0, 0], sizes = [4, 16, 8], strides = [1, 1, 1]} : vector<6x16x8xf32> to vector<4x16x8xf32>
    %142 = vector.shape_cast %141 : vector<4x16x8xf32> to vector<64x8xf32>
    %c5_116 = arith.constant 5 : index
    %c0_117 = arith.constant 0 : index
    %c0_118 = arith.constant 0 : index
    %143 = vector.load %arg10[%c5_116, %c0_117, %c0_118] : memref<9x8x4xf32, #tpu.memory_space<vmem>>, vector<1x8x4xf32>
    %144 = vector.shape_cast %143 : vector<1x8x4xf32> to vector<8x4xf32>
    %cst_119 = arith.constant dense<0.000000e+00> : vector<64x4xf32>
    %145 = tpu.matmul %142, %144, %cst_119 {dimension_numbers = #tpu.dot_dimension_numbers<[1], [0], [0], [1], [0, 0, 1, 1], [], []>} : vector<64x8xf32>, vector<8x4xf32>, vector<64x4xf32> -> vector<64x4xf32>
    %146 = arith.addf %140, %145 : vector<64x4xf32>
    %147 = vector.extract_strided_slice %134 {offsets = [2, 0, 0], sizes = [4, 16, 8], strides = [1, 1, 1]} : vector<6x16x8xf32> to vector<4x16x8xf32>
    %148 = vector.shape_cast %147 : vector<4x16x8xf32> to vector<64x8xf32>
    %c8_120 = arith.constant 8 : index
    %c0_121 = arith.constant 0 : index
    %c0_122 = arith.constant 0 : index
    %149 = vector.load %arg10[%c8_120, %c0_121, %c0_122] : memref<9x8x4xf32, #tpu.memory_space<vmem>>, vector<1x8x4xf32>
    %150 = vector.shape_cast %149 : vector<1x8x4xf32> to vector<8x4xf32>
    %cst_123 = arith.constant dense<0.000000e+00> : vector<64x4xf32>
    %151 = tpu.matmul %148, %150, %cst_123 {dimension_numbers = #tpu.dot_dimension_numbers<[1], [0], [0], [1], [0, 0, 1, 1], [], []>} : vector<64x8xf32>, vector<8x4xf32>, vector<64x4xf32> -> vector<64x4xf32>
    %152 = arith.addf %146, %151 : vector<64x4xf32>
    %c0_124 = arith.constant 0 : index
    %c0_125 = arith.constant 0 : index
    %153 = vector.load %arg11[%c0_124, %c0_125] : memref<1x4xf32, #tpu.memory_space<vmem>>, vector<1x4xf32>
    %154 = vector.broadcast %153 : vector<1x4xf32> to vector<64x4xf32>
    %155 = arith.addf %152, %154 : vector<64x4xf32>
    %cst_126 = arith.constant 0.000000e+00 : f32
    %156 = vector.broadcast %cst_126 : f32 to vector<64x4xf32>
    %157 = arith.maximumf %155, %156 : vector<64x4xf32>
    %158 = vector.shape_cast %157 : vector<64x4xf32> to vector<1x4x16x4xf32>
    %c0_127 = arith.constant 0 : index
    %c0_128 = arith.constant 0 : index
    %c0_129 = arith.constant 0 : index
    %c0_130 = arith.constant 0 : index
    %159 = vector.load %arg12[%c0_127, %c0_128, %c0_129, %c0_130] : memref<1x4x16x4xf32, #tpu.memory_space<vmem>>, vector<1x4x16x4xf32>
    tpu.vector_store %arg12[%c0_127, %c0_128, %c0_129, %c0_130], %158 {strides = array<i32>} : memref<1x4x16x4xf32, #tpu.memory_space<vmem>>, vector<1x4x16x4xf32>,
    return
  }
  func.func @transform_0(%arg0: i32, %arg1: i32, %arg2: i32) -> (i32, i32, i32, i32) {
    %c0_i32 = arith.constant 0 : i32
    %c0_i32_0 = arith.constant 0 : i32
    %c0_i32_1 = arith.constant 0 : i32
    return %arg0, %arg2, %c0_i32, %c0_i32_0 : i32, i32, i32, i32
  }
  func.func @transform_1(%arg0: i32, %arg1: i32, %arg2: i32) -> (i32, i32, i32, i32) {
    %c4_i32 = arith.constant 4 : i32
    %0 = arith.muli %arg2, %c4_i32 : i32
    %c1_i32 = arith.constant 1 : i32
    %1 = arith.subi %0, %c1_i32 : i32
    %c0_i32 = arith.constant 0 : i32
    %2 = arith.maxsi %1, %c0_i32 : i32
    %c0_i32_0 = arith.constant 0 : i32
    %c0_i32_1 = arith.constant 0 : i32
    %c0_i32_2 = arith.constant 0 : i32
    return %arg0, %2, %c0_i32_0, %c0_i32_1 : i32, i32, i32, i32
  }
  func.func @transform_2(%arg0: i32, %arg1: i32, %arg2: i32) -> (i32, i32, i32, i32) {
    %c4_i32 = arith.constant 4 : i32
    %0 = arith.muli %arg2, %c4_i32 : i32
    %c4_i32_0 = arith.constant 4 : i32
    %1 = arith.addi %0, %c4_i32_0 : i32
    %c15_i32 = arith.constant 15 : i32
    %2 = arith.minsi %1, %c15_i32 : i32
    %c0_i32 = arith.constant 0 : i32
    %c0_i32_1 = arith.constant 0 : i32
    %c0_i32_2 = arith.constant 0 : i32
    return %arg0, %2, %c0_i32, %c0_i32_1 : i32, i32, i32, i32
  }
  func.func @transform_3(%arg0: i32, %arg1: i32, %arg2: i32) -> (i32, i32, i32, i32) {
    %c0_i32 = arith.constant 0 : i32
    %c0_i32_0 = arith.constant 0 : i32
    %c0_i32_1 = arith.constant 0 : i32
    return %arg0, %arg2, %c0_i32, %c0_i32_0 : i32, i32, i32, i32
  }
  func.func @transform_4(%arg0: i32, %arg1: i32, %arg2: i32) -> (i32, i32, i32, i32) {
    %c4_i32 = arith.constant 4 : i32
    %0 = arith.muli %arg2, %c4_i32 : i32
    %c1_i32 = arith.constant 1 : i32
    %1 = arith.subi %0, %c1_i32 : i32
    %c0_i32 = arith.constant 0 : i32
    %2 = arith.maxsi %1, %c0_i32 : i32
    %c0_i32_0 = arith.constant 0 : i32
    %c0_i32_1 = arith.constant 0 : i32
    %c0_i32_2 = arith.constant 0 : i32
    return %arg0, %2, %c0_i32_0, %c0_i32_1 : i32, i32, i32, i32
  }
  func.func @transform_5(%arg0: i32, %arg1: i32, %arg2: i32) -> (i32, i32, i32, i32) {
    %c4_i32 = arith.constant 4 : i32
    %0 = arith.muli %arg2, %c4_i32 : i32
    %c4_i32_0 = arith.constant 4 : i32
    %1 = arith.addi %0, %c4_i32_0 : i32
    %c15_i32 = arith.constant 15 : i32
    %2 = arith.minsi %1, %c15_i32 : i32
    %c0_i32 = arith.constant 0 : i32
    %c0_i32_1 = arith.constant 0 : i32
    %c0_i32_2 = arith.constant 0 : i32
    return %arg0, %2, %c0_i32, %c0_i32_1 : i32, i32, i32, i32
  }
  func.func @transform_6(%arg0: i32, %arg1: i32, %arg2: i32) -> (i32, i32, i32) {
    %c0_i32 = arith.constant 0 : i32
    %c0_i32_0 = arith.constant 0 : i32
    %c0_i32_1 = arith.constant 0 : i32
    return %c0_i32, %c0_i32_0, %arg1 : i32, i32, i32
  }
  func.func @transform_7(%arg0: i32, %arg1: i32, %arg2: i32) -> (i32, i32, i32) {
    %c0_i32 = arith.constant 0 : i32
    %c0_i32_0 = arith.constant 0 : i32
    %c0_i32_1 = arith.constant 0 : i32
    return %c0_i32, %c0_i32_0, %arg1 : i32, i32, i32
  }
  func.func @transform_8(%arg0: i32, %arg1: i32, %arg2: i32) -> (i32, i32) {
    %c0_i32 = arith.constant 0 : i32
    %c0_i32_0 = arith.constant 0 : i32
    return %c0_i32, %arg1 : i32, i32
  }
  func.func @transform_9(%arg0: i32, %arg1: i32, %arg2: i32) -> (i32, i32, i32, i32) {
    %c0_i32 = arith.constant 0 : i32
    %c0_i32_0 = arith.constant 0 : i32
    return %arg0, %arg2, %c0_i32, %arg1 : i32, i32, i32, i32
  }
}

module attributes {stable_mosaic.version = 11 : i64} {
  func.func @kernel(%arg0: i32, %arg1: i32, %arg2: i32, %arg3: memref<1x4x16x4xf32, #tpu.memory_space<vmem>>, %arg4: memref<1x1x16x4xf32, #tpu.memory_space<vmem>>, %arg5: memref<1x1x16x4xf32, #tpu.memory_space<vmem>>, %arg6: memref<9x4x4xf32, #tpu.memory_space<vmem>>, %arg7: memref<1x4xf32, #tpu.memory_space<vmem>>, %arg8: memref<1x4x16x4xf32, #tpu.memory_space<vmem>>, %arg9: memref<6x18x4xf32, #tpu.memory_space<vmem>>) attributes {dimension_semantics = [#tpu.dimension_semantics<parallel>, #tpu.dimension_semantics<parallel>, #tpu.dimension_semantics<parallel>], iteration_bounds = array<i64: 2, 1, 4>, scalar_prefetch = 0 : i64, scratch_operands = 1 : i64, tpu.core_type = #tpu.core_type<tc>, window_params = [{transform_indices = @transform_0, window_bounds = array<i64: 1, 4, 16, 4>}, {transform_indices = @transform_1, window_bounds = array<i64: 1, 1, 16, 4>}, {transform_indices = @transform_2, window_bounds = array<i64: 1, 1, 16, 4>}, {transform_indices = @transform_3, window_bounds = array<i64: 9, 4, 4>}, {transform_indices = @transform_4, window_bounds = array<i64: 1, 4>}, {transform_indices = @transform_5, window_bounds = array<i64: 1, 4, 16, 4>}]} {
    %cst = arith.constant 0.000000e+00 : f32
    %0 = vector.broadcast %cst : f32 to vector<64x4xf32>
    %cst_0 = arith.constant 0.000000e+00 : f32
    %1 = vector.broadcast %cst_0 : f32 to vector<6x1x4xf32>
    %c0 = arith.constant 0 : index
    %c0_1 = arith.constant 0 : index
    %c0_2 = arith.constant 0 : index
    %2 = vector.load %arg9[%c0, %c0_1, %c0_2] : memref<6x18x4xf32, #tpu.memory_space<vmem>>, vector<6x1x4xf32>
    tpu.vector_store %arg9[%c0, %c0_1, %c0_2], %1 {strides = array<i32>} : memref<6x18x4xf32, #tpu.memory_space<vmem>>, vector<6x1x4xf32>,
    %c0_3 = arith.constant 0 : index
    %c17 = arith.constant 17 : index
    %c0_4 = arith.constant 0 : index
    %3 = vector.load %arg9[%c0_3, %c17, %c0_4] : memref<6x18x4xf32, #tpu.memory_space<vmem>>, vector<6x1x4xf32>
    tpu.vector_store %arg9[%c0_3, %c17, %c0_4], %1 {strides = array<i32>} : memref<6x18x4xf32, #tpu.memory_space<vmem>>, vector<6x1x4xf32>,
    %c0_5 = arith.constant 0 : index
    %c0_6 = arith.constant 0 : index
    %c0_7 = arith.constant 0 : index
    %c0_8 = arith.constant 0 : index
    %4 = vector.load %arg3[%c0_5, %c0_6, %c0_7, %c0_8] : memref<1x4x16x4xf32, #tpu.memory_space<vmem>>, vector<1x4x16x4xf32>
    %5 = vector.shape_cast %4 : vector<1x4x16x4xf32> to vector<4x16x4xf32>
    %c1 = arith.constant 1 : index
    %c1_9 = arith.constant 1 : index
    %c0_10 = arith.constant 0 : index
    %6 = vector.load %arg9[%c1, %c1_9, %c0_10] : memref<6x18x4xf32, #tpu.memory_space<vmem>>, vector<4x16x4xf32>
    tpu.vector_store %arg9[%c1, %c1_9, %c0_10], %5 {strides = array<i32>} : memref<6x18x4xf32, #tpu.memory_space<vmem>>, vector<4x16x4xf32>,
    %cst_11 = arith.constant 0.000000e+00 : f32
    %7 = vector.broadcast %cst_11 : f32 to vector<1x16x4xf32>
    %c0_i32 = arith.constant 0 : i32
    %8 = arith.cmpi sgt, %arg2, %c0_i32 : i32
    %9 = arith.extui %8 : i1 to i32
    %c0_i32_12 = arith.constant 0 : i32
    %10 = arith.cmpi ne, %9, %c0_i32_12 : i32
    scf.if %10 {
      %c0_63 = arith.constant 0 : index
      %c0_64 = arith.constant 0 : index
      %c0_65 = arith.constant 0 : index
      %c0_66 = arith.constant 0 : index
      %84 = vector.load %arg4[%c0_63, %c0_64, %c0_65, %c0_66] : memref<1x1x16x4xf32, #tpu.memory_space<vmem>>, vector<1x1x16x4xf32>
      %85 = vector.shape_cast %84 : vector<1x1x16x4xf32> to vector<1x16x4xf32>
      %c0_67 = arith.constant 0 : index
      %c1_68 = arith.constant 1 : index
      %c0_69 = arith.constant 0 : index
      %86 = vector.load %arg9[%c0_67, %c1_68, %c0_69] : memref<6x18x4xf32, #tpu.memory_space<vmem>>, vector<1x16x4xf32>
      tpu.vector_store %arg9[%c0_67, %c1_68, %c0_69], %85 {strides = array<i32>} : memref<6x18x4xf32, #tpu.memory_space<vmem>>, vector<1x16x4xf32>,
    } else {
    }
    %c0_i32_13 = arith.constant 0 : i32
    %11 = arith.cmpi eq, %arg2, %c0_i32_13 : i32
    %12 = arith.extui %11 : i1 to i32
    %c0_i32_14 = arith.constant 0 : i32
    %13 = arith.cmpi ne, %12, %c0_i32_14 : i32
    scf.if %13 {
      %c0_63 = arith.constant 0 : index
      %c1_64 = arith.constant 1 : index
      %c0_65 = arith.constant 0 : index
      %84 = vector.load %arg9[%c0_63, %c1_64, %c0_65] : memref<6x18x4xf32, #tpu.memory_space<vmem>>, vector<1x16x4xf32>
      tpu.vector_store %arg9[%c0_63, %c1_64, %c0_65], %7 {strides = array<i32>} : memref<6x18x4xf32, #tpu.memory_space<vmem>>, vector<1x16x4xf32>,
    } else {
    }
    %c3_i32 = arith.constant 3 : i32
    %14 = arith.cmpi slt, %arg2, %c3_i32 : i32
    %15 = arith.extui %14 : i1 to i32
    %c0_i32_15 = arith.constant 0 : i32
    %16 = arith.cmpi ne, %15, %c0_i32_15 : i32
    scf.if %16 {
      %c0_63 = arith.constant 0 : index
      %c0_64 = arith.constant 0 : index
      %c0_65 = arith.constant 0 : index
      %c0_66 = arith.constant 0 : index
      %84 = vector.load %arg5[%c0_63, %c0_64, %c0_65, %c0_66] : memref<1x1x16x4xf32, #tpu.memory_space<vmem>>, vector<1x1x16x4xf32>
      %85 = vector.shape_cast %84 : vector<1x1x16x4xf32> to vector<1x16x4xf32>
      %c5_67 = arith.constant 5 : index
      %c1_68 = arith.constant 1 : index
      %c0_69 = arith.constant 0 : index
      %86 = vector.load %arg9[%c5_67, %c1_68, %c0_69] : memref<6x18x4xf32, #tpu.memory_space<vmem>>, vector<1x16x4xf32>
      tpu.vector_store %arg9[%c5_67, %c1_68, %c0_69], %85 {strides = array<i32>} : memref<6x18x4xf32, #tpu.memory_space<vmem>>, vector<1x16x4xf32>,
    } else {
    }
    %c3_i32_16 = arith.constant 3 : i32
    %17 = arith.cmpi eq, %arg2, %c3_i32_16 : i32
    %18 = arith.extui %17 : i1 to i32
    %c0_i32_17 = arith.constant 0 : i32
    %19 = arith.cmpi ne, %18, %c0_i32_17 : i32
    scf.if %19 {
      %c5_63 = arith.constant 5 : index
      %c1_64 = arith.constant 1 : index
      %c0_65 = arith.constant 0 : index
      %84 = vector.load %arg9[%c5_63, %c1_64, %c0_65] : memref<6x18x4xf32, #tpu.memory_space<vmem>>, vector<1x16x4xf32>
      tpu.vector_store %arg9[%c5_63, %c1_64, %c0_65], %7 {strides = array<i32>} : memref<6x18x4xf32, #tpu.memory_space<vmem>>, vector<1x16x4xf32>,
    } else {
    }
    %c0_18 = arith.constant 0 : index
    %c0_19 = arith.constant 0 : index
    %c0_20 = arith.constant 0 : index
    %20 = vector.load %arg9[%c0_18, %c0_19, %c0_20] : memref<6x18x4xf32, #tpu.memory_space<vmem>>, vector<6x16x4xf32>
    %21 = vector.extract_strided_slice %20 {offsets = [0, 0, 0], sizes = [4, 16, 4], strides = [1, 1, 1]} : vector<6x16x4xf32> to vector<4x16x4xf32>
    %22 = vector.shape_cast %21 : vector<4x16x4xf32> to vector<64x4xf32>
    %c0_21 = arith.constant 0 : index
    %c0_22 = arith.constant 0 : index
    %c0_23 = arith.constant 0 : index
    %23 = vector.load %arg6[%c0_21, %c0_22, %c0_23] : memref<9x4x4xf32, #tpu.memory_space<vmem>>, vector<1x4x4xf32>
    %24 = vector.shape_cast %23 : vector<1x4x4xf32> to vector<4x4xf32>
    %cst_24 = arith.constant dense<0.000000e+00> : vector<64x4xf32>
    %25 = tpu.matmul %22, %24, %cst_24 {dimension_numbers = #tpu.dot_dimension_numbers<[1], [0], [0], [1], [0, 0, 1, 1], [], []>} : vector<64x4xf32>, vector<4x4xf32>, vector<64x4xf32> -> vector<64x4xf32>
    %26 = arith.addf %0, %25 : vector<64x4xf32>
    %27 = vector.extract_strided_slice %20 {offsets = [1, 0, 0], sizes = [4, 16, 4], strides = [1, 1, 1]} : vector<6x16x4xf32> to vector<4x16x4xf32>
    %28 = vector.shape_cast %27 : vector<4x16x4xf32> to vector<64x4xf32>
    %c3 = arith.constant 3 : index
    %c0_25 = arith.constant 0 : index
    %c0_26 = arith.constant 0 : index
    %29 = vector.load %arg6[%c3, %c0_25, %c0_26] : memref<9x4x4xf32, #tpu.memory_space<vmem>>, vector<1x4x4xf32>
    %30 = vector.shape_cast %29 : vector<1x4x4xf32> to vector<4x4xf32>
    %cst_27 = arith.constant dense<0.000000e+00> : vector<64x4xf32>
    %31 = tpu.matmul %28, %30, %cst_27 {dimension_numbers = #tpu.dot_dimension_numbers<[1], [0], [0], [1], [0, 0, 1, 1], [], []>} : vector<64x4xf32>, vector<4x4xf32>, vector<64x4xf32> -> vector<64x4xf32>
    %32 = arith.addf %26, %31 : vector<64x4xf32>
    %33 = vector.extract_strided_slice %20 {offsets = [2, 0, 0], sizes = [4, 16, 4], strides = [1, 1, 1]} : vector<6x16x4xf32> to vector<4x16x4xf32>
    %34 = vector.shape_cast %33 : vector<4x16x4xf32> to vector<64x4xf32>
    %c6 = arith.constant 6 : index
    %c0_28 = arith.constant 0 : index
    %c0_29 = arith.constant 0 : index
    %35 = vector.load %arg6[%c6, %c0_28, %c0_29] : memref<9x4x4xf32, #tpu.memory_space<vmem>>, vector<1x4x4xf32>
    %36 = vector.shape_cast %35 : vector<1x4x4xf32> to vector<4x4xf32>
    %cst_30 = arith.constant dense<0.000000e+00> : vector<64x4xf32>
    %37 = tpu.matmul %34, %36, %cst_30 {dimension_numbers = #tpu.dot_dimension_numbers<[1], [0], [0], [1], [0, 0, 1, 1], [], []>} : vector<64x4xf32>, vector<4x4xf32>, vector<64x4xf32> -> vector<64x4xf32>
    %38 = arith.addf %32, %37 : vector<64x4xf32>
    %c0_31 = arith.constant 0 : index
    %c1_32 = arith.constant 1 : index
    %c0_33 = arith.constant 0 : index
    %39 = vector.load %arg9[%c0_31, %c1_32, %c0_33] : memref<6x18x4xf32, #tpu.memory_space<vmem>>, vector<6x16x4xf32>
    %40 = vector.extract_strided_slice %39 {offsets = [0, 0, 0], sizes = [4, 16, 4], strides = [1, 1, 1]} : vector<6x16x4xf32> to vector<4x16x4xf32>
    %41 = vector.shape_cast %40 : vector<4x16x4xf32> to vector<64x4xf32>
    %c1_34 = arith.constant 1 : index
    %c0_35 = arith.constant 0 : index
    %c0_36 = arith.constant 0 : index
    %42 = vector.load %arg6[%c1_34, %c0_35, %c0_36] : memref<9x4x4xf32, #tpu.memory_space<vmem>>, vector<1x4x4xf32>
    %43 = vector.shape_cast %42 : vector<1x4x4xf32> to vector<4x4xf32>
    %cst_37 = arith.constant dense<0.000000e+00> : vector<64x4xf32>
    %44 = tpu.matmul %41, %43, %cst_37 {dimension_numbers = #tpu.dot_dimension_numbers<[1], [0], [0], [1], [0, 0, 1, 1], [], []>} : vector<64x4xf32>, vector<4x4xf32>, vector<64x4xf32> -> vector<64x4xf32>
    %45 = arith.addf %38, %44 : vector<64x4xf32>
    %46 = vector.extract_strided_slice %39 {offsets = [1, 0, 0], sizes = [4, 16, 4], strides = [1, 1, 1]} : vector<6x16x4xf32> to vector<4x16x4xf32>
    %47 = vector.shape_cast %46 : vector<4x16x4xf32> to vector<64x4xf32>
    %c4 = arith.constant 4 : index
    %c0_38 = arith.constant 0 : index
    %c0_39 = arith.constant 0 : index
    %48 = vector.load %arg6[%c4, %c0_38, %c0_39] : memref<9x4x4xf32, #tpu.memory_space<vmem>>, vector<1x4x4xf32>
    %49 = vector.shape_cast %48 : vector<1x4x4xf32> to vector<4x4xf32>
    %cst_40 = arith.constant dense<0.000000e+00> : vector<64x4xf32>
    %50 = tpu.matmul %47, %49, %cst_40 {dimension_numbers = #tpu.dot_dimension_numbers<[1], [0], [0], [1], [0, 0, 1, 1], [], []>} : vector<64x4xf32>, vector<4x4xf32>, vector<64x4xf32> -> vector<64x4xf32>
    %51 = arith.addf %45, %50 : vector<64x4xf32>
    %52 = vector.extract_strided_slice %39 {offsets = [2, 0, 0], sizes = [4, 16, 4], strides = [1, 1, 1]} : vector<6x16x4xf32> to vector<4x16x4xf32>
    %53 = vector.shape_cast %52 : vector<4x16x4xf32> to vector<64x4xf32>
    %c7 = arith.constant 7 : index
    %c0_41 = arith.constant 0 : index
    %c0_42 = arith.constant 0 : index
    %54 = vector.load %arg6[%c7, %c0_41, %c0_42] : memref<9x4x4xf32, #tpu.memory_space<vmem>>, vector<1x4x4xf32>
    %55 = vector.shape_cast %54 : vector<1x4x4xf32> to vector<4x4xf32>
    %cst_43 = arith.constant dense<0.000000e+00> : vector<64x4xf32>
    %56 = tpu.matmul %53, %55, %cst_43 {dimension_numbers = #tpu.dot_dimension_numbers<[1], [0], [0], [1], [0, 0, 1, 1], [], []>} : vector<64x4xf32>, vector<4x4xf32>, vector<64x4xf32> -> vector<64x4xf32>
    %57 = arith.addf %51, %56 : vector<64x4xf32>
    %c0_44 = arith.constant 0 : index
    %c2 = arith.constant 2 : index
    %c0_45 = arith.constant 0 : index
    %58 = vector.load %arg9[%c0_44, %c2, %c0_45] : memref<6x18x4xf32, #tpu.memory_space<vmem>>, vector<6x16x4xf32>
    %59 = vector.extract_strided_slice %58 {offsets = [0, 0, 0], sizes = [4, 16, 4], strides = [1, 1, 1]} : vector<6x16x4xf32> to vector<4x16x4xf32>
    %60 = vector.shape_cast %59 : vector<4x16x4xf32> to vector<64x4xf32>
    %c2_46 = arith.constant 2 : index
    %c0_47 = arith.constant 0 : index
    %c0_48 = arith.constant 0 : index
    %61 = vector.load %arg6[%c2_46, %c0_47, %c0_48] : memref<9x4x4xf32, #tpu.memory_space<vmem>>, vector<1x4x4xf32>
    %62 = vector.shape_cast %61 : vector<1x4x4xf32> to vector<4x4xf32>
    %cst_49 = arith.constant dense<0.000000e+00> : vector<64x4xf32>
    %63 = tpu.matmul %60, %62, %cst_49 {dimension_numbers = #tpu.dot_dimension_numbers<[1], [0], [0], [1], [0, 0, 1, 1], [], []>} : vector<64x4xf32>, vector<4x4xf32>, vector<64x4xf32> -> vector<64x4xf32>
    %64 = arith.addf %57, %63 : vector<64x4xf32>
    %65 = vector.extract_strided_slice %58 {offsets = [1, 0, 0], sizes = [4, 16, 4], strides = [1, 1, 1]} : vector<6x16x4xf32> to vector<4x16x4xf32>
    %66 = vector.shape_cast %65 : vector<4x16x4xf32> to vector<64x4xf32>
    %c5 = arith.constant 5 : index
    %c0_50 = arith.constant 0 : index
    %c0_51 = arith.constant 0 : index
    %67 = vector.load %arg6[%c5, %c0_50, %c0_51] : memref<9x4x4xf32, #tpu.memory_space<vmem>>, vector<1x4x4xf32>
    %68 = vector.shape_cast %67 : vector<1x4x4xf32> to vector<4x4xf32>
    %cst_52 = arith.constant dense<0.000000e+00> : vector<64x4xf32>
    %69 = tpu.matmul %66, %68, %cst_52 {dimension_numbers = #tpu.dot_dimension_numbers<[1], [0], [0], [1], [0, 0, 1, 1], [], []>} : vector<64x4xf32>, vector<4x4xf32>, vector<64x4xf32> -> vector<64x4xf32>
    %70 = arith.addf %64, %69 : vector<64x4xf32>
    %71 = vector.extract_strided_slice %58 {offsets = [2, 0, 0], sizes = [4, 16, 4], strides = [1, 1, 1]} : vector<6x16x4xf32> to vector<4x16x4xf32>
    %72 = vector.shape_cast %71 : vector<4x16x4xf32> to vector<64x4xf32>
    %c8 = arith.constant 8 : index
    %c0_53 = arith.constant 0 : index
    %c0_54 = arith.constant 0 : index
    %73 = vector.load %arg6[%c8, %c0_53, %c0_54] : memref<9x4x4xf32, #tpu.memory_space<vmem>>, vector<1x4x4xf32>
    %74 = vector.shape_cast %73 : vector<1x4x4xf32> to vector<4x4xf32>
    %cst_55 = arith.constant dense<0.000000e+00> : vector<64x4xf32>
    %75 = tpu.matmul %72, %74, %cst_55 {dimension_numbers = #tpu.dot_dimension_numbers<[1], [0], [0], [1], [0, 0, 1, 1], [], []>} : vector<64x4xf32>, vector<4x4xf32>, vector<64x4xf32> -> vector<64x4xf32>
    %76 = arith.addf %70, %75 : vector<64x4xf32>
    %c0_56 = arith.constant 0 : index
    %c0_57 = arith.constant 0 : index
    %77 = vector.load %arg7[%c0_56, %c0_57] : memref<1x4xf32, #tpu.memory_space<vmem>>, vector<1x4xf32>
    %78 = vector.broadcast %77 : vector<1x4xf32> to vector<64x4xf32>
    %79 = arith.addf %76, %78 : vector<64x4xf32>
    %cst_58 = arith.constant 0.000000e+00 : f32
    %80 = vector.broadcast %cst_58 : f32 to vector<64x4xf32>
    %81 = arith.maximumf %79, %80 : vector<64x4xf32>
    %82 = vector.shape_cast %81 : vector<64x4xf32> to vector<1x4x16x4xf32>
    %c0_59 = arith.constant 0 : index
    %c0_60 = arith.constant 0 : index
    %c0_61 = arith.constant 0 : index
    %c0_62 = arith.constant 0 : index
    %83 = vector.load %arg8[%c0_59, %c0_60, %c0_61, %c0_62] : memref<1x4x16x4xf32, #tpu.memory_space<vmem>>, vector<1x4x16x4xf32>
    tpu.vector_store %arg8[%c0_59, %c0_60, %c0_61, %c0_62], %82 {strides = array<i32>} : memref<1x4x16x4xf32, #tpu.memory_space<vmem>>, vector<1x4x16x4xf32>,
    return
  }
  func.func @transform_0(%arg0: i32, %arg1: i32, %arg2: i32) -> (i32, i32, i32, i32) {
    %c0_i32 = arith.constant 0 : i32
    %c0_i32_0 = arith.constant 0 : i32
    %c0_i32_1 = arith.constant 0 : i32
    return %arg0, %arg2, %c0_i32, %c0_i32_0 : i32, i32, i32, i32
  }
  func.func @transform_1(%arg0: i32, %arg1: i32, %arg2: i32) -> (i32, i32, i32, i32) {
    %c4_i32 = arith.constant 4 : i32
    %0 = arith.muli %arg2, %c4_i32 : i32
    %c1_i32 = arith.constant 1 : i32
    %1 = arith.subi %0, %c1_i32 : i32
    %c0_i32 = arith.constant 0 : i32
    %2 = arith.maxsi %1, %c0_i32 : i32
    %c0_i32_0 = arith.constant 0 : i32
    %c0_i32_1 = arith.constant 0 : i32
    %c0_i32_2 = arith.constant 0 : i32
    return %arg0, %2, %c0_i32_0, %c0_i32_1 : i32, i32, i32, i32
  }
  func.func @transform_2(%arg0: i32, %arg1: i32, %arg2: i32) -> (i32, i32, i32, i32) {
    %c4_i32 = arith.constant 4 : i32
    %0 = arith.muli %arg2, %c4_i32 : i32
    %c4_i32_0 = arith.constant 4 : i32
    %1 = arith.addi %0, %c4_i32_0 : i32
    %c15_i32 = arith.constant 15 : i32
    %2 = arith.minsi %1, %c15_i32 : i32
    %c0_i32 = arith.constant 0 : i32
    %c0_i32_1 = arith.constant 0 : i32
    %c0_i32_2 = arith.constant 0 : i32
    return %arg0, %2, %c0_i32, %c0_i32_1 : i32, i32, i32, i32
  }
  func.func @transform_3(%arg0: i32, %arg1: i32, %arg2: i32) -> (i32, i32, i32) {
    %c0_i32 = arith.constant 0 : i32
    %c0_i32_0 = arith.constant 0 : i32
    %c0_i32_1 = arith.constant 0 : i32
    return %c0_i32, %c0_i32_0, %arg1 : i32, i32, i32
  }
  func.func @transform_4(%arg0: i32, %arg1: i32, %arg2: i32) -> (i32, i32) {
    %c0_i32 = arith.constant 0 : i32
    %c0_i32_0 = arith.constant 0 : i32
    return %c0_i32, %arg1 : i32, i32
  }
  func.func @transform_5(%arg0: i32, %arg1: i32, %arg2: i32) -> (i32, i32, i32, i32) {
    %c0_i32 = arith.constant 0 : i32
    %c0_i32_0 = arith.constant 0 : i32
    return %arg0, %arg2, %c0_i32, %arg1 : i32, i32, i32, i32
  }
}

</mosaic_0001>

<bundles_post_ra>
// kernel: tile.13
= control target key start
LH: loop header
LB: loop body
LE: loop exit
PB: predicated region body
PF: predicated region fallthrough
CT: control target
= control target key end

     0   :  { %s22_s0 = inlined_call_operand.vmem [shape: f32[16], index: 0, kind: input, shape index: {}]   ;;  %s23_s1 = inlined_call_operand.vmem [shape: f32[4,16], index: 1, kind: output, shape index: {}]  }
   0x1   :  { %v4_v0 = vld [vmem:[%s22_s0] ss:$0 sm:$0xff] }
   0x2   :  { %5 = vst [vmem:[%s23_s1] sm:$0xf] %v4_v0 }

// kernel: tile.14
= control target key start
LH: loop header
LB: loop body
LE: loop exit
PB: predicated region body
PF: predicated region fallthrough
CT: control target
= control target key end

     0   :  { %vm7_vm0 = vcmask 130048   ;;  %s37_s8 = smov 16   ;;  %s38_s9 = smov 32   ;;  %vm13_vm1 = vcmask 523648   ;;  %vm19_vm2 = vcmask 392448   ;;  %vm25_vm3 = vcmask 261248   ;;  %s55_s0 = inlined_call_operand.vmem [shape: f32[4,16], index: 0, kind: input, shape index: {}]   ;;  %s56_s1 = inlined_call_operand.vmem [shape: f32[1,64], index: 1, kind: output, shape index: {}]  }
   0x1   :  { %v4_v0 = vld [vmem:[%s55_s0] sm:$0xf]  ;;  %s36_s0 = smov 48  }
   0x2   :  { %5 = vst [vmem:[#allocation1] sm:$0xf] %v4_v0 }
   0x9   :  { %v10_v1 = vld [vmem:[#allocation1 + $0x3] sm:$0x1]   ;;  %v22_v2 = vld [vmem:[#allocation1 + $0x1] sm:$0x1]   ;;  %v6_v3 = vld [vmem:[#allocation1] sm:$0x1]  }
   0xa   :  { %11 = vrot.lane.b32.xlu0 %v10_v1, %s36_s0  ;;  %23 = vrot.lane.b32.xlu1 %v22_v2, %s37_s8  ;;  %v16_v4 = vld [vmem:[#allocation1 + $0x2] sm:$0x1]   ;;  %8 = vst.msk [vmem:[#allocation0] sm:$0x1] %vm7_vm0, %v6_v3  }
   0xe   :  { %17 = vrot.lane.b32.xlu0 %v16_v4, %s38_s9 }
  0x7c   :  { %v12_v5 = vpop.permute.xlu0 %11   ;;  %v24_v6 = vpop.permute.xlu1 %23  }
  0x7d   :  { %14 = vst.msk [vmem:[#allocation0] sm:$0x1] %vm13_vm1, %v12_v5  }
  0x80   :  { %v18_v7 = vpop.permute.xlu0 %17  }
  0x81   :  { %20 = vst.msk [vmem:[#allocation0] sm:$0x1] %vm19_vm2, %v18_v7  }
  0x82   :  { %26 = vst.msk [vmem:[#allocation0] sm:$0x1] %vm25_vm3, %v24_v6  }
  0x89   :  { %v30_v8 = vld [vmem:[#allocation0] sm:$0x1] }
  0x8a   :  { %32 = vst [vmem:[%s56_s1] sm:$0x1] %v30_v8 }

// kernel: tile.18
= control target key start
LH: loop header
LB: loop body
LE: loop exit
PB: predicated region body
PF: predicated region fallthrough
CT: control target
= control target key end

     0   :  { %s22_s0 = inlined_call_operand.vmem [shape: f32[8], index: 0, kind: input, shape index: {}]   ;;  %s23_s1 = inlined_call_operand.vmem [shape: f32[4,8], index: 1, kind: output, shape index: {}]  }
   0x1   :  { %v4_v0 = vld [vmem:[%s22_s0] ss:$0 sm:$0xff] }
   0x2   :  { %5 = vst [vmem:[%s23_s1] sm:$0xf] %v4_v0 }

// kernel: tile.19
= control target key start
LH: loop header
LB: loop body
LE: loop exit
PB: predicated region body
PF: predicated region fallthrough
CT: control target
= control target key end

     0   :  { %vm7_vm0 = vcmask 64512   ;;  %s37_s8 = smov 8   ;;  %s38_s9 = smov 16   ;;  %vm13_vm1 = vcmask 261312   ;;  %vm19_vm2 = vcmask 195712   ;;  %vm25_vm3 = vcmask 130112   ;;  %s55_s0 = inlined_call_operand.vmem [shape: f32[4,8], index: 0, kind: input, shape index: {}]   ;;  %s56_s1 = inlined_call_operand.vmem [shape: f32[1,32], index: 1, kind: output, shape index: {}]  }
   0x1   :  { %v4_v0 = vld [vmem:[%s55_s0] sm:$0xf]  ;;  %s36_s0 = smov 24  }
   0x2   :  { %5 = vst [vmem:[#allocation1] sm:$0xf] %v4_v0 }
   0x9   :  { %v10_v1 = vld [vmem:[#allocation1 + $0x3] sm:$0x1]   ;;  %v22_v2 = vld [vmem:[#allocation1 + $0x1] sm:$0x1]   ;;  %v6_v3 = vld [vmem:[#allocation1] sm:$0x1]  }
   0xa   :  { %11 = vrot.lane.b32.xlu0 %v10_v1, %s36_s0  ;;  %23 = vrot.lane.b32.xlu1 %v22_v2, %s37_s8  ;;  %v16_v4 = vld [vmem:[#allocation1 + $0x2] sm:$0x1]   ;;  %8 = vst.msk [vmem:[#allocation0] sm:$0x1] %vm7_vm0, %v6_v3  }
   0xe   :  { %17 = vrot.lane.b32.xlu0 %v16_v4, %s38_s9 }
  0x7c   :  { %v12_v5 = vpop.permute.xlu0 %11   ;;  %v24_v6 = vpop.permute.xlu1 %23  }
  0x7d   :  { %14 = vst.msk [vmem:[#allocation0] sm:$0x1] %vm13_vm1, %v12_v5  }
  0x80   :  { %v18_v7 = vpop.permute.xlu0 %17  }
  0x81   :  { %20 = vst.msk [vmem:[#allocation0] sm:$0x1] %vm19_vm2, %v18_v7  }
  0x82   :  { %26 = vst.msk [vmem:[#allocation0] sm:$0x1] %vm25_vm3, %v24_v6  }
  0x89   :  { %v30_v8 = vld [vmem:[#allocation0] sm:$0x1] }
  0x8a   :  { %32 = vst [vmem:[%s56_s1] sm:$0x1] %v30_v8 }

// kernel: decoder_forward.6
= control target key start
LH: loop header
LB: loop body
LE: loop exit
PB: predicated region body
PF: predicated region fallthrough
CT: control target
= control target key end

     0   :  { %s539_s12 = smov 0   ;;  %s541_s13 = smov 0   ;;  %s589_s0 = inlined_call_operand.vmem [shape: f32[2,4,4,16], index: 0, kind: input, shape index: {}]   ;;  %s590_s1 = inlined_call_operand.vmem [shape: f32[16,64], index: 1, kind: input, shape index: {}]   ;;  %s591_s2 = inlined_call_operand.vmem [shape: f32[1,64], index: 2, kind: input, shape index: {}]   ;;  %s592_s3 = inlined_call_operand.vmem [shape: f32[2,4,2,4,32], index: 3, kind: output, shape index: {}]  }
   0x1   :  { %s543_s14 = smov 0  }
   0x2 LB: > { %s25_s15 = sadd.s32 1, %s512_s13  ;;  %p436_p0 = scmp.ge.s32.totalorder %s516_s14, 1  ;;  %s516_s14 = sphi %s543_s14, %s13_s14   ;;  %s512_s13 = sphi %s541_s13, %s594_s13   ;;  %s508_s12 = sphi %s539_s12, %s593_s12  }
   0x3   : > { %p27_p1 = scmp.ge.s32.totalorder %s25_s15, 2  ;;  %p158_p2 = scmp.lt.s32.totalorder %s516_s14, 3 }
   0x5   : > { %s596_s15 = smov (%p27_p1, %s25_s15), 0  ;;  %p159_p3 = pnand %p436_p0, %p158_p2 }
   0x6   : > { %v216_v0 = vld [vmem:[%s590_s1] sm:$0xff] (!%p159_p3)  ;;  %v217_v1 = vld [vmem:[%s590_s1 + $0x8] sm:$0xff] (!%p159_p3)  ;;  %p192_p4 = scmp.lt.s32.totalorder (!%p159_p3), %s508_s12, 1  ;;  %vm231_vm0 = vcmask (!%p159_p3), 130048   ;;  %vm317_vm1 = vcmask (!%p159_p3), 257024   ;;  %s518_s30 = smov (!%p159_p3), 96  }
   0x7   : > { %162 = sbr.rel (%p159_p3) target bundleno = 354 (0x162), region = 32  ;;  %v463_v2 = vpack.c.bf16 (!%p159_p3), %v217_v1, %v216_v0  ;;  %v441_v5 = vld [vmem:[%s591_s2] ss:$0 sm:$0xff] (!%p159_p3) }
   0x9   : > { %464 = vmatprep.subr.bf16.mxu0 (!%p159_p3), %v463_v2 }
   0xa   : > { %466 = vmatpush3.bf16.msra.mxu0 (!%p159_p3), %v463_v2 }
   0xe   : > { %s598_s12 = smov (!%p192_p4, %s508_s12), 1 }
   0xf   : > { %s450_s20 = sshll.u32 %s598_s12, 4  ;;  %s451_s24 = sshll.u32 %s598_s12, 5 }
  0x10   : > { %s199_s23 = scalar_lea.vmem %s589_s0, %s450_s20  ;;  %s210_s29 = scalar_lea.vmem %s592_s3, %s451_s24 }
  0x11   : > { %v492_v3 = vld [vmem:[%s199_s23] sm:$0xff]   ;;  %v493_v4 = vld [vmem:[%s199_s23 + $0x8] sm:$0xff]  }
  0x12   : > { %460 = vmatprep.mubr.msk.f32.mxu0 %vm231_vm0, %v492_v3 }
  0x13   : > { %461 = vmatmul.mubr.msk.f32.vlgmr.msra.gmra.mrb[0].mxu0 %vm231_vm0, %v493_v4 }
  0xe6   : > { %v462_v6 = vpop.f32.mrb[0].mxu0 }
  0xe7   : > { %v308_v7 = vadd.f32 %v462_v6, %v441_v5  ;;  %v302_v8 = vpop.f32.mrb[1].mxu0 }
  0xe8   : > { %v303_v9 = vadd.f32 %v441_v5, %v302_v8 }
  0xe9   : > { %320 = vst.msk [vmem:[%s210_s29 + $0x10] sm:$0xf] %vm317_vm1, %v308_v7  ;;  %326 = vrot.lane.b32.xlu1 %v308_v7, %s518_s30  ;;  %v314_v10 = vcombine.high %v308_v7, %v308_v7 }
  0xea   : > { %318 = vst.msk [vmem:[%s210_s29] sm:$0xf] %vm317_vm1, %v303_v9  ;;  %322 = vrot.lane.b32.xlu0 %v303_v9, %s518_s30  ;;  %v313_v11 = vcombine.high %v303_v9, %v303_v9 }
  0xeb   : > { %321 = vst.msk [vmem:[%s210_s29 + $0x18] sm:$0xf] %vm317_vm1, %v314_v10 }
  0xec   : > { %319 = vst.msk [vmem:[%s210_s29 + $0x8] sm:$0xf] %vm317_vm1, %v313_v11 }
  0xed   : > { %328 = vrot.lane.b32.xlu1 %v314_v10, %s518_s30 }
  0xee   : > { %324 = vrot.lane.b32.xlu0 %v313_v11, %s518_s30 }
 0x15b   : > { %v327_v12 = vpop.permute.xlu1 %326 }
 0x15c   : > { %446 = vst.msk [vmem:[%s210_s29 + $0x14] sm:$0xf] %vm317_vm1, %v327_v12  ;;  %v323_v13 = vpop.permute.xlu0 %322 }
 0x15d   : > { %444 = vst.msk [vmem:[%s210_s29 + $0x4] sm:$0xf] %vm317_vm1, %v323_v13 }
 0x15f   : > { %v329_v14 = vpop.permute.xlu1 %328 }
 0x160   : > { %447 = vst.msk [vmem:[%s210_s29 + $0x1c] sm:$0xf] %vm317_vm1, %v329_v14  ;;  %v325_v15 = vpop.permute.xlu0 %324 }
 0x161   : > { %445 = vst.msk [vmem:[%s210_s29 + $0xc] sm:$0xf] %vm317_vm1, %v325_v15 }
 0x162 PF: > { %s13_s14 = sadd.s32 1, %s516_s14   ;;  %s593_s12 = smov %s512_s13 }
 0x163   : > { %p10_p5 = scmp.ge.s32.totalorder %s13_s14, 4   ;;  %s594_s13 = smov %s596_s15 }
 0x165   :  { %12 = sbr.rel (!%p10_p5) target bundleno = 2 (0x2), region = 63 }

// kernel: decoder_forward.9
= control target key start
LH: loop header
LB: loop body
LE: loop exit
PB: predicated region body
PF: predicated region fallthrough
CT: control target
= control target key end

     0   :  { %s584_s12 = smov 0   ;;  %s586_s13 = smov 0   ;;  %s649_s0 = inlined_call_operand.vmem [shape: f32[2,8,8,8], index: 0, kind: input, shape index: {}]   ;;  %s650_s1 = inlined_call_operand.vmem [shape: f32[8,32], index: 1, kind: input, shape index: {}]   ;;  %s651_s2 = inlined_call_operand.vmem [shape: f32[1,32], index: 2, kind: input, shape index: {}]   ;;  %s652_s3 = inlined_call_operand.vmem [shape: f32[2,8,2,8,16], index: 3, kind: output, shape index: {}]  }
   0x1   :  { %s588_s14 = smov 0   ;;  %s590_s15 = smov 0  }
   0x2   :  { %s592_s16 = smov 0  }
   0x3 LB: > { %s22_s17 = sadd.s32 1, %s553_s14  ;;  %s25_s18 = sadd.s32 1, %s557_s15  ;;  %s561_s16 = sphi %s592_s16, %s13_s16   ;;  %s557_s15 = sphi %s590_s15, %s656_s15   ;;  %s553_s14 = sphi %s588_s14, %s655_s14   ;;  %s549_s13 = sphi %s586_s13, %s654_s13   ;;  %s545_s12 = sphi %s584_s12, %s653_s12  }
   0x4   : > { %p23_p0 = scmp.ge.s32.totalorder %s22_s17, 2  ;;  %p448_p1 = scmp.ge.s32.totalorder %s561_s16, 1 }
   0x5   : > { %p158_p2 = scmp.lt.s32.totalorder %s561_s16, 5 }
   0x6   : > { %s658_s17 = smov (%p23_p0, %s22_s17), 0  ;;  %s660_s18 = smov (!%p23_p0, %s25_s18), %s557_s15 }
   0x7   : > { %p159_p3 = pnand %p448_p1, %p158_p2  ;;  %p27_p4 = scmp.ge.s32.totalorder %s660_s18, 2 }
   0x8   : > { %v216_v0 = vld [vmem:[%s650_s1] sm:$0xff] (!%p159_p3)  ;;  %s449_s21 = sshll.u32 (!%p159_p3), %s545_s12, 2  ;;  %p192_p5 = scmp.lt.s32.totalorder (!%p159_p3), %s549_s13, 1  ;;  %vm224_vm0 = vcmask (!%p159_p3), 64512   ;;  %vm322_vm1 = vcmask (!%p159_p3), 130048  }
   0x9   : > { %s662_s18 = smov (%p27_p4, %s660_s18), 0  ;;  %162 = sbr.rel (%p159_p3) target bundleno = 358 (0x166), region = 32 }
   0xa   : > { %472 = vmatprep.subr.mxu0 (!%p159_p3), %v216_v0  ;;  %480 = vmatprep.subr.mxu1 (!%p159_p3), %v216_v0  ;;  %p194_p6 = scmp.lt.s32.totalorder (!%p159_p3), %s449_s21, 7  ;;  %v456_v5 = vld [vmem:[%s651_s2] ss:$0 sm:$0xff] (!%p159_p3)  ;;  %s563_s10 = smov (!%p159_p3), 112  }
   0xb   : > { %473 = vmatpush3.msra.mxu0 (!%p159_p3), %v216_v0  ;;  %481 = vmatpush3.msra.mxu1 (!%p159_p3), %v216_v0 }
  0x10   : > { %s664_s13 = smov (!%p192_p5, %s549_s13), 1  ;;  %s666_s21 = smov (!%p194_p6, %s449_s21), 7 }
  0x11   : > { %s450_s22 = sshll.u32 %s664_s13, 3  ;;  %s454_s23 = sshll.u32 %s664_s13, 4 }
  0x12   : > { %s197_s24 = sadd.s32 %s450_s22, %s666_s21  ;;  %s453_s25 = sshll.u32 %s666_s21, 1 }
  0x13   : > { %s451_s26 = sshll.u32 %s197_s24, 3  ;;  %s208_s27 = sadd.s32 %s454_s23, %s453_s25 }
  0x14   : > { %s199_s30 = scalar_lea.vmem %s649_s0, %s451_s26  ;;  %s455_s4 = sshll.u32 %s208_s27, 3 }
  0x15   : > { %v212_v1 = vld [vmem:[%s199_s30] sm:$0xff]  ;;  %v214_v2 = vld [vmem:[%s199_s30 + $0x10] sm:$0xff]  ;;  %v213_v3 = vld [vmem:[%s199_s30 + $0x8] sm:$0xff]  ;;  %s210_s9 = scalar_lea.vmem %s652_s3, %s455_s4 }
  0x16   : > { %474 = vmatprep.mubr.msk.f32.mxu0 %vm224_vm0, %v212_v1  ;;  %477 = vmatprep.mubr.msk.f32.mxu1 %vm224_vm0, %v214_v2  ;;  %v215_v4 = vld [vmem:[%s199_s30 + $0x18] sm:$0xff] }
  0x17   : > { %475 = vmatmul.mubr.msk.f32.vlgmr.msra.gmra.mrb[0].mxu0 %vm224_vm0, %v213_v3  ;;  %478 = vmatmul.mubr.msk.f32.vlgmr.msra.gmra.mrb[0].mxu1 %vm224_vm0, %v215_v4 }
  0xea   : > { %v476_v6 = vpop.f32.mrb[0].mxu0  ;;  %v479_v7 = vpop.f32.mrb[0].mxu1 }
  0xeb   : > { %v309_v8 = vadd.f32 %v476_v6, %v456_v5  ;;  %v319_v9 = vadd.f32 %v479_v7, %v456_v5  ;;  %v303_v10 = vpop.f32.mrb[1].mxu0  ;;  %v313_v11 = vpop.f32.mrb[1].mxu1 }
  0xec   : > { %v304_v12 = vadd.f32 %v456_v5, %v303_v10  ;;  %v314_v13 = vadd.f32 %v456_v5, %v313_v11 }
  0xed   : > { %324 = vst.msk [vmem:[%s210_s9 + $0x10] sm:$0xff] %vm322_vm1, %v309_v8  ;;  %326 = vst.msk [vmem:[%s210_s9 + $0x30] sm:$0xff] %vm322_vm1, %v319_v9 }
  0xee   : > { %323 = vst.msk [vmem:[%s210_s9] sm:$0xff] %vm322_vm1, %v304_v12  ;;  %325 = vst.msk [vmem:[%s210_s9 + $0x20] sm:$0xff] %vm322_vm1, %v314_v13  ;;  %335 = vrot.lane.b32.xlu1 %v314_v13, %s563_s10  ;;  %331 = vrot.lane.b32.xlu0 %v304_v12, %s563_s10 }
  0xf2   : > { %337 = vrot.lane.b32.xlu1 %v319_v9, %s563_s10  ;;  %333 = vrot.lane.b32.xlu0 %v309_v8, %s563_s10 }
 0x160   : > { %v336_v14 = vpop.permute.xlu1 %335  ;;  %v332_v15 = vpop.permute.xlu0 %331 }
 0x161   : > { %463 = vst.msk [vmem:[%s210_s9 + $0x28] sm:$0xff] %vm322_vm1, %v336_v14  ;;  %461 = vst.msk [vmem:[%s210_s9 + $0x8] sm:$0xff] %vm322_vm1, %v332_v15 }
 0x164   : > { %v338_v16 = vpop.permute.xlu1 %337  ;;  %v334_v17 = vpop.permute.xlu0 %333 }
 0x165   : > { %464 = vst.msk [vmem:[%s210_s9 + $0x38] sm:$0xff] %vm322_vm1, %v338_v16  ;;  %462 = vst.msk [vmem:[%s210_s9 + $0x18] sm:$0xff] %vm322_vm1, %v334_v17 }
 0x166 PF: > { %s13_s16 = sadd.s32 1, %s561_s16   ;;  %s653_s12 = smov %s553_s14 }
 0x167   : > { %p10_p7 = scmp.ge.s32.totalorder %s13_s16, 6   ;;  %s654_s13 = smov %s557_s15 }
 0x168   : > { %s655_s14 = smov %s658_s17  ;;  %s656_s15 = smov %s662_s18 }
 0x169   :  { %12 = sbr.rel (!%p10_p7) target bundleno = 3 (0x3), region = 63 }

// kernel: decoder_forward.8
= control target key start
LH: loop header
LB: loop body
LE: loop exit
PB: predicated region body
PF: predicated region fallthrough
CT: control target
= control target key end

     0   :  { %s1896_s18 = smov 0   ;;  %s1898_s19 = smov 0   ;;  %s2071_s0 = inlined_call_operand.vmem [shape: f32[2,8,8,8], index: 0, kind: input, shape index: {}, may-alias: {0,1,2}]   ;;  %s2072_s1 = inlined_call_operand.vmem [shape: f32[2,8,8,8], index: 1, kind: input, shape index: {}, may-alias: {0,1,2}]   ;;  %s2073_s2 = inlined_call_operand.vmem [shape: f32[2,8,8,8], index: 2, kind: input, shape index: {}, may-alias: {0,1,2}]   ;;  %s2074_s3 = inlined_call_operand.vmem [shape: f32[9,8,8], index: 3, kind: input, shape index: {}]   ;;  %s2075_s4 = inlined_call_operand.vmem [shape: f32[1,8], index: 4, kind: input, shape index: {}]   ;;  %s2076_s5 = inlined_call_operand.vmem [shape: f32[2,8,8,8], index: 5, kind: output, shape index: {}]  }
   0x1   :  { %s1900_s20 = smov 0   ;;  %s1902_s21 = smov 0  }
   0x2   :  { %s1904_s22 = smov 0  }
   0x3 LB: > { %s27_s23 = sadd.s32 1, %s1853_s20  ;;  %s34_s24 = sadd.s32 1, %s1857_s21  ;;  %s1861_s22 = sphi %s1904_s22, %s15_s22   ;;  %s1857_s21 = sphi %s1902_s21, %s2081_s21   ;;  %s1853_s20 = sphi %s1900_s20, %s2080_s20   ;;  %s1849_s19 = sphi %s1898_s19, %s2079_s19   ;;  %s1845_s18 = sphi %s1896_s18, %s2078_s18  }
   0x4   : > { %p28_p0 = scmp.ge.s32.totalorder %s27_s23, 2  ;;  %p1554_p1 = scmp.ge.s32.totalorder %s1861_s22, 1 }
   0x5   : > { %p296_p2 = scmp.lt.s32.totalorder %s1861_s22, 5 }
   0x6   : > { %s2083_s23 = smov (%p28_p0, %s27_s23), 0  ;;  %s2085_s24 = smov (!%p28_p0, %s34_s24), %s1857_s21 }
   0x7   : > { %p297_p3 = pnand %p1554_p1, %p296_p2  ;;  %p36_p4 = scmp.ge.s32.totalorder %s2085_s24, 2 }
   0x8   : > { %vm428_vm0 = vcmask (!%p297_p3), 57344   ;;  %s1931_s25 = sshll.u32 (!%p297_p3), %s1845_s18, 2  ;;  %p367_p5 = scmp.lt.s32.totalorder (!%p297_p3), %s1849_s19, 1  ;;  %v1863_v0 = vmov (!%p297_p3), 0.0   ;;  %vm446_vm1 = vcmask (!%p297_p3), 64512  }
   0x9   : > { %s2087_s24 = smov (%p36_p4, %s2085_s24), 0  ;;  %300 = sbr.rel (%p297_p3) target bundleno = 318 (0x13e), region = 40 }
   0xa   : > { %429 = vst.msk [vmem:[#allocation2] sm:$0x1] (!%p297_p3), %vm428_vm0, %v1863_v0  ;;  %430 = vst.msk [vmem:[#allocation2 + $0x10] sm:$0x1] (!%p297_p3), %vm428_vm0, %v1863_v0  ;;  %p369_p6 = scmp.lt.s32.totalorder (!%p297_p3), %s1931_s25, 7  ;;  %s1559_s26 = sadd.s32 (!%p297_p3), 4294967295, %s1931_s25 }
   0xb   : > { %431 = vst.msk [vmem:[#allocation2 + $0x20] sm:$0x1] (!%p297_p3), %vm428_vm0, %v1863_v0  ;;  %432 = vst.msk [vmem:[#allocation2 + $0x30] sm:$0x1] (!%p297_p3), %vm428_vm0, %v1863_v0  ;;  %p378_p7 = scmp.gt.s32.totalorder (!%p297_p3), %s1559_s26, 0  ;;  %p1560_p8 = scmp.lt.s32.totalorder (!%p297_p3), %s1559_s26, 7 }
   0xc   : > { %433 = vst.msk [vmem:[#allocation2 + $0x40] sm:$0x1] (!%p297_p3), %vm428_vm0, %v1863_v0  ;;  %434 = vst.msk [vmem:[#allocation2 + $0x50] sm:$0x1] (!%p297_p3), %vm428_vm0, %v1863_v0  ;;  %s393_s6 = sadd.s32 (!%p297_p3), 4, %s1931_s25  ;;  %p1576_p10 = scmp.le.s32.totalorder (!%p297_p3), %s1845_s18, 0 }
   0xd   : > { %435 = vst.msk [vmem:[#allocation2 + $0x9] sm:$0x1] (!%p297_p3), %vm428_vm0, %v1863_v0  ;;  %436 = vst.msk [vmem:[#allocation2 + $0x19] sm:$0x1] (!%p297_p3), %vm428_vm0, %v1863_v0  ;;  %p1944_p9 = scmp.lt.s32.totalorder (!%p297_p3), %s393_s6, 7 }
   0xe   : > { %437 = vst.msk [vmem:[#allocation2 + $0x29] sm:$0x1] (!%p297_p3), %vm428_vm0, %v1863_v0  ;;  %438 = vst.msk [vmem:[#allocation2 + $0x39] sm:$0x1] (!%p297_p3), %vm428_vm0, %v1863_v0 }
   0xf   : > { %439 = vst.msk [vmem:[#allocation2 + $0x49] sm:$0x1] (!%p297_p3), %vm428_vm0, %v1863_v0  ;;  %440 = vst.msk [vmem:[#allocation2 + $0x59] sm:$0x1] (!%p297_p3), %vm428_vm0, %v1863_v0 }
  0x10   : > { %s2089_s19 = smov (!%p367_p5, %s1849_s19), 1  ;;  %s2091_s6 = smov (!%p1944_p9, %s393_s6), 7 }
  0x11   : > { %s370_s27 = scalar_select %p369_p6, %s1931_s25, 7 }
  0x12   : > { %s1556_s28 = sshll.u32 %s2089_s19, 3  ;;  %s2095_s6 = smov (!%p1944_p9, %s2091_s6), 7 }
  0x13   : > { %s372_s29 = sadd.s32 %s1556_s28, %s370_s27  ;;  %s401_s17 = sadd.s32 %s1556_s28, %s2095_s6 }
  0x14   : > { %s1557_s30 = sshll.u32 %s372_s29, 3  ;;  %s1572_s29 = sshll.u32 %s401_s17, 3 }
  0x15   : > { %s374_s9 = scalar_lea.vmem %s2071_s0, %s1557_s30  ;;  %s1960_s15 = scalar_lea.vmem %s2076_s5, %s1557_s30 }
  0x16   : > { %s379_s11 = scalar_select %p378_p7, %s1559_s26, 0  ;;  %v441_v1 = vld [vmem:[%s374_s9] sm:$0xff]  ;;  %v442_v2 = vld [vmem:[%s374_s9 + $0x8] sm:$0xff]  ;;  %v443_v3 = vld [vmem:[%s374_s9 + $0x10] sm:$0xff] }
  0x17   : > { %447 = vst.msk [vmem:[#allocation2 + $0x11] sm:$0xff] %vm446_vm1, %v441_v1  ;;  %448 = vst.msk [vmem:[#allocation2 + $0x21] sm:$0xff] %vm446_vm1, %v442_v2  ;;  %v444_v4 = vld [vmem:[%s374_s9 + $0x18] sm:$0xff]  ;;  %s403_s8 = scalar_lea.vmem %s2073_s2, %s1572_s29  ;;  %454 = sbr.rel (%p1576_p10) target bundleno = 30 (0x1e), region = 44 }
  0x18   : > { %449 = vst.msk [vmem:[#allocation2 + $0x31] sm:$0xff] %vm446_vm1, %v443_v3  ;;  %s2093_s11 = smov (!%p1560_p8, %s379_s11), 7  ;;  %450 = vst.msk [vmem:[#allocation2 + $0x41] sm:$0xff] %vm446_vm1, %v444_v4 }
  0x19   : > { %s385_s12 = sadd.s32 %s2093_s11, %s1556_s28 }
  0x1a   : > { %s1566_s16 = sshll.u32 %s385_s12, 3 }
  0x1b   : > { %s387_s27 = scalar_lea.vmem %s2072_s1, %s1566_s16 }
  0x1c   : > { %v455_v5 = vld [vmem:[%s387_s27] sm:$0xff] (!%p1576_p10) }
  0x1d   : > { %456 = vst.msk [vmem:[#allocation2 + $0x1] sm:$0xff] (!%p1576_p10), %vm446_vm1, %v455_v5 }
  0x1e PF: > { %p1577_p11 = scmp.ne.s32.totalorder %s1845_s18, 0 }
  0x1f   : > { %v1864_v6 = vmov (!%p1577_p11), 0.0  }
  0x20   : > { %460 = sbr.rel (%p1577_p11) target bundleno = 39 (0x27), region = 48  ;;  %461 = vst.msk [vmem:[#allocation2 + $0x1] sm:$0xff] (!%p1577_p11), %vm446_vm1, %v1864_v6 }
  0x27 PF: > { %p1578_p12 = scmp.ge.s32.totalorder %s1845_s18, 1 }
  0x28   : > { %v466_v7 = vld [vmem:[%s403_s8] sm:$0xff] (!%p1578_p12) }
  0x29   : > { %465 = sbr.rel (%p1578_p12) target bundleno = 48 (0x30), region = 52  ;;  %468 = vst.msk [vmem:[#allocation2 + $0x51] sm:$0xff] (!%p1578_p12), %vm446_vm1, %v466_v7 }
  0x30 PF: > { %p1579_p13 = scmp.ne.s32.totalorder %s1845_s18, 1 }
  0x31   : > { %v1865_v8 = vmov (!%p1579_p13), 0.0  }
  0x32   : > { %472 = sbr.rel (%p1579_p13) target bundleno = 57 (0x39), region = 56  ;;  %474 = vst.msk [vmem:[#allocation2 + $0x51] sm:$0xff] (!%p1579_p13), %vm446_vm1, %v1865_v8 }
  0x39 PF: > { %v1580_v9 = vld [vmem:[%s2074_s3 + $0x18] sm:$0xff]  ;;  %v1982_v10 = vld [vmem:[%s2074_s3 + $0x20] sm:$0xff]  ;;  %v476_v11 = vld [vmem:[#allocation2 + $0x10] sm:$0xff] }
  0x3a   : > { %1674 = vmatprep.subr.mxu1 %v1580_v9  ;;  %1706 = vmatprep.subr.mxu0 %v1982_v10  ;;  %v764_v12 = vld [vmem:[#allocation2 + $0x11] sm:$0xff]  ;;  %v477_v13 = vld [vmem:[#allocation2 + $0x20] sm:$0xff]  ;;  %v1594_v24 = vld [vmem:[%s2074_s3 + $0x8] sm:$0xff] }
  0x3b   : > { %v481_v14 = vld [vmem:[%s2074_s3] sm:$0xff]  ;;  %1675 = vmatpush3.msra.mxu1 %v1580_v9  ;;  %1676 = vmatprep.mubr.msk.f32.mxu1 %vm446_vm1, %v476_v11  ;;  %v1604_v16 = vld [vmem:[%s2074_s3 + $0x38] sm:$0xff]  ;;  %v478_v17 = vld [vmem:[#allocation2 + $0x30] sm:$0xff] }
  0x3c   : > { %v765_v15 = vld [vmem:[#allocation2 + $0x21] sm:$0xff]  ;;  %1707 = vmatpush3.msra.mxu0 %v1982_v10  ;;  %1708 = vmatprep.mubr.msk.f32.mxu0 %vm446_vm1, %v764_v12  ;;  %v1589_v19 = vld [vmem:[%s2074_s3 + $0x30] sm:$0xff]  ;;  %v1624_v39 = vld [vmem:[%s2075_s4] ss:$0 sm:$0xff] }
  0x3d   : > { %1677 = vmatmul.mubr.msk.f32.vlgmr.msra.gmra.mrb[0].mxu1 %vm446_vm1, %v477_v13  ;;  %1682 = vmatprep.subr.mxu1 %v481_v14  ;;  %v479_v18 = vld [vmem:[#allocation2 + $0x40] sm:$0xff]  ;;  %v1609_v21 = vld [vmem:[%s2074_s3 + $0x10] sm:$0xff]  ;;  %v1614_v25 = vld [vmem:[%s2074_s3 + $0x28] sm:$0xff] }
  0x3e   : > { %1709 = vmatmul.mubr.msk.f32.vlgmr.msra.gmra.mrb[0].mxu0 %vm446_vm1, %v765_v15  ;;  %1714 = vmatprep.subr.mxu0 %v1604_v16  ;;  %v475_v20 = vld [vmem:[#allocation2] sm:$0xff]  ;;  %v766_v22 = vld [vmem:[#allocation2 + $0x31] sm:$0xff] }
  0x3f   : > { %1683 = vmatpush3.msra.mxu1 %v481_v14  ;;  %1715 = vmatpush3.msra.mxu0 %v1604_v16  ;;  %v767_v23 = vld [vmem:[#allocation2 + $0x41] sm:$0xff]  ;;  %v768_v26 = vld [vmem:[#allocation2 + $0x51] sm:$0xff] }
  0x40   : > { %1679 = vmatprep.mubr.msk.f32.mxu1 %vm446_vm1, %v478_v17  ;;  %1716 = vmatprep.mubr.msk.f32.mxu0 %vm446_vm1, %v765_v15  ;;  %v1060_v27 = vld [vmem:[#allocation2 + $0x2] sm:$0xff]  ;;  %v1061_v28 = vld [vmem:[#allocation2 + $0x12] sm:$0xff] }
  0x41   : > { %1680 = vmatmul.mubr.msk.f32.gmra.mrb[2].mxu1 %vm446_vm1, %v479_v18  ;;  %1690 = vmatprep.subr.mxu1 %v1589_v19  ;;  %v1062_v29 = vld [vmem:[#allocation2 + $0x22] sm:$0xff]  ;;  %v480_v30 = vld [vmem:[#allocation2 + $0x50] sm:$0xff] }
  0x42   : > { %1684 = vmatprep.mubr.msk.f32.mxu1 %vm446_vm1, %v475_v20  ;;  %1722 = vmatprep.subr.mxu0 %v1609_v21  ;;  %v1619_v31 = vld [vmem:[%s2074_s3 + $0x40] sm:$0xff]  ;;  %v1063_v32 = vld [vmem:[#allocation2 + $0x32] sm:$0xff] }
  0x43   : > { %v763_v33 = vld [vmem:[#allocation2 + $0x1] sm:$0xff]  ;;  %v1065_v35 = vld [vmem:[#allocation2 + $0x52] sm:$0xff] }
  0x44   : > { %v1064_v34 = vld [vmem:[#allocation2 + $0x42] sm:$0xff] }
  0x45   : > { %1685 = vmatmul.mubr.msk.f32.vlgmr.msra.gmra.mrb[0].mxu1 %vm446_vm1, %v476_v11 }
  0x46   : > { %1717 = vmatmul.mubr.msk.f32.vlgmr.msra.gmra.mrb[0].mxu0 %vm446_vm1, %v766_v22  ;;  %1691 = vmatpush3.msra.mxu1 %v1589_v19 }
  0x47   : > { %1723 = vmatpush3.msra.mxu0 %v1609_v21  ;;  %1687 = vmatprep.mubr.msk.f32.mxu1 %vm446_vm1, %v477_v13 }
  0x48   : > { %1719 = vmatprep.mubr.msk.f32.mxu0 %vm446_vm1, %v767_v23  ;;  %1698 = vmatprep.subr.mxu1 %v1594_v24 }
  0x49   : > { %1688 = vmatmul.mubr.msk.f32.gmra.mrb[2].mxu1 %vm446_vm1, %v478_v17  ;;  %1730 = vmatprep.subr.mxu0 %v1614_v25 }
  0x4a   : > { %1720 = vmatmul.mubr.msk.f32.gmra.mrb[2].mxu0 %vm446_vm1, %v768_v26  ;;  %1692 = vmatprep.mubr.msk.f32.mxu1 %vm446_vm1, %v477_v13 }
  0x4b   : > { %1724 = vmatprep.mubr.msk.f32.mxu0 %vm446_vm1, %v1060_v27 }
  0x4d   : > { %1693 = vmatmul.mubr.msk.f32.vlgmr.msra.gmra.mrb[0].mxu1 %vm446_vm1, %v478_v17 }
  0x4e   : > { %1725 = vmatmul.mubr.msk.f32.vlgmr.msra.gmra.mrb[0].mxu0 %vm446_vm1, %v1061_v28  ;;  %1699 = vmatpush3.msra.mxu1 %v1594_v24 }
  0x4f   : > { %1731 = vmatpush3.msra.mxu0 %v1614_v25  ;;  %1695 = vmatprep.mubr.msk.f32.mxu1 %vm446_vm1, %v479_v18 }
  0x50   : > { %1727 = vmatprep.mubr.msk.f32.mxu0 %vm446_vm1, %v1062_v29  ;;  %1746 = vmatprep.subr.mxu1 %v1982_v10 }
  0x51   : > { %1696 = vmatmul.mubr.msk.f32.gmra.mrb[2].mxu1 %vm446_vm1, %v480_v30  ;;  %1738 = vmatprep.subr.mxu0 %v1619_v31 }
  0x52   : > { %1728 = vmatmul.mubr.msk.f32.gmra.mrb[2].mxu0 %vm446_vm1, %v1063_v32  ;;  %1700 = vmatprep.mubr.msk.f32.mxu1 %vm446_vm1, %v763_v33 }
  0x53   : > { %1732 = vmatprep.mubr.msk.f32.mxu0 %vm446_vm1, %v1061_v28 }
  0x55   : > { %1701 = vmatmul.mubr.msk.f32.vlgmr.msra.gmra.mrb[0].mxu1 %vm446_vm1, %v764_v12 }
  0x56   : > { %1733 = vmatmul.mubr.msk.f32.vlgmr.msra.gmra.mrb[0].mxu0 %vm446_vm1, %v1062_v29  ;;  %1747 = vmatpush3.msra.mxu1 %v1982_v10 }
  0x57   : > { %1739 = vmatpush3.msra.mxu0 %v1619_v31  ;;  %1703 = vmatprep.mubr.msk.f32.mxu1 %vm446_vm1, %v765_v15 }
  0x58   : > { %1735 = vmatprep.mubr.msk.f32.mxu0 %vm446_vm1, %v1063_v32 }
  0x59   : > { %1704 = vmatmul.mubr.msk.f32.gmra.mrb[2].mxu1 %vm446_vm1, %v766_v22 }
  0x5a   : > { %1736 = vmatmul.mubr.msk.f32.gmra.mrb[2].mxu0 %vm446_vm1, %v1064_v34  ;;  %1711 = vmatprep.mubr.msk.f32.mxu1 %vm446_vm1, %v766_v22 }
  0x5b   : > { %1740 = vmatprep.mubr.msk.f32.mxu0 %vm446_vm1, %v1062_v29 }
  0x5e   : > { %1741 = vmatmul.mubr.msk.f32.vlgmr.msra.gmra.mrb[0].mxu0 %vm446_vm1, %v1063_v32 }
  0x5f   : > { %1743 = vmatprep.mubr.msk.f32.mxu0 %vm446_vm1, %v1064_v34 }
  0x61   : > { %1712 = vmatmul.mubr.msk.f32.vlgmr.msra.gmra.mrb[2].mxu1 %vm446_vm1, %v767_v23 }
  0x62   : > { %1744 = vmatmul.mubr.msk.f32.gmra.mrb[2].mxu0 %vm446_vm1, %v1065_v35 }
 0x128   : > { %v1702_v36 = vpop.f32.mrb[0].mxu1 }
 0x129   : > { %v849_v37 = vpop.f32.mrb[1].mxu1 }
 0x131   : > { %v1742_v38 = vpop.f32.mrb[0].mxu0 }
 0x132   : > { %v1748_v40 = vadd.f32 %v1742_v38, %v1702_v36  ;;  %v1334_v41 = vpop.f32.mrb[1].mxu0 }
 0x133   : > { %v1749_v42 = vadd.f32 %v1334_v41, %v849_v37 }
 0x134   : > { %v1365_v43 = vadd.f32 %v1748_v40, %v1624_v39  ;;  %v1713_v44 = vpop.f32.mrb[2].mxu1 }
 0x135   : > { %v1364_v45 = vadd.f32 %v1749_v42, %v1624_v39  ;;  %v1745_v46 = vpop.f32.mrb[2].mxu0  ;;  %v953_v47 = vpop.f32.mrb[3].mxu1 }
 0x136   : > { %v1369_v48 = vmax.f32 %v1365_v43, 0.0  ;;  %v1750_v49 = vadd.f32 %v1745_v46, %v1713_v44  ;;  %v1344_v50 = vpop.f32.mrb[3].mxu0 }
 0x137   : > { %v1368_v51 = vmax.f32 %v1364_v45, 0.0  ;;  %v1751_v52 = vadd.f32 %v1344_v50, %v953_v47 }
 0x138   : > { %1373 = vst.msk [vmem:[%s1960_s15 + $0x8] sm:$0xff] %vm446_vm1, %v1369_v48  ;;  %v1367_v53 = vadd.f32 %v1750_v49, %v1624_v39 }
 0x139   : > { %1372 = vst.msk [vmem:[%s1960_s15] sm:$0xff] %vm446_vm1, %v1368_v51  ;;  %v1366_v54 = vadd.f32 %v1751_v52, %v1624_v39 }
 0x13a   : > { %v1371_v55 = vmax.f32 %v1367_v53, 0.0 }
 0x13b   : > { %v1370_v56 = vmax.f32 %v1366_v54, 0.0 }
 0x13c   : > { %1375 = vst.msk [vmem:[%s1960_s15 + $0x18] sm:$0xff] %vm446_vm1, %v1371_v55 }
 0x13d   : > { %1374 = vst.msk [vmem:[%s1960_s15 + $0x10] sm:$0xff] %vm446_vm1, %v1370_v56 }
 0x13e PF: > { %s15_s22 = sadd.s32 1, %s1861_s22   ;;  %s2078_s18 = smov %s1853_s20 }
 0x13f   : > { %p12_p0 = scmp.ge.s32.totalorder %s15_s22, 6   ;;  %s2079_s19 = smov %s1857_s21 }
 0x140   : > { %s2080_s20 = smov %s2083_s23  ;;  %s2081_s21 = smov %s2087_s24 }
 0x141   :  { %14 = sbr.rel (!%p12_p0) target bundleno = 3 (0x3), region = 109 }

// kernel: decoder_forward.7
= control target key start
LH: loop header
LB: loop body
LE: loop exit
PB: predicated region body
PF: predicated region fallthrough
CT: control target
= control target key end

     0   :  { %s3586_s30 = smov 0   ;;  %s3588_s10 = smov 0   ;;  %s3979_s0 = inlined_call_operand.vmem [shape: f32[2,8,8,16], index: 0, kind: input, shape index: {}, may-alias: {0,1,2}]   ;;  %s3980_s1 = inlined_call_operand.vmem [shape: f32[2,8,8,16], index: 1, kind: input, shape index: {}, may-alias: {0,1,2}]   ;;  %s3981_s2 = inlined_call_operand.vmem [shape: f32[2,8,8,16], index: 2, kind: input, shape index: {}, may-alias: {0,1,2}]   ;;  %s3982_s3 = inlined_call_operand.vmem [shape: f32[2,8,8,16], index: 3, kind: input, shape index: {}, may-alias: {3,4,5}]   ;;  %s3983_s4 = inlined_call_operand.vmem [shape: f32[2,8,8,16], index: 4, kind: input, shape index: {}, may-alias: {3,4,5}]   ;;  %s3984_s5 = inlined_call_operand.vmem [shape: f32[2,8,8,16], index: 5, kind: input, shape index: {}, may-alias: {3,4,5}]   ;;  %s3985_s6 = inlined_call_operand.vmem [shape: f32[9,16,8], index: 6, kind: input, shape index: {}]   ;;  %s3986_s7 = inlined_call_operand.vmem [shape: f32[9,16,8], index: 7, kind: input, shape index: {}]   ;;  %s3987_s8 = inlined_call_operand.vmem [shape: f32[1,8], index: 8, kind: input, shape index: {}]   ;;  %s3988_s9 = inlined_call_operand.vmem [shape: f32[2,8,8,8], index: 9, kind: output, shape index: {}]  }
   0x1   :  { %3990 = sst [smem:[#allocation7_spill]] %s3979_s0  ;;  %s3590_s11 = smov 0  }
   0x2   :  { %3991 = sst [smem:[#allocation8_spill]] %s3982_s3  ;;  %s3592_s12 = smov 0  }
   0x3   :  { %s3594_s13 = smov 0  }
   0x4 LB: > { %3992 = sst [smem:[#allocation4_spill]] %s3525_s12  ;;  %s31_s14 = sadd.s32 1, %s3521_s11  ;;  %s3529_s13 = sphi %s3594_s13, %s19_s13   ;;  %s3525_s12 = sphi %s3592_s12, %s4000_s12   ;;  %s3521_s11 = sphi %s3590_s11, %s4002_s11   ;;  %s3517_s10 = sphi %s3588_s10, %s3998_s10   ;;  %s3513_s30 = sphi %s3586_s30, %s4001_s30  }
   0x5   : > { %s38_s15 = sadd.s32 1, %s3525_s12  ;;  %p32_p0 = scmp.ge.s32.totalorder %s31_s14, 2 }
   0x6   : > { %p2859_p1 = scmp.ge.s32.totalorder %s3529_s13, 1  ;;  %p484_p2 = scmp.lt.s32.totalorder %s3529_s13, 5 }
   0x7   : > { %s4004_s14 = smov (%p32_p0, %s31_s14), 0  ;;  %s4006_s15 = smov (!%p32_p0, %s38_s15), %s3525_s12 }
   0x8   : > { %3993 = sst [smem:[#allocation5_spill]] %s4004_s14  ;;  %p485_p3 = pnand %p2859_p1, %p484_p2 }
   0x9   : > { %p40_p4 = scmp.ge.s32.totalorder %s4006_s15, 2  ;;  %vm707_vm0 = vcmask (!%p485_p3), 122880   ;;  %s3621_s16 = sshll.u32 (!%p485_p3), %s3513_s30, 2  ;;  %v3531_v0 = vmov (!%p485_p3), 0.0   ;;  %vm725_vm1 = vcmask (!%p485_p3), 130048  }
   0xa   : > { %488 = sbr.rel (%p485_p3) target bundleno = 664 (0x298), region = 56  ;;  %p600_p5 = scmp.lt.s32.totalorder (!%p485_p3), %s3517_s10, 1  ;;  %708 = vst.msk [vmem:[#allocation2] sm:$0x1] (!%p485_p3), %vm707_vm0, %v3531_v0  ;;  %709 = vst.msk [vmem:[#allocation2 + $0x10] sm:$0x1] (!%p485_p3), %vm707_vm0, %v3531_v0 }
   0xb   : > { %s4008_s15 = smov (%p40_p4, %s4006_s15), 0  ;;  %710 = vst.msk [vmem:[#allocation2 + $0x20] sm:$0x1] (!%p485_p3), %vm707_vm0, %v3531_v0  ;;  %711 = vst.msk [vmem:[#allocation2 + $0x30] sm:$0x1] (!%p485_p3), %vm707_vm0, %v3531_v0  ;;  %p602_p6 = scmp.lt.s32.totalorder (!%p485_p3), %s3621_s16, 7 }
   0xc   : > { %3994 = sst [smem:[#allocation6_spill]] %s4008_s15  ;;  %712 = vst.msk [vmem:[#allocation2 + $0x40] sm:$0x1] (!%p485_p3), %vm707_vm0, %v3531_v0  ;;  %713 = vst.msk [vmem:[#allocation2 + $0x50] sm:$0x1] (!%p485_p3), %vm707_vm0, %v3531_v0  ;;  %s2864_s17 = sadd.s32 (!%p485_p3), 4294967295, %s3621_s16 }
   0xd   : > { %714 = vst.msk [vmem:[#allocation2 + $0x9] sm:$0x1] (!%p485_p3), %vm707_vm0, %v3531_v0  ;;  %715 = vst.msk [vmem:[#allocation2 + $0x19] sm:$0x1] (!%p485_p3), %vm707_vm0, %v3531_v0  ;;  %p611_p7 = scmp.gt.s32.totalorder (!%p485_p3), %s2864_s17, 0  ;;  %p2865_p8 = scmp.lt.s32.totalorder (!%p485_p3), %s2864_s17, 7 }
   0xe   : > { %716 = vst.msk [vmem:[#allocation2 + $0x29] sm:$0x1] (!%p485_p3), %vm707_vm0, %v3531_v0  ;;  %717 = vst.msk [vmem:[#allocation2 + $0x39] sm:$0x1] (!%p485_p3), %vm707_vm0, %v3531_v0  ;;  %s626_s22 = sadd.s32 (!%p485_p3), 4, %s3621_s16  ;;  %s3995_s0 = sld [smem:[#allocation7_spill]] (!%p485_p3) }
   0xf   : > { %718 = vst.msk [vmem:[#allocation2 + $0x49] sm:$0x1] (!%p485_p3), %vm707_vm0, %v3531_v0  ;;  %719 = vst.msk [vmem:[#allocation2 + $0x59] sm:$0x1] (!%p485_p3), %vm707_vm0, %v3531_v0  ;;  %p3658_p9 = scmp.lt.s32.totalorder (!%p485_p3), %s626_s22, 7  ;;  %s3997_s3 = sld [smem:[#allocation8_spill]] (!%p485_p3) }
  0x10   : > { %p2899_p10 = scmp.le.s32.totalorder (!%p485_p3), %s3513_s30, 0 }
  0x11   : > { %s4010_s10 = smov (!%p600_p5, %s3517_s10), 1  ;;  %s4012_s22 = smov (!%p3658_p9, %s626_s22), 7 }
  0x12   : > { %s603_s18 = scalar_select %p602_p6, %s3621_s16, 7 }
  0x13   : > { %s2861_s19 = sshll.u32 %s4010_s10, 3  ;;  %s4016_s22 = smov (!%p3658_p9, %s4012_s22), 7 }
  0x14   : > { %s605_s20 = sadd.s32 %s2861_s19, %s603_s18 }
  0x15   : > { %s2862_s21 = sshll.u32 %s605_s20, 3  ;;  %s634_s20 = sadd.s32 %s2861_s19, %s4016_s22 }
  0x16   : > { %s607_s25 = scalar_lea.vmem %s3995_s0, %s2862_s21  ;;  %s3674_s16 = scalar_lea.vmem %s3997_s3, %s2862_s21 }
  0x17   : > { %s612_s27 = scalar_select %p611_p7, %s2864_s17, 0  ;;  %v720_v1 = vld [vmem:[%s607_s25] sm:$0xff]  ;;  %v721_v2 = vld [vmem:[%s607_s25 + $0x8] sm:$0xff]  ;;  %v722_v3 = vld [vmem:[%s607_s25 + $0x10] sm:$0xff] }
  0x18   : > { %726 = vst.msk [vmem:[#allocation2 + $0x11] sm:$0xff] %vm725_vm1, %v720_v1  ;;  %727 = vst.msk [vmem:[#allocation2 + $0x21] sm:$0xff] %vm725_vm1, %v721_v2  ;;  %v723_v4 = vld [vmem:[%s607_s25 + $0x18] sm:$0xff]  ;;  %s2877_s25 = sshll.u32 %s634_s20, 3  ;;  %s3697_s22 = scalar_lea.vmem %s3988_s9, %s2862_s21 }
  0x19   : > { %728 = vst.msk [vmem:[#allocation2 + $0x31] sm:$0xff] %vm725_vm1, %v722_v3  ;;  %s4014_s27 = smov (!%p2865_p8, %s612_s27), 7  ;;  %729 = vst.msk [vmem:[#allocation2 + $0x41] sm:$0xff] %vm725_vm1, %v723_v4  ;;  %s636_s26 = scalar_lea.vmem %s3981_s2, %s2877_s25 }
  0x1a   : > { %s618_s28 = sadd.s32 %s4014_s27, %s2861_s19  ;;  %733 = sbr.rel (%p2899_p10) target bundleno = 33 (0x21), region = 60 }
  0x1b   : > { %s3676_s18 = sshll.u32 %s618_s28, 3  ;;  %s3692_s28 = scalar_lea.vmem %s3984_s5, %s2877_s25 }
  0x1c   : > { %s620_s17 = scalar_lea.vmem %s3980_s1, %s3676_s18  ;;  %s662_s29 = scalar_lea.vmem %s3983_s4, %s3676_s18 }
  0x1d   : > { %v734_v5 = vld [vmem:[%s620_s17] sm:$0xff] (!%p2899_p10) }
  0x1e   : > { %735 = vst.msk [vmem:[#allocation2 + $0x1] sm:$0xff] (!%p2899_p10), %vm725_vm1, %v734_v5 }
  0x21 PF: > { %p2900_p11 = scmp.ne.s32.totalorder %s3513_s30, 0 }
  0x22   : > { %v3532_v6 = vmov (!%p2900_p11), 0.0  }
  0x23   : > { %739 = sbr.rel (%p2900_p11) target bundleno = 42 (0x2a), region = 64  ;;  %740 = vst.msk [vmem:[#allocation2 + $0x1] sm:$0xff] (!%p2900_p11), %vm725_vm1, %v3532_v6 }
  0x2a PF: > { %p2901_p12 = scmp.ge.s32.totalorder %s3513_s30, 1 }
  0x2b   : > { %v745_v7 = vld [vmem:[%s636_s26] sm:$0xff] (!%p2901_p12) }
  0x2c   : > { %744 = sbr.rel (%p2901_p12) target bundleno = 51 (0x33), region = 68  ;;  %747 = vst.msk [vmem:[#allocation2 + $0x51] sm:$0xff] (!%p2901_p12), %vm725_vm1, %v745_v7 }
  0x33 PF: > { %p2902_p13 = scmp.ne.s32.totalorder %s3513_s30, 1 }
  0x34   : > { %v3533_v8 = vmov (!%p2902_p13), 0.0  }
  0x35   : > { %751 = sbr.rel (%p2902_p13) target bundleno = 60 (0x3c), region = 72  ;;  %753 = vst.msk [vmem:[#allocation2 + $0x51] sm:$0xff] (!%p2902_p13), %vm725_vm1, %v3533_v8 }
  0x3c PF: > { %v2903_v9 = vld [vmem:[%s3985_s6 + $0x30] sm:$0xff]  ;;  %v2904_v10 = vld [vmem:[%s3985_s6 + $0x38] sm:$0xff]  ;;  %1645 = vst.msk [vmem:[#allocation3] sm:$0x1] %vm707_vm0, %v3531_v0  ;;  %1646 = vst.msk [vmem:[#allocation3 + $0x10] sm:$0x1] %vm707_vm0, %v3531_v0 }
  0x3d   : > { %v755_v11 = vld [vmem:[#allocation2 + $0x10] sm:$0xff]  ;;  %1647 = vst.msk [vmem:[#allocation3 + $0x20] sm:$0x1] %vm707_vm0, %v3531_v0  ;;  %1648 = vst.msk [vmem:[#allocation3 + $0x30] sm:$0x1] %vm707_vm0, %v3531_v0  ;;  %v3306_v12 = vpack.c.bf16 %v2904_v10, %v2903_v9  ;;  %v760_v13 = vld [vmem:[%s3985_s6] sm:$0xff] }
  0x3e   : > { %1649 = vst.msk [vmem:[#allocation3 + $0x40] sm:$0x1] %vm707_vm0, %v3531_v0  ;;  %1650 = vst.msk [vmem:[#allocation3 + $0x50] sm:$0x1] %vm707_vm0, %v3531_v0  ;;  %3130 = vmatprep.mubr.msk.f32.mxu1 %vm725_vm1, %v755_v11  ;;  %v761_v14 = vld [vmem:[%s3985_s6 + $0x8] sm:$0xff]  ;;  %v2913_v16 = vld [vmem:[%s3985_s6 + $0x60] sm:$0xff] }
  0x3f   : > { %1651 = vst.msk [vmem:[#allocation3 + $0x9] sm:$0x1] %vm707_vm0, %v3531_v0  ;;  %1652 = vst.msk [vmem:[#allocation3 + $0x19] sm:$0x1] %vm707_vm0, %v3531_v0  ;;  %v3310_v15 = vpack.c.bf16 %v761_v14, %v760_v13  ;;  %3307 = vmatprep.subr.bf16.mxu1 %v3306_v12  ;;  %v2914_v17 = vld [vmem:[%s3985_s6 + $0x68] sm:$0xff]  ;;  %v756_v18 = vld [vmem:[#allocation2 + $0x20] sm:$0xff] }
  0x40   : > { %1653 = vst.msk [vmem:[#allocation3 + $0x29] sm:$0x1] %vm707_vm0, %v3531_v0  ;;  %1654 = vst.msk [vmem:[#allocation3 + $0x39] sm:$0x1] %vm707_vm0, %v3531_v0  ;;  %3309 = vmatpush3.bf16.msra.mxu1 %v3306_v12  ;;  %v757_v19 = vld [vmem:[#allocation2 + $0x30] sm:$0xff]  ;;  %v3314_v20 = vpack.c.bf16 %v2914_v17, %v2913_v16  ;;  %v758_v21 = vld [vmem:[#allocation2 + $0x40] sm:$0xff] }
  0x41   : > { %1655 = vst.msk [vmem:[#allocation3 + $0x49] sm:$0x1] %vm707_vm0, %v3531_v0  ;;  %1656 = vst.msk [vmem:[#allocation3 + $0x59] sm:$0x1] %vm707_vm0, %v3531_v0  ;;  %3311 = vmatprep.subr.bf16.mxu1 %v3310_v15  ;;  %v754_v22 = vld [vmem:[#allocation2] sm:$0xff]  ;;  %v2919_v23 = vld [vmem:[%s3985_s6 + $0x10] sm:$0xff] }
  0x42   : > { %v2920_v24 = vld [vmem:[%s3985_s6 + $0x18] sm:$0xff]  ;;  %v2925_v26 = vld [vmem:[%s3985_s6 + $0x40] sm:$0xff]  ;;  %v2926_v27 = vld [vmem:[%s3985_s6 + $0x48] sm:$0xff] }
  0x43   : > { %3131 = vmatmul.mubr.msk.f32.vlgmr.msra.gmra.mrb[0].mxu1 %vm725_vm1, %v756_v18  ;;  %v3318_v25 = vpack.c.bf16 %v2920_v24, %v2919_v23  ;;  %v3322_v28 = vpack.c.bf16 %v2926_v27, %v2925_v26  ;;  %v759_v29 = vld [vmem:[#allocation2 + $0x50] sm:$0xff]  ;;  %v1045_v30 = vld [vmem:[#allocation2 + $0x1] sm:$0xff]  ;;  %v2932_v32 = vld [vmem:[%s3985_s6 + $0x78] sm:$0xff] }
  0x44   : > { %3313 = vmatpush3.bf16.msra.mxu1 %v3310_v15  ;;  %3133 = vmatprep.mubr.msk.f32.mxu1 %vm725_vm1, %v757_v19  ;;  %v2931_v31 = vld [vmem:[%s3985_s6 + $0x70] sm:$0xff]  ;;  %v1047_v34 = vld [vmem:[#allocation2 + $0x21] sm:$0xff]  ;;  %v2944_v42 = vld [vmem:[%s3985_s6 + $0x58] sm:$0xff] }
  0x45   : > { %3315 = vmatprep.subr.bf16.mxu1 %v3314_v20  ;;  %v1046_v33 = vld [vmem:[#allocation2 + $0x11] sm:$0xff]  ;;  %v3326_v35 = vpack.c.bf16 %v2932_v32, %v2931_v31  ;;  %v2937_v37 = vld [vmem:[%s3985_s6 + $0x20] sm:$0xff]  ;;  %v2938_v38 = vld [vmem:[%s3985_s6 + $0x28] sm:$0xff] }
  0x46   : > { %v1048_v36 = vld [vmem:[#allocation2 + $0x31] sm:$0xff]  ;;  %v3330_v39 = vpack.c.bf16 %v2938_v38, %v2937_v37  ;;  %v1049_v40 = vld [vmem:[#allocation2 + $0x41] sm:$0xff] }
  0x47   : > { %3134 = vmatmul.mubr.msk.f32.gmra.mrb[2].mxu1 %vm725_vm1, %v758_v21  ;;  %v2943_v41 = vld [vmem:[%s3985_s6 + $0x50] sm:$0xff]  ;;  %v1345_v45 = vld [vmem:[#allocation2 + $0x2] sm:$0xff]  ;;  %v1660_v57 = vld [vmem:[%s3674_s16 + $0x18] sm:$0xff] }
  0x48   : > { %3140 = vmatprep.mubr.msk.f32.mxu1 %vm725_vm1, %v754_v22  ;;  %v3334_v43 = vpack.c.bf16 %v2944_v42, %v2943_v41  ;;  %v1050_v44 = vld [vmem:[#allocation2 + $0x51] sm:$0xff]  ;;  %v2949_v46 = vld [vmem:[%s3985_s6 + $0x80] sm:$0xff]  ;;  %v2950_v47 = vld [vmem:[%s3985_s6 + $0x88] sm:$0xff]  ;;  %1665 = vst.msk [vmem:[#allocation3 + $0x41] sm:$0xff] %vm725_vm1, %v1660_v57 }
  0x49   : > { %v1346_v48 = vld [vmem:[#allocation2 + $0x12] sm:$0xff]  ;;  %v1347_v49 = vld [vmem:[#allocation2 + $0x22] sm:$0xff]  ;;  %v3338_v50 = vpack.c.bf16 %v2950_v47, %v2949_v46 }
  0x4a   : > { %v1348_v51 = vld [vmem:[#allocation2 + $0x32] sm:$0xff]  ;;  %v1349_v52 = vld [vmem:[#allocation2 + $0x42] sm:$0xff] }
  0x4b   : > { %3141 = vmatmul.mubr.msk.f32.vlgmr.msra.gmra.mrb[0].mxu1 %vm725_vm1, %v755_v11  ;;  %v1350_v53 = vld [vmem:[#allocation2 + $0x52] sm:$0xff]  ;;  %v1657_v54 = vld [vmem:[%s3674_s16] sm:$0xff]  ;;  %v1658_v55 = vld [vmem:[%s3674_s16 + $0x8] sm:$0xff] }
  0x4c   : > { %3317 = vmatpush3.bf16.msra.mxu1 %v3314_v20  ;;  %3143 = vmatprep.mubr.msk.f32.mxu1 %vm725_vm1, %v756_v18  ;;  %v1659_v56 = vld [vmem:[%s3674_s16 + $0x10] sm:$0xff]  ;;  %1662 = vst.msk [vmem:[#allocation3 + $0x11] sm:$0xff] %vm725_vm1, %v1657_v54  ;;  %1663 = vst.msk [vmem:[#allocation3 + $0x21] sm:$0xff] %vm725_vm1, %v1658_v55  ;;  %v1669_v62 = vld [vmem:[%s662_s29] sm:$0xff] (!%p2899_p10) }
  0x4d   : > { %3319 = vmatprep.subr.bf16.mxu1 %v3318_v25  ;;  %1664 = vst.msk [vmem:[#allocation3 + $0x31] sm:$0xff] %vm725_vm1, %v1659_v56  ;;  %1670 = vst.msk [vmem:[#allocation3 + $0x1] sm:$0xff] (!%p2899_p10), %vm725_vm1, %v1669_v62 }
  0x4f   : > { %3144 = vmatmul.mubr.msk.f32.gmra.mrb[2].mxu1 %vm725_vm1, %v757_v19 }
  0x50   : > { %3150 = vmatprep.mubr.msk.f32.mxu1 %vm725_vm1, %v756_v18 }
  0x53   : > { %3151 = vmatmul.mubr.msk.f32.vlgmr.msra.gmra.mrb[0].mxu1 %vm725_vm1, %v757_v19 }
  0x54   : > { %3321 = vmatpush3.bf16.msra.mxu1 %v3318_v25  ;;  %3153 = vmatprep.mubr.msk.f32.mxu1 %vm725_vm1, %v758_v21 }
  0x55   : > { %3323 = vmatprep.subr.bf16.mxu1 %v3322_v28 }
  0x57   : > { %3154 = vmatmul.mubr.msk.f32.gmra.mrb[2].mxu1 %vm725_vm1, %v759_v29 }
  0x58   : > { %3160 = vmatprep.mubr.msk.f32.mxu1 %vm725_vm1, %v1045_v30 }
  0x5b   : > { %3161 = vmatmul.mubr.msk.f32.vlgmr.msra.gmra.mrb[0].mxu1 %vm725_vm1, %v1046_v33 }
  0x5c   : > { %3325 = vmatpush3.bf16.msra.mxu1 %v3322_v28  ;;  %3163 = vmatprep.mubr.msk.f32.mxu1 %vm725_vm1, %v1047_v34 }
  0x5d   : > { %3327 = vmatprep.subr.bf16.mxu1 %v3326_v35 }
  0x5f   : > { %3164 = vmatmul.mubr.msk.f32.gmra.mrb[2].mxu1 %vm725_vm1, %v1048_v36 }
  0x60   : > { %3170 = vmatprep.mubr.msk.f32.mxu1 %vm725_vm1, %v1046_v33 }
  0x63   : > { %3171 = vmatmul.mubr.msk.f32.vlgmr.msra.gmra.mrb[0].mxu1 %vm725_vm1, %v1047_v34 }
  0x64   : > { %3329 = vmatpush3.bf16.msra.mxu1 %v3326_v35  ;;  %3173 = vmatprep.mubr.msk.f32.mxu1 %vm725_vm1, %v1048_v36 }
  0x65   : > { %3331 = vmatprep.subr.bf16.mxu1 %v3330_v39 }
  0x67   : > { %3174 = vmatmul.mubr.msk.f32.gmra.mrb[2].mxu1 %vm725_vm1, %v1049_v40 }
  0x68   : > { %3180 = vmatprep.mubr.msk.f32.mxu1 %vm725_vm1, %v1047_v34 }
  0x6b   : > { %3181 = vmatmul.mubr.msk.f32.vlgmr.msra.gmra.mrb[0].mxu1 %vm725_vm1, %v1048_v36 }
  0x6c   : > { %3333 = vmatpush3.bf16.msra.mxu1 %v3330_v39  ;;  %3183 = vmatprep.mubr.msk.f32.mxu1 %vm725_vm1, %v1049_v40 }
  0x6d   : > { %3335 = vmatprep.subr.bf16.mxu1 %v3334_v43 }
  0x6f   : > { %3184 = vmatmul.mubr.msk.f32.gmra.mrb[2].mxu1 %vm725_vm1, %v1050_v44 }
  0x70   : > { %3190 = vmatprep.mubr.msk.f32.mxu1 %vm725_vm1, %v1345_v45 }
  0x73   : > { %3191 = vmatmul.mubr.msk.f32.vlgmr.msra.gmra.mrb[0].mxu1 %vm725_vm1, %v1346_v48 }
  0x74   : > { %3337 = vmatpush3.bf16.msra.mxu1 %v3334_v43  ;;  %3193 = vmatprep.mubr.msk.f32.mxu1 %vm725_vm1, %v1347_v49 }
  0x75   : > { %3339 = vmatprep.subr.bf16.mxu1 %v3338_v50 }
  0x77   : > { %3194 = vmatmul.mubr.msk.f32.gmra.mrb[2].mxu1 %vm725_vm1, %v1348_v51 }
  0x78   : > { %3200 = vmatprep.mubr.msk.f32.mxu1 %vm725_vm1, %v1346_v48 }
  0x7b   : > { %3201 = vmatmul.mubr.msk.f32.vlgmr.msra.gmra.mrb[0].mxu1 %vm725_vm1, %v1347_v49 }
  0x7c   : > { %3341 = vmatpush3.bf16.msra.mxu1 %v3338_v50  ;;  %3203 = vmatprep.mubr.msk.f32.mxu1 %vm725_vm1, %v1348_v51 }
  0x7f   : > { %3204 = vmatmul.mubr.msk.f32.gmra.mrb[2].mxu1 %vm725_vm1, %v1349_v52 }
  0x80   : > { %3210 = vmatprep.mubr.msk.f32.mxu1 %vm725_vm1, %v1347_v49 }
  0x83   : > { %3211 = vmatmul.mubr.msk.f32.vlgmr.msra.gmra.mrb[0].mxu1 %vm725_vm1, %v1348_v51 }
  0x84   : > { %3213 = vmatprep.mubr.msk.f32.mxu1 %vm725_vm1, %v1349_v52 }
  0x87   : > { %3214 = vmatmul.mubr.msk.f32.gmra.mrb[2].mxu1 %vm725_vm1, %v1350_v53 }
 0x155   : > { %1668 = sbr.rel (%p2899_p10) target bundleno = 348 (0x15c), region = 76 }
 0x156   : > { %v3837_v58 = vpop.f32.mrb[0].mxu1 }
 0x157   : > { %v3839_v59 = vpop.f32.mrb[1].mxu1 }
 0x15a   : > { %v3841_v60 = vpop.f32.mrb[2].mxu1 }
 0x15b   : > { %v3843_v61 = vpop.f32.mrb[3].mxu1 }
 0x15c PF: > { %1673 = sbr.rel (%p2900_p11) target bundleno = 355 (0x163), region = 80  ;;  %v3534_v63 = vmov (!%p2900_p11), 0.0  }
 0x15d   : > { %1674 = vst.msk [vmem:[#allocation3 + $0x1] sm:$0xff] (!%p2900_p11), %vm725_vm1, %v3534_v63 }
 0x163 PF: > { %1677 = sbr.rel (%p2901_p12) target bundleno = 362 (0x16a), region = 84  ;;  %v1678_v0 = vld [vmem:[%s3692_s28] sm:$0xff] (!%p2901_p12) }
 0x164   : > { %1680 = vst.msk [vmem:[#allocation3 + $0x51] sm:$0xff] (!%p2901_p12), %vm725_vm1, %v1678_v0 }
 0x16a PF: > { %1683 = sbr.rel (%p2902_p13) target bundleno = 369 (0x171), region = 88  ;;  %v3535_v1 = vmov (!%p2902_p13), 0.0  }
 0x16b   : > { %1685 = vst.msk [vmem:[#allocation3 + $0x51] sm:$0xff] (!%p2902_p13), %vm725_vm1, %v3535_v1 }
 0x171 PF: > { %v1692_v2 = vld [vmem:[%s3986_s7] sm:$0xff]  ;;  %v1693_v3 = vld [vmem:[%s3986_s7 + $0x8] sm:$0xff]  ;;  %v2963_v6 = vld [vmem:[%s3986_s7 + $0x30] sm:$0xff]  ;;  %vm2600_vm2 = vcmask 64512  }
 0x172   : > { %v1686_v4 = vld [vmem:[#allocation3] sm:$0xff]  ;;  %v3342_v5 = vpack.c.bf16 %v1693_v3, %v1692_v2  ;;  %v2964_v7 = vld [vmem:[%s3986_s7 + $0x38] sm:$0xff]  ;;  %v2970_v10 = vld [vmem:[%s3986_s7 + $0x68] sm:$0xff] }
 0x173   : > { %3220 = vmatprep.mubr.msk.f32.mxu0 %vm725_vm1, %v1686_v4  ;;  %v3346_v8 = vpack.c.bf16 %v2964_v7, %v2963_v6  ;;  %v2969_v9 = vld [vmem:[%s3986_s7 + $0x60] sm:$0xff]  ;;  %v1687_v11 = vld [vmem:[#allocation3 + $0x10] sm:$0xff]  ;;  %v2976_v16 = vld [vmem:[%s3986_s7 + $0x18] sm:$0xff] }
 0x174   : > { %3343 = vmatprep.subr.bf16.mxu0 %v3342_v5  ;;  %v1688_v12 = vld [vmem:[#allocation3 + $0x20] sm:$0xff]  ;;  %v3350_v13 = vpack.c.bf16 %v2970_v10, %v2969_v9  ;;  %v1689_v14 = vld [vmem:[#allocation3 + $0x30] sm:$0xff]  ;;  %v2982_v20 = vld [vmem:[%s3986_s7 + $0x48] sm:$0xff] }
 0x175   : > { %3345 = vmatpush3.bf16.msra.mxu0 %v3342_v5  ;;  %v2975_v15 = vld [vmem:[%s3986_s7 + $0x10] sm:$0xff]  ;;  %v1690_v18 = vld [vmem:[#allocation3 + $0x40] sm:$0xff]  ;;  %v2988_v25 = vld [vmem:[%s3986_s7 + $0x78] sm:$0xff] }
 0x176   : > { %3347 = vmatprep.subr.bf16.mxu0 %v3346_v8  ;;  %v3354_v17 = vpack.c.bf16 %v2976_v16, %v2975_v15  ;;  %v2981_v19 = vld [vmem:[%s3986_s7 + $0x40] sm:$0xff]  ;;  %v1691_v22 = vld [vmem:[#allocation3 + $0x50] sm:$0xff]  ;;  %v2994_v31 = vld [vmem:[%s3986_s7 + $0x28] sm:$0xff] }
 0x177   : > { %v3358_v21 = vpack.c.bf16 %v2982_v20, %v2981_v19  ;;  %v1985_v23 = vld [vmem:[#allocation3 + $0x1] sm:$0xff]  ;;  %v2987_v24 = vld [vmem:[%s3986_s7 + $0x70] sm:$0xff]  ;;  %v3000_v35 = vld [vmem:[%s3986_s7 + $0x58] sm:$0xff] }
 0x178   : > { %3221 = vmatmul.mubr.msk.f32.vlgmr.msra.gmra.mrb[0].mxu0 %vm725_vm1, %v1687_v11  ;;  %v1986_v26 = vld [vmem:[#allocation3 + $0x11] sm:$0xff]  ;;  %v1987_v27 = vld [vmem:[#allocation3 + $0x21] sm:$0xff]  ;;  %v3362_v28 = vpack.c.bf16 %v2988_v25, %v2987_v24  ;;  %v3011_v48 = vld [vmem:[%s3987_s8] ss:$0 sm:$0xff] }
 0x179   : > { %3349 = vmatpush3.bf16.msra.mxu0 %v3346_v8  ;;  %3223 = vmatprep.mubr.msk.f32.mxu0 %vm725_vm1, %v1688_v12  ;;  %v1988_v29 = vld [vmem:[#allocation3 + $0x31] sm:$0xff]  ;;  %v2993_v30 = vld [vmem:[%s3986_s7 + $0x20] sm:$0xff]  ;;  %v3006_v40 = vld [vmem:[%s3986_s7 + $0x88] sm:$0xff] }
 0x17a   : > { %3351 = vmatprep.subr.bf16.mxu0 %v3350_v13  ;;  %v3366_v32 = vpack.c.bf16 %v2994_v31, %v2993_v30  ;;  %v1989_v33 = vld [vmem:[#allocation3 + $0x41] sm:$0xff]  ;;  %v2999_v34 = vld [vmem:[%s3986_s7 + $0x50] sm:$0xff] }
 0x17b   : > { %v3370_v36 = vpack.c.bf16 %v3000_v35, %v2999_v34  ;;  %v1990_v37 = vld [vmem:[#allocation3 + $0x51] sm:$0xff]  ;;  %v2285_v38 = vld [vmem:[#allocation3 + $0x2] sm:$0xff] }
 0x17c   : > { %3224 = vmatmul.mubr.msk.f32.gmra.mrb[2].mxu0 %vm725_vm1, %v1689_v14  ;;  %v3005_v39 = vld [vmem:[%s3986_s7 + $0x80] sm:$0xff]  ;;  %v2286_v41 = vld [vmem:[#allocation3 + $0x12] sm:$0xff] }
 0x17d   : > { %3230 = vmatprep.mubr.msk.f32.mxu0 %vm725_vm1, %v1687_v11  ;;  %v2287_v42 = vld [vmem:[#allocation3 + $0x22] sm:$0xff]  ;;  %v3374_v43 = vpack.c.bf16 %v3006_v40, %v3005_v39  ;;  %v2288_v44 = vld [vmem:[#allocation3 + $0x32] sm:$0xff] }
 0x17e   : > { %v2289_v45 = vld [vmem:[#allocation3 + $0x42] sm:$0xff]  ;;  %v2290_v46 = vld [vmem:[#allocation3 + $0x52] sm:$0xff] }
 0x180   : > { %3231 = vmatmul.mubr.msk.f32.vlgmr.msra.gmra.mrb[0].mxu0 %vm725_vm1, %v1688_v12 }
 0x181   : > { %3353 = vmatpush3.bf16.msra.mxu0 %v3350_v13  ;;  %3233 = vmatprep.mubr.msk.f32.mxu0 %vm725_vm1, %v1689_v14 }
 0x182   : > { %3355 = vmatprep.subr.bf16.mxu0 %v3354_v17 }
 0x184   : > { %3234 = vmatmul.mubr.msk.f32.gmra.mrb[2].mxu0 %vm725_vm1, %v1690_v18 }
 0x185   : > { %3240 = vmatprep.mubr.msk.f32.mxu0 %vm725_vm1, %v1688_v12 }
 0x188   : > { %3241 = vmatmul.mubr.msk.f32.vlgmr.msra.gmra.mrb[0].mxu0 %vm725_vm1, %v1689_v14 }
 0x189   : > { %3357 = vmatpush3.bf16.msra.mxu0 %v3354_v17  ;;  %3243 = vmatprep.mubr.msk.f32.mxu0 %vm725_vm1, %v1690_v18 }
 0x18a   : > { %3359 = vmatprep.subr.bf16.mxu0 %v3358_v21 }
 0x18c   : > { %3244 = vmatmul.mubr.msk.f32.gmra.mrb[2].mxu0 %vm725_vm1, %v1691_v22 }
 0x18d   : > { %3250 = vmatprep.mubr.msk.f32.mxu0 %vm725_vm1, %v1985_v23 }
 0x190   : > { %3251 = vmatmul.mubr.msk.f32.vlgmr.msra.gmra.mrb[0].mxu0 %vm725_vm1, %v1986_v26 }
 0x191   : > { %3361 = vmatpush3.bf16.msra.mxu0 %v3358_v21  ;;  %3253 = vmatprep.mubr.msk.f32.mxu0 %vm725_vm1, %v1987_v27 }
 0x192   : > { %3363 = vmatprep.subr.bf16.mxu0 %v3362_v28 }
 0x194   : > { %3254 = vmatmul.mubr.msk.f32.gmra.mrb[2].mxu0 %vm725_vm1, %v1988_v29 }
 0x195   : > { %3260 = vmatprep.mubr.msk.f32.mxu0 %vm725_vm1, %v1986_v26 }
 0x198   : > { %3261 = vmatmul.mubr.msk.f32.vlgmr.msra.gmra.mrb[0].mxu0 %vm725_vm1, %v1987_v27 }
 0x199   : > { %3365 = vmatpush3.bf16.msra.mxu0 %v3362_v28  ;;  %3263 = vmatprep.mubr.msk.f32.mxu0 %vm725_vm1, %v1988_v29 }
 0x19a   : > { %3367 = vmatprep.subr.bf16.mxu0 %v3366_v32 }
 0x19c   : > { %3264 = vmatmul.mubr.msk.f32.gmra.mrb[2].mxu0 %vm725_vm1, %v1989_v33 }
 0x19d   : > { %3270 = vmatprep.mubr.msk.f32.mxu0 %vm725_vm1, %v1987_v27 }
 0x1a0   : > { %3271 = vmatmul.mubr.msk.f32.vlgmr.msra.gmra.mrb[0].mxu0 %vm725_vm1, %v1988_v29 }
 0x1a1   : > { %3369 = vmatpush3.bf16.msra.mxu0 %v3366_v32  ;;  %3273 = vmatprep.mubr.msk.f32.mxu0 %vm725_vm1, %v1989_v33 }
 0x1a2   : > { %3371 = vmatprep.subr.bf16.mxu0 %v3370_v36 }
 0x1a4   : > { %3274 = vmatmul.mubr.msk.f32.gmra.mrb[2].mxu0 %vm725_vm1, %v1990_v37 }
 0x1a5   : > { %3280 = vmatprep.mubr.msk.f32.mxu0 %vm725_vm1, %v2285_v38 }
 0x1a8   : > { %3281 = vmatmul.mubr.msk.f32.vlgmr.msra.gmra.mrb[0].mxu0 %vm725_vm1, %v2286_v41 }
 0x1a9   : > { %3373 = vmatpush3.bf16.msra.mxu0 %v3370_v36  ;;  %3283 = vmatprep.mubr.msk.f32.mxu0 %vm725_vm1, %v2287_v42 }
 0x1aa   : > { %3375 = vmatprep.subr.bf16.mxu0 %v3374_v43 }
 0x1ac   : > { %3284 = vmatmul.mubr.msk.f32.gmra.mrb[2].mxu0 %vm725_vm1, %v2288_v44 }
 0x1ad   : > { %3290 = vmatprep.mubr.msk.f32.mxu0 %vm725_vm1, %v2286_v41 }
 0x1b0   : > { %3291 = vmatmul.mubr.msk.f32.vlgmr.msra.gmra.mrb[0].mxu0 %vm725_vm1, %v2287_v42 }
 0x1b1   : > { %3377 = vmatpush3.bf16.msra.mxu0 %v3374_v43  ;;  %3293 = vmatprep.mubr.msk.f32.mxu0 %vm725_vm1, %v2288_v44 }
 0x1b4   : > { %3294 = vmatmul.mubr.msk.f32.gmra.mrb[2].mxu0 %vm725_vm1, %v2289_v45 }
 0x1b5   : > { %3300 = vmatprep.mubr.msk.f32.mxu0 %vm725_vm1, %v2287_v42 }
 0x1b8   : > { %3301 = vmatmul.mubr.msk.f32.vlgmr.msra.gmra.mrb[0].mxu0 %vm725_vm1, %v2288_v44 }
 0x1b9   : > { %3303 = vmatprep.mubr.msk.f32.mxu0 %vm725_vm1, %v2289_v45 }
 0x1bc   : > { %3304 = vmatmul.mubr.msk.f32.gmra.mrb[2].mxu0 %vm725_vm1, %v2290_v46 }
 0x28b   : > { %v3302_v47 = vpop.f32.mrb[0].mxu0 }
 0x28c   : > { %v3378_v49 = vadd.f32 %v3302_v47, %v3837_v58  ;;  %v2562_v50 = vpop.f32.mrb[1].mxu0 }
 0x28d   : > { %v3379_v51 = vadd.f32 %v2562_v50, %v3839_v59 }
 0x28e   : > { %v2593_v52 = vadd.f32 %v3378_v49, %v3011_v48 }
 0x28f   : > { %v2592_v53 = vadd.f32 %v3379_v51, %v3011_v48  ;;  %v3305_v54 = vpop.f32.mrb[2].mxu0 }
 0x290   : > { %v2597_v55 = vmax.f32 %v2593_v52, 0.0  ;;  %v3380_v56 = vadd.f32 %v3305_v54, %v3841_v60  ;;  %v2572_v57 = vpop.f32.mrb[3].mxu0 }
 0x291   : > { %v2596_v62 = vmax.f32 %v2592_v53, 0.0  ;;  %v3381_v63 = vadd.f32 %v2572_v57, %v3843_v61 }
 0x292   : > { %2602 = vst.msk [vmem:[%s3697_s22 + $0x8] sm:$0xff] %vm2600_vm2, %v2597_v55  ;;  %v2595_v0 = vadd.f32 %v3380_v56, %v3011_v48 }
 0x293   : > { %2601 = vst.msk [vmem:[%s3697_s22] sm:$0xff] %vm2600_vm2, %v2596_v62  ;;  %v2594_v58 = vadd.f32 %v3381_v63, %v3011_v48 }
 0x294   : > { %v2599_v1 = vmax.f32 %v2595_v0, 0.0 }
 0x295   : > { %v2598_v2 = vmax.f32 %v2594_v58, 0.0 }
 0x296   : > { %2604 = vst.msk [vmem:[%s3697_s22 + $0x18] sm:$0xff] %vm2600_vm2, %v2599_v1 }
 0x297   : > { %2603 = vst.msk [vmem:[%s3697_s22 + $0x10] sm:$0xff] %vm2600_vm2, %v2598_v2 }
 0x298 PF: > { %s19_s13 = sadd.s32 1, %s3529_s13   ;;  %s3998_s10 = sld [smem:[#allocation4_spill]] }
 0x299   : > { %p16_p0 = scmp.ge.s32.totalorder %s19_s13, 6   ;;  %s3999_s16 = sld [smem:[#allocation5_spill]] }
 0x29a   : > { %s4000_s12 = sld [smem:[#allocation6_spill]]  ;;  %s4001_s30 = smov %s3521_s11 }
 0x29b   :  { %18 = sbr.rel (!%p16_p0) target bundleno = 4 (0x4), region = 164 }
 0x29f   : > { %s4002_s11 = smov %s3999_s16 }

// kernel: decoder_forward.11
= control target key start
LH: loop header
LB: loop body
LE: loop exit
PB: predicated region body
PF: predicated region fallthrough
CT: control target
= control target key end

     0   :  { %s2427_s18 = smov 0   ;;  %s2429_s19 = smov 0   ;;  %s2730_s0 = inlined_call_operand.vmem [shape: f32[2,16,16,4], index: 0, kind: input, shape index: {}, may-alias: {0,1,2}]   ;;  %s2731_s1 = inlined_call_operand.vmem [shape: f32[2,16,16,4], index: 1, kind: input, shape index: {}, may-alias: {0,1,2}]   ;;  %s2732_s2 = inlined_call_operand.vmem [shape: f32[2,16,16,4], index: 2, kind: input, shape index: {}, may-alias: {0,1,2}]   ;;  %s2733_s3 = inlined_call_operand.vmem [shape: f32[9,4,4], index: 3, kind: input, shape index: {}]   ;;  %s2734_s4 = inlined_call_operand.vmem [shape: f32[1,4], index: 4, kind: input, shape index: {}]   ;;  %s2735_s5 = inlined_call_operand.vmem [shape: f32[2,16,16,4], index: 5, kind: output, shape index: {}]  }
   0x1   :  { %s2431_s20 = smov 0   ;;  %s2433_s21 = smov 0  }
   0x2   :  { %s2435_s22 = smov 0  }
   0x3 LB: > { %s27_s23 = sadd.s32 1, %s2384_s20  ;;  %s34_s24 = sadd.s32 1, %s2388_s21  ;;  %s2392_s22 = sphi %s2435_s22, %s15_s22   ;;  %s2388_s21 = sphi %s2433_s21, %s2740_s21   ;;  %s2384_s20 = sphi %s2431_s20, %s2739_s20   ;;  %s2380_s19 = sphi %s2429_s19, %s2738_s19   ;;  %s2376_s18 = sphi %s2427_s18, %s2737_s18  }
   0x4   : > { %p28_p0 = scmp.ge.s32.totalorder %s27_s23, 4  ;;  %p1914_p1 = scmp.ge.s32.totalorder %s2392_s22, 1 }
   0x5   : > { %p299_p2 = scmp.lt.s32.totalorder %s2392_s22, 9 }
   0x6   : > { %s2742_s23 = smov (%p28_p0, %s27_s23), 0  ;;  %s2744_s24 = smov (!%p28_p0, %s34_s24), %s2388_s21 }
   0x7   : > { %p300_p3 = pnand %p1914_p1, %p299_p2  ;;  %p36_p4 = scmp.ge.s32.totalorder %s2744_s24, 2 }
   0x8   : > { %vm439_vm0 = vcmask (!%p300_p3), 24576   ;;  %s2462_s25 = sshll.u32 (!%p300_p3), %s2376_s18, 2  ;;  %p374_p5 = scmp.lt.s32.totalorder (!%p300_p3), %s2380_s19, 1  ;;  %v2394_v0 = vmov (!%p300_p3), 0.0   ;;  %vm461_vm1 = vcmask (!%p300_p3), 31744  }
   0x9   : > { %s2746_s24 = smov (%p36_p4, %s2744_s24), 0  ;;  %303 = sbr.rel (%p300_p3) target bundleno = 352 (0x160), region = 40 }
   0xa   : > { %440 = vst.msk [vmem:[#allocation2] sm:$0x1] (!%p300_p3), %vm439_vm0, %v2394_v0  ;;  %441 = vst.msk [vmem:[#allocation2 + $0x18] sm:$0x1] (!%p300_p3), %vm439_vm0, %v2394_v0  ;;  %p376_p6 = scmp.lt.s32.totalorder (!%p300_p3), %s2462_s25, 15  ;;  %s1920_s26 = sadd.s32 (!%p300_p3), 4294967295, %s2462_s25 }
   0xb   : > { %442 = vst.msk [vmem:[#allocation2 + $0x30] sm:$0x1] (!%p300_p3), %vm439_vm0, %v2394_v0  ;;  %443 = vst.msk [vmem:[#allocation2 + $0x48] sm:$0x1] (!%p300_p3), %vm439_vm0, %v2394_v0  ;;  %p386_p7 = scmp.gt.s32.totalorder (!%p300_p3), %s1920_s26, 0  ;;  %p1921_p8 = scmp.lt.s32.totalorder (!%p300_p3), %s1920_s26, 15 }
   0xc   : > { %444 = vst.msk [vmem:[#allocation2 + $0x60] sm:$0x1] (!%p300_p3), %vm439_vm0, %v2394_v0  ;;  %445 = vst.msk [vmem:[#allocation2 + $0x78] sm:$0x1] (!%p300_p3), %vm439_vm0, %v2394_v0  ;;  %s402_s6 = sadd.s32 (!%p300_p3), 4, %s2462_s25  ;;  %p1940_p10 = scmp.le.s32.totalorder (!%p300_p3), %s2376_s18, 0 }
   0xd   : > { %446 = vst.msk [vmem:[#allocation2 + $0x11] sm:$0x1] (!%p300_p3), %vm439_vm0, %v2394_v0  ;;  %447 = vst.msk [vmem:[#allocation2 + $0x29] sm:$0x1] (!%p300_p3), %vm439_vm0, %v2394_v0  ;;  %p2475_p9 = scmp.lt.s32.totalorder (!%p300_p3), %s402_s6, 15 }
   0xe   : > { %448 = vst.msk [vmem:[#allocation2 + $0x41] sm:$0x1] (!%p300_p3), %vm439_vm0, %v2394_v0  ;;  %449 = vst.msk [vmem:[#allocation2 + $0x59] sm:$0x1] (!%p300_p3), %vm439_vm0, %v2394_v0 }
   0xf   : > { %450 = vst.msk [vmem:[#allocation2 + $0x71] sm:$0x1] (!%p300_p3), %vm439_vm0, %v2394_v0  ;;  %451 = vst.msk [vmem:[#allocation2 + $0x89] sm:$0x1] (!%p300_p3), %vm439_vm0, %v2394_v0 }
  0x10   : > { %s2748_s19 = smov (!%p374_p5, %s2380_s19), 1  ;;  %s2750_s6 = smov (!%p2475_p9, %s402_s6), 15 }
  0x11   : > { %s377_s27 = scalar_select %p376_p6, %s2462_s25, 15 }
  0x12   : > { %s2471_s28 = sshll.u32 %s2748_s19, 5  ;;  %s2754_s6 = smov (!%p2475_p9, %s2750_s6), 15 }
  0x13   : > { %s1916_s29 = sshll.u32 %s377_s27, 1  ;;  %s1933_s19 = sshll.u32 %s2754_s6, 1 }
  0x14   : > { %s380_s30 = sadd.s32 %s2471_s28, %s1916_s29 }
  0x15   : > { %s1918_s7 = sshll.u32 %s380_s30, 3 }
  0x16   : > { %s382_s11 = scalar_lea.vmem %s2730_s0, %s1918_s7  ;;  %s2485_s14 = scalar_lea.vmem %s2735_s5, %s1918_s7 }
  0x17   : > { %s387_s15 = scalar_select %p386_p7, %s1920_s26, 0  ;;  %v452_v1 = vld [vmem:[%s382_s11] sm:$0xff]  ;;  %v453_v2 = vld [vmem:[%s382_s11 + $0x8] sm:$0xff]  ;;  %v454_v3 = vld [vmem:[%s382_s11 + $0x10] sm:$0xff] }
  0x18   : > { %462 = vst.msk [vmem:[#allocation2 + $0x19] sm:$0xff] %vm461_vm1, %v452_v1  ;;  %463 = vst.msk [vmem:[#allocation2 + $0x21] sm:$0xff] %vm461_vm1, %v453_v2  ;;  %v455_v4 = vld [vmem:[%s382_s11 + $0x18] sm:$0xff]  ;;  %v456_v5 = vld [vmem:[%s382_s11 + $0x20] sm:$0xff]  ;;  %s411_s26 = sadd.s32 %s1933_s19, %s2471_s28  ;;  %473 = sbr.rel (%p1940_p10) target bundleno = 32 (0x20), region = 44 }
  0x19   : > { %464 = vst.msk [vmem:[#allocation2 + $0x31] sm:$0xff] %vm461_vm1, %v454_v3  ;;  %v457_v6 = vld [vmem:[%s382_s11 + $0x28] sm:$0xff]  ;;  %s2752_s15 = smov (!%p1921_p8, %s387_s15), 15  ;;  %465 = vst.msk [vmem:[#allocation2 + $0x39] sm:$0xff] %vm461_vm1, %v455_v4  ;;  %v458_v7 = vld [vmem:[%s382_s11 + $0x30] sm:$0xff]  ;;  %s1935_s7 = sshll.u32 %s411_s26, 3 }
  0x1a   : > { %466 = vst.msk [vmem:[#allocation2 + $0x49] sm:$0xff] %vm461_vm1, %v456_v5  ;;  %467 = vst.msk [vmem:[#allocation2 + $0x51] sm:$0xff] %vm461_vm1, %v457_v6  ;;  %v459_v8 = vld [vmem:[%s382_s11 + $0x38] sm:$0xff]  ;;  %s1926_s16 = sshll.u32 %s2752_s15, 1  ;;  %s413_s11 = scalar_lea.vmem %s2732_s2, %s1935_s7 }
  0x1b   : > { %468 = vst.msk [vmem:[#allocation2 + $0x61] sm:$0xff] %vm461_vm1, %v458_v7  ;;  %469 = vst.msk [vmem:[#allocation2 + $0x69] sm:$0xff] %vm461_vm1, %v459_v8  ;;  %s394_s17 = sadd.s32 %s1926_s16, %s2471_s28 }
  0x1c   : > { %s1928_s25 = sshll.u32 %s394_s17, 3 }
  0x1d   : > { %s396_s30 = scalar_lea.vmem %s2731_s1, %s1928_s25 }
  0x1e   : > { %v474_v9 = vld [vmem:[%s396_s30] sm:$0xff] (!%p1940_p10)  ;;  %v475_v10 = vld [vmem:[%s396_s30 + $0x8] sm:$0xff] (!%p1940_p10) }
  0x1f   : > { %476 = vst.msk [vmem:[#allocation2 + $0x1] sm:$0xff] %vm461_vm1, %v474_v9  ;;  %477 = vst.msk [vmem:[#allocation2 + $0x9] sm:$0xff] %vm461_vm1, %v475_v10 }
  0x20 PF: > { %p1941_p11 = scmp.ne.s32.totalorder %s2376_s18, 0 }
  0x21   : > { %v2395_v11 = vmov (!%p1941_p11), 0.0  }
  0x22   : > { %481 = sbr.rel (%p1941_p11) target bundleno = 41 (0x29), region = 48  ;;  %482 = vst.msk [vmem:[#allocation2 + $0x1] sm:$0xff] (!%p1941_p11), %vm461_vm1, %v2395_v11  ;;  %483 = vst.msk [vmem:[#allocation2 + $0x9] sm:$0xff] (!%p1941_p11), %vm461_vm1, %v2395_v11 }
  0x29 PF: > { %p1942_p12 = scmp.ge.s32.totalorder %s2376_s18, 3 }
  0x2a   : > { %v488_v12 = vld [vmem:[%s413_s11] sm:$0xff] (!%p1942_p12)  ;;  %v489_v13 = vld [vmem:[%s413_s11 + $0x8] sm:$0xff] (!%p1942_p12) }
  0x2b   : > { %487 = sbr.rel (%p1942_p12) target bundleno = 50 (0x32), region = 52  ;;  %491 = vst.msk [vmem:[#allocation2 + $0x79] sm:$0xff] (!%p1942_p12), %vm461_vm1, %v488_v12  ;;  %492 = vst.msk [vmem:[#allocation2 + $0x81] sm:$0xff] (!%p1942_p12), %vm461_vm1, %v489_v13 }
  0x32 PF: > { %p1943_p13 = scmp.ne.s32.totalorder %s2376_s18, 3 }
  0x33   : > { %v2396_v14 = vmov (!%p1943_p13), 0.0  }
  0x34   : > { %496 = sbr.rel (%p1943_p13) target bundleno = 59 (0x3b), region = 56  ;;  %498 = vst.msk [vmem:[#allocation2 + $0x79] sm:$0xff] (!%p1943_p13), %vm461_vm1, %v2396_v14  ;;  %499 = vst.msk [vmem:[#allocation2 + $0x81] sm:$0xff] (!%p1943_p13), %vm461_vm1, %v2396_v14 }
  0x3b PF: > { %v1944_v15 = vld [vmem:[%s2733_s3 + $0xc] sm:$0xf]  ;;  %vm539_vm2 = vcmask 1043456   ;;  %v2526_v16 = vld [vmem:[%s2733_s3 + $0x10] sm:$0xf]  ;;  %v502_v17 = vld [vmem:[#allocation2 + $0x18] sm:$0xff] }
  0x3c   : > { %2119 = vmatprep.subr.msk.mxu1 %vm539_vm2, %v1944_v15  ;;  %2175 = vmatprep.subr.msk.mxu0 %vm539_vm2, %v2526_v16  ;;  %v2531_v18 = vld [vmem:[#allocation2 + $0x19] sm:$0xff]  ;;  %v2538_v21 = vld [vmem:[#allocation2 + $0x21] sm:$0xff]  ;;  %v2549_v23 = vld [vmem:[#allocation2 + $0x30] sm:$0xff] }
  0x3d   : > { %v503_v19 = vld [vmem:[#allocation2 + $0x20] sm:$0xff]  ;;  %2120 = vmatpush3.msk.msra.mxu1 %vm539_vm2, %v1944_v15  ;;  %2121 = vmatprep.mubr.msk.f32.mxu1 %vm461_vm1, %v502_v17  ;;  %v1993_v22 = vld [vmem:[%s2733_s3 + $0x1c] sm:$0xf]  ;;  %v2551_v24 = vld [vmem:[#allocation2 + $0x31] sm:$0xff] }
  0x3e   : > { %v512_v20 = vld [vmem:[%s2733_s3] sm:$0xf]  ;;  %2176 = vmatpush3.msk.msra.mxu0 %vm539_vm2, %v2526_v16  ;;  %2177 = vmatprep.mubr.msk.f32.mxu0 %vm461_vm1, %v2531_v18  ;;  %v2556_v25 = vld [vmem:[#allocation2 + $0x38] sm:$0xff]  ;;  %v2003_v26 = vld [vmem:[%s2733_s3 + $0x8] sm:$0xf] }
  0x3f   : > { %2122 = vmatmul.mubr.msk.f32.vlgmr.msra.gmra.mrb[0].mxu1 %vm461_vm1, %v503_v19  ;;  %2133 = vmatprep.subr.msk.mxu1 %vm539_vm2, %v512_v20  ;;  %v2563_v27 = vld [vmem:[#allocation2 + $0x39] sm:$0xff]  ;;  %v2565_v28 = vld [vmem:[#allocation2 + $0x48] sm:$0xff]  ;;  %v507_v30 = vld [vmem:[#allocation2 + $0x50] sm:$0xff] }
  0x40   : > { %2178 = vmatmul.mubr.msk.f32.vlgmr.msra.gmra.mrb[0].mxu0 %vm461_vm1, %v2538_v21  ;;  %2189 = vmatprep.subr.msk.mxu0 %vm539_vm2, %v1993_v22  ;;  %v1963_v29 = vld [vmem:[%s2733_s3 + $0x18] sm:$0xf]  ;;  %v508_v31 = vld [vmem:[#allocation2 + $0x60] sm:$0xff]  ;;  %v2584_v32 = vld [vmem:[#allocation2 + $0x49] sm:$0xff] }
  0x41   : > { %2134 = vmatpush3.msk.msra.mxu1 %vm539_vm2, %v512_v20  ;;  %2190 = vmatpush3.msk.msra.mxu0 %vm539_vm2, %v1993_v22  ;;  %v2013_v33 = vld [vmem:[%s2733_s3 + $0x14] sm:$0xf]  ;;  %v509_v34 = vld [vmem:[#allocation2 + $0x68] sm:$0xff]  ;;  %v500_v36 = vld [vmem:[#allocation2] sm:$0xff] }
  0x42   : > { %2124 = vmatprep.mubr.msk.f32.mxu1 %vm461_vm1, %v2549_v23  ;;  %2180 = vmatprep.mubr.msk.f32.mxu0 %vm461_vm1, %v2551_v24  ;;  %v2596_v35 = vld [vmem:[#allocation2 + $0x51] sm:$0xff]  ;;  %v2598_v37 = vld [vmem:[#allocation2 + $0x61] sm:$0xff]  ;;  %v2607_v39 = vld [vmem:[#allocation2 + $0x69] sm:$0xff] }
  0x43   : > { %2125 = vmatmul.mubr.msk.f32.gmra.mrb[2].mxu1 %vm461_vm1, %v2556_v25  ;;  %2203 = vmatprep.subr.msk.mxu0 %vm539_vm2, %v2003_v26  ;;  %v501_v38 = vld [vmem:[#allocation2 + $0x8] sm:$0xff]  ;;  %v896_v40 = vld [vmem:[#allocation2 + $0x79] sm:$0xff]  ;;  %v1973_v41 = vld [vmem:[%s2733_s3 + $0x4] sm:$0xf] }
  0x44   : > { %2181 = vmatmul.mubr.msk.f32.gmra.mrb[2].mxu0 %vm461_vm1, %v2563_v27  ;;  %2127 = vmatprep.mubr.msk.f32.mxu1 %vm461_vm1, %v2565_v28  ;;  %v897_v42 = vld [vmem:[#allocation2 + $0x81] sm:$0xff]  ;;  %v1289_v44 = vld [vmem:[#allocation2 + $0xa] sm:$0xff]  ;;  %v1292_v48 = vld [vmem:[#allocation2 + $0x32] sm:$0xff] }
  0x45   : > { %2191 = vmatprep.mubr.msk.f32.mxu0 %vm461_vm1, %v2551_v24  ;;  %2147 = vmatprep.subr.msk.mxu1 %vm539_vm2, %v1963_v29  ;;  %v1288_v43 = vld [vmem:[#allocation2 + $0x2] sm:$0xff]  ;;  %v1290_v45 = vld [vmem:[#allocation2 + $0x1a] sm:$0xff]  ;;  %v1294_v50 = vld [vmem:[#allocation2 + $0x4a] sm:$0xff] }
  0x46   : > { %v2023_v46 = vld [vmem:[%s2733_s3 + $0x20] sm:$0xf]  ;;  %v1295_v51 = vld [vmem:[#allocation2 + $0x52] sm:$0xff]  ;;  %v887_v55 = vld [vmem:[#allocation2 + $0x9] sm:$0xff] }
  0x47   : > { %2128 = vmatmul.mubr.msk.f32.gmra.mrb[4].mxu1 %vm461_vm1, %v507_v30  ;;  %v1291_v47 = vld [vmem:[#allocation2 + $0x22] sm:$0xff]  ;;  %v1293_v49 = vld [vmem:[#allocation2 + $0x3a] sm:$0xff]  ;;  %v1297_v57 = vld [vmem:[#allocation2 + $0x6a] sm:$0xff] }
  0x48   : > { %2192 = vmatmul.mubr.msk.f32.vlgmr.msra.gmra.mrb[0].mxu0 %vm461_vm1, %v2563_v27  ;;  %2130 = vmatprep.mubr.msk.f32.mxu1 %vm461_vm1, %v508_v31  ;;  %v510_v52 = vld [vmem:[#allocation2 + $0x78] sm:$0xff]  ;;  %v511_v53 = vld [vmem:[#allocation2 + $0x80] sm:$0xff] }
  0x49   : > { %2204 = vmatpush3.msk.msra.mxu0 %vm539_vm2, %v2003_v26  ;;  %2194 = vmatprep.mubr.msk.f32.mxu0 %vm461_vm1, %v2584_v32  ;;  %v886_v54 = vld [vmem:[#allocation2 + $0x1] sm:$0xff]  ;;  %v2033_v1 = vld [vmem:[%s2734_s4] ss:$0 sm:$0xff] }
  0x4a   : > { %2217 = vmatprep.subr.msk.mxu0 %vm539_vm2, %v2013_v33  ;;  %v1296_v56 = vld [vmem:[#allocation2 + $0x62] sm:$0xff]  ;;  %v1298_v58 = vld [vmem:[#allocation2 + $0x7a] sm:$0xff] }
  0x4b   : > { %2131 = vmatmul.mubr.msk.f32.gmra.mrb[6].mxu1 %vm461_vm1, %v509_v34  ;;  %v1299_v59 = vld [vmem:[#allocation2 + $0x82] sm:$0xff] }
  0x4c   : > { %2195 = vmatmul.mubr.msk.f32.gmra.mrb[2].mxu0 %vm461_vm1, %v2596_v35  ;;  %2135 = vmatprep.mubr.msk.f32.mxu1 %vm461_vm1, %v500_v36 }
  0x4d   : > { %2197 = vmatprep.mubr.msk.f32.mxu0 %vm461_vm1, %v2598_v37 }
  0x4f   : > { %2136 = vmatmul.mubr.msk.f32.vlgmr.msra.gmra.mrb[0].mxu1 %vm461_vm1, %v501_v38 }
  0x50   : > { %2198 = vmatmul.mubr.msk.f32.gmra.mrb[4].mxu0 %vm461_vm1, %v2607_v39  ;;  %2148 = vmatpush3.msk.msra.mxu1 %vm539_vm2, %v1963_v29 }
  0x51   : > { %2138 = vmatprep.mubr.msk.f32.mxu1 %vm461_vm1, %v502_v17  ;;  %2200 = vmatprep.mubr.msk.f32.mxu0 %vm461_vm1, %v896_v40 }
  0x52   : > { %2161 = vmatprep.subr.msk.mxu1 %vm539_vm2, %v1973_v41 }
  0x53   : > { %2139 = vmatmul.mubr.msk.f32.gmra.mrb[2].mxu1 %vm461_vm1, %v503_v19 }
  0x54   : > { %2201 = vmatmul.mubr.msk.f32.gmra.mrb[6].mxu0 %vm461_vm1, %v897_v42  ;;  %2141 = vmatprep.mubr.msk.f32.mxu1 %vm461_vm1, %v2549_v23 }
  0x55   : > { %2205 = vmatprep.mubr.msk.f32.mxu0 %vm461_vm1, %v1288_v43 }
  0x57   : > { %2142 = vmatmul.mubr.msk.f32.gmra.mrb[4].mxu1 %vm461_vm1, %v2556_v25 }
  0x58   : > { %2206 = vmatmul.mubr.msk.f32.vlgmr.msra.gmra.mrb[0].mxu0 %vm461_vm1, %v1289_v44  ;;  %2144 = vmatprep.mubr.msk.f32.mxu1 %vm461_vm1, %v2565_v28 }
  0x59   : > { %2218 = vmatpush3.msk.msra.mxu0 %vm539_vm2, %v2013_v33  ;;  %2208 = vmatprep.mubr.msk.f32.mxu0 %vm461_vm1, %v1290_v45 }
  0x5a   : > { %2231 = vmatprep.subr.msk.mxu0 %vm539_vm2, %v2023_v46 }
  0x5b   : > { %2145 = vmatmul.mubr.msk.f32.gmra.mrb[6].mxu1 %vm461_vm1, %v507_v30 }
  0x5c   : > { %2209 = vmatmul.mubr.msk.f32.gmra.mrb[2].mxu0 %vm461_vm1, %v1291_v47  ;;  %2149 = vmatprep.mubr.msk.f32.mxu1 %vm461_vm1, %v2549_v23 }
  0x5d   : > { %2211 = vmatprep.mubr.msk.f32.mxu0 %vm461_vm1, %v1292_v48 }
  0x5f   : > { %2150 = vmatmul.mubr.msk.f32.vlgmr.msra.gmra.mrb[0].mxu1 %vm461_vm1, %v2556_v25 }
  0x60   : > { %2212 = vmatmul.mubr.msk.f32.gmra.mrb[4].mxu0 %vm461_vm1, %v1293_v49  ;;  %2162 = vmatpush3.msk.msra.mxu1 %vm539_vm2, %v1973_v41 }
  0x61   : > { %2152 = vmatprep.mubr.msk.f32.mxu1 %vm461_vm1, %v2565_v28  ;;  %2214 = vmatprep.mubr.msk.f32.mxu0 %vm461_vm1, %v1294_v50 }
  0x62   : > { %2245 = vmatprep.subr.msk.mxu1 %vm539_vm2, %v2526_v16 }
  0x63   : > { %2153 = vmatmul.mubr.msk.f32.gmra.mrb[2].mxu1 %vm461_vm1, %v507_v30 }
  0x64   : > { %2215 = vmatmul.mubr.msk.f32.gmra.mrb[6].mxu0 %vm461_vm1, %v1295_v51  ;;  %2155 = vmatprep.mubr.msk.f32.mxu1 %vm461_vm1, %v508_v31 }
  0x65   : > { %2219 = vmatprep.mubr.msk.f32.mxu0 %vm461_vm1, %v1290_v45 }
  0x67   : > { %2156 = vmatmul.mubr.msk.f32.gmra.mrb[4].mxu1 %vm461_vm1, %v509_v34 }
  0x68   : > { %2220 = vmatmul.mubr.msk.f32.vlgmr.msra.gmra.mrb[0].mxu0 %vm461_vm1, %v1291_v47  ;;  %2158 = vmatprep.mubr.msk.f32.mxu1 %vm461_vm1, %v510_v52 }
  0x69   : > { %2232 = vmatpush3.msk.msra.mxu0 %vm539_vm2, %v2023_v46  ;;  %2222 = vmatprep.mubr.msk.f32.mxu0 %vm461_vm1, %v1292_v48 }
  0x6b   : > { %2159 = vmatmul.mubr.msk.f32.gmra.mrb[6].mxu1 %vm461_vm1, %v511_v53 }
  0x6c   : > { %2223 = vmatmul.mubr.msk.f32.gmra.mrb[2].mxu0 %vm461_vm1, %v1293_v49  ;;  %2163 = vmatprep.mubr.msk.f32.mxu1 %vm461_vm1, %v886_v54 }
  0x6d   : > { %2225 = vmatprep.mubr.msk.f32.mxu0 %vm461_vm1, %v1294_v50 }
  0x6f   : > { %2164 = vmatmul.mubr.msk.f32.vlgmr.msra.gmra.mrb[0].mxu1 %vm461_vm1, %v887_v55 }
  0x70   : > { %2226 = vmatmul.mubr.msk.f32.gmra.mrb[4].mxu0 %vm461_vm1, %v1295_v51  ;;  %2246 = vmatpush3.msk.msra.mxu1 %vm539_vm2, %v2526_v16 }
  0x71   : > { %2166 = vmatprep.mubr.msk.f32.mxu1 %vm461_vm1, %v2531_v18  ;;  %2228 = vmatprep.mubr.msk.f32.mxu0 %vm461_vm1, %v1296_v56 }
  0x73   : > { %2167 = vmatmul.mubr.msk.f32.gmra.mrb[2].mxu1 %vm461_vm1, %v2538_v21 }
  0x74   : > { %2229 = vmatmul.mubr.msk.f32.gmra.mrb[6].mxu0 %vm461_vm1, %v1297_v57  ;;  %2169 = vmatprep.mubr.msk.f32.mxu1 %vm461_vm1, %v2551_v24 }
  0x75   : > { %2233 = vmatprep.mubr.msk.f32.mxu0 %vm461_vm1, %v1292_v48 }
  0x77   : > { %2170 = vmatmul.mubr.msk.f32.gmra.mrb[4].mxu1 %vm461_vm1, %v2563_v27 }
  0x78   : > { %2234 = vmatmul.mubr.msk.f32.vlgmr.msra.gmra.mrb[0].mxu0 %vm461_vm1, %v1293_v49  ;;  %2172 = vmatprep.mubr.msk.f32.mxu1 %vm461_vm1, %v2584_v32 }
  0x79   : > { %2236 = vmatprep.mubr.msk.f32.mxu0 %vm461_vm1, %v1294_v50 }
  0x7b   : > { %2173 = vmatmul.mubr.msk.f32.gmra.mrb[6].mxu1 %vm461_vm1, %v2596_v35 }
  0x7c   : > { %2237 = vmatmul.mubr.msk.f32.gmra.mrb[2].mxu0 %vm461_vm1, %v1295_v51  ;;  %2183 = vmatprep.mubr.msk.f32.mxu1 %vm461_vm1, %v2584_v32 }
  0x7d   : > { %2239 = vmatprep.mubr.msk.f32.mxu0 %vm461_vm1, %v1296_v56 }
  0x7f   : > { %2184 = vmatmul.mubr.msk.f32.vlgmr.msra.gmra.mrb[4].mxu1 %vm461_vm1, %v2596_v35 }
  0x80   : > { %2240 = vmatmul.mubr.msk.f32.gmra.mrb[4].mxu0 %vm461_vm1, %v1297_v57  ;;  %2186 = vmatprep.mubr.msk.f32.mxu1 %vm461_vm1, %v2598_v37 }
  0x81   : > { %2242 = vmatprep.mubr.msk.f32.mxu0 %vm461_vm1, %v1298_v58 }
  0x83   : > { %2187 = vmatmul.mubr.msk.f32.gmra.mrb[6].mxu1 %vm461_vm1, %v2607_v39 }
  0x84   : > { %2243 = vmatmul.mubr.msk.f32.gmra.mrb[6].mxu0 %vm461_vm1, %v1299_v59 }
 0x142   : > { %v2165_v60 = vpop.f32.mrb[0].mxu1 }
 0x143   : > { %v993_v61 = vpop.f32.mrb[1].mxu1 }
 0x146   : > { %v2168_v62 = vpop.f32.mrb[2].mxu1 }
 0x147   : > { %v1003_v63 = vpop.f32.mrb[3].mxu1 }
 0x14b   : > { %v2235_v0 = vpop.f32.mrb[0].mxu0 }
 0x14c   : > { %v2247_v2 = vadd.f32 %v2235_v0, %v2165_v60  ;;  %v1643_v3 = vpop.f32.mrb[1].mxu0 }
 0x14d   : > { %v2248_v4 = vadd.f32 %v1643_v3, %v993_v61 }
 0x14e   : > { %v1698_v5 = vadd.f32 %v2247_v2, %v2033_v1 }
 0x14f   : > { %v1697_v6 = vadd.f32 %v2248_v4, %v2033_v1  ;;  %v2238_v7 = vpop.f32.mrb[2].mxu0 }
 0x150   : > { %v1706_v8 = vmax.f32 %v1698_v5, 0.0  ;;  %v2249_v9 = vadd.f32 %v2238_v7, %v2168_v62  ;;  %v1653_v10 = vpop.f32.mrb[3].mxu0 }
 0x151   : > { %v1705_v11 = vmax.f32 %v1697_v6, 0.0  ;;  %v2250_v12 = vadd.f32 %v1653_v10, %v1003_v63 }
 0x152   : > { %1714 = vst.msk [vmem:[%s2485_s14 + $0x8] sm:$0xff] %vm461_vm1, %v1706_v8  ;;  %v1700_v13 = vadd.f32 %v2249_v9, %v2033_v1  ;;  %v2185_v14 = vpop.f32.mrb[4].mxu1 }
 0x153   : > { %1713 = vst.msk [vmem:[%s2485_s14] sm:$0xff] %vm461_vm1, %v1705_v11  ;;  %v1699_v15 = vadd.f32 %v2250_v12, %v2033_v1  ;;  %v2241_v16 = vpop.f32.mrb[4].mxu0  ;;  %v1137_v17 = vpop.f32.mrb[5].mxu1 }
 0x154   : > { %v1708_v18 = vmax.f32 %v1700_v13, 0.0  ;;  %v2251_v19 = vadd.f32 %v2241_v16, %v2185_v14  ;;  %v1663_v20 = vpop.f32.mrb[5].mxu0 }
 0x155   : > { %v1707_v21 = vmax.f32 %v1699_v15, 0.0  ;;  %v2252_v22 = vadd.f32 %v1663_v20, %v1137_v17 }
 0x156   : > { %1716 = vst.msk [vmem:[%s2485_s14 + $0x18] sm:$0xff] %vm461_vm1, %v1708_v18  ;;  %v1702_v23 = vadd.f32 %v2251_v19, %v2033_v1  ;;  %v2188_v24 = vpop.f32.mrb[6].mxu1 }
 0x157   : > { %1715 = vst.msk [vmem:[%s2485_s14 + $0x10] sm:$0xff] %vm461_vm1, %v1707_v21  ;;  %v1701_v25 = vadd.f32 %v2252_v22, %v2033_v1  ;;  %v2244_v26 = vpop.f32.mrb[6].mxu0  ;;  %v1147_v27 = vpop.f32.mrb[7].mxu1 }
 0x158   : > { %v1710_v28 = vmax.f32 %v1702_v23, 0.0  ;;  %v2253_v29 = vadd.f32 %v2244_v26, %v2188_v24  ;;  %v1673_v30 = vpop.f32.mrb[7].mxu0 }
 0x159   : > { %v1709_v31 = vmax.f32 %v1701_v25, 0.0  ;;  %v2254_v32 = vadd.f32 %v1673_v30, %v1147_v27 }
 0x15a   : > { %1718 = vst.msk [vmem:[%s2485_s14 + $0x28] sm:$0xff] %vm461_vm1, %v1710_v28  ;;  %v1704_v33 = vadd.f32 %v2253_v29, %v2033_v1 }
 0x15b   : > { %1717 = vst.msk [vmem:[%s2485_s14 + $0x20] sm:$0xff] %vm461_vm1, %v1709_v31  ;;  %v1703_v34 = vadd.f32 %v2254_v32, %v2033_v1 }
 0x15c   : > { %v1712_v35 = vmax.f32 %v1704_v33, 0.0 }
 0x15d   : > { %v1711_v36 = vmax.f32 %v1703_v34, 0.0 }
 0x15e   : > { %1720 = vst.msk [vmem:[%s2485_s14 + $0x38] sm:$0xff] %vm461_vm1, %v1712_v35 }
 0x15f   : > { %1719 = vst.msk [vmem:[%s2485_s14 + $0x30] sm:$0xff] %vm461_vm1, %v1711_v36 }
 0x160 PF: > { %s15_s22 = sadd.s32 1, %s2392_s22   ;;  %s2737_s18 = smov %s2384_s20 }
 0x161   : > { %p12_p0 = scmp.ge.s32.totalorder %s15_s22, 10   ;;  %s2738_s19 = smov %s2388_s21 }
 0x162   : > { %s2739_s20 = smov %s2742_s23  ;;  %s2740_s21 = smov %s2746_s24 }
 0x163   :  { %14 = sbr.rel (!%p12_p0) target bundleno = 3 (0x3), region = 109 }

// kernel: decoder_forward.10
= control target key start
LH: loop header
LB: loop body
LE: loop exit
PB: predicated region body
PF: predicated region fallthrough
CT: control target
= control target key end

     0   :  { %s4405_s30 = smov 0   ;;  %s4407_s10 = smov 0   ;;  %s4861_s0 = inlined_call_operand.vmem [shape: f32[2,16,16,8], index: 0, kind: input, shape index: {}, may-alias: {0,1,2}]   ;;  %s4862_s1 = inlined_call_operand.vmem [shape: f32[2,16,16,8], index: 1, kind: input, shape index: {}, may-alias: {0,1,2}]   ;;  %s4863_s2 = inlined_call_operand.vmem [shape: f32[2,16,16,8], index: 2, kind: input, shape index: {}, may-alias: {0,1,2}]   ;;  %s4864_s3 = inlined_call_operand.vmem [shape: f32[2,16,16,8], index: 3, kind: input, shape index: {}, may-alias: {3,4,5}]   ;;  %s4865_s4 = inlined_call_operand.vmem [shape: f32[2,16,16,8], index: 4, kind: input, shape index: {}, may-alias: {3,4,5}]   ;;  %s4866_s5 = inlined_call_operand.vmem [shape: f32[2,16,16,8], index: 5, kind: input, shape index: {}, may-alias: {3,4,5}]   ;;  %s4867_s6 = inlined_call_operand.vmem [shape: f32[9,8,4], index: 6, kind: input, shape index: {}]   ;;  %s4868_s7 = inlined_call_operand.vmem [shape: f32[9,8,4], index: 7, kind: input, shape index: {}]   ;;  %s4869_s8 = inlined_call_operand.vmem [shape: f32[1,4], index: 8, kind: input, shape index: {}]   ;;  %s4870_s9 = inlined_call_operand.vmem [shape: f32[2,16,16,4], index: 9, kind: output, shape index: {}]  }
   0x1   :  { %4874 = sst [smem:[#allocation9_spill]] %s4861_s0  ;;  %s4409_s11 = smov 0  }
   0x2   :  { %4875 = sst [smem:[#allocation10_spill]] %s4864_s3  ;;  %s4411_s12 = smov 0  }
   0x3   :  { %s4413_s13 = smov 0  }
   0x4 LB: > { %4876 = sst [smem:[#allocation4_spill]] %s4340_s11  ;;  %s31_s14 = sadd.s32 1, %s4340_s11  ;;  %s4348_s13 = sphi %s4413_s13, %s19_s13   ;;  %s4344_s12 = sphi %s4411_s12, %s4888_s12   ;;  %s4340_s11 = sphi %s4409_s11, %s4887_s11   ;;  %s4336_s10 = sphi %s4407_s10, %s4886_s10   ;;  %s4332_s30 = sphi %s4405_s30, %s4885_s30  }
   0x5   : > { %4877 = sst [smem:[#allocation5_spill]] %s4344_s12  ;;  %s38_s15 = sadd.s32 1, %s4344_s12 }
   0x6   : > { %4878 = sst [smem:[#allocation6_spill]] %s4348_s13  ;;  %p32_p0 = scmp.ge.s32.totalorder %s31_s14, 4 }
   0x7   : > { %p3493_p1 = scmp.ge.s32.totalorder %s4348_s13, 1  ;;  %p490_p2 = scmp.lt.s32.totalorder %s4348_s13, 9 }
   0x8   : > { %s4890_s14 = smov (%p32_p0, %s31_s14), 0  ;;  %s4892_s15 = smov (!%p32_p0, %s38_s15), %s4344_s12 }
   0x9   : > { %4879 = sst [smem:[#allocation7_spill]] %s4890_s14  ;;  %p491_p3 = pnand %p3493_p1, %p490_p2 }
   0xa   : > { %p40_p4 = scmp.ge.s32.totalorder %s4892_s15, 2  ;;  %vm727_vm0 = vcmask (!%p491_p3), 57344   ;;  %s4440_s16 = sshll.u32 (!%p491_p3), %s4332_s30, 2  ;;  %v4350_v0 = vmov (!%p491_p3), 0.0   ;;  %vm749_vm1 = vcmask (!%p491_p3), 64512  }
   0xb   : > { %494 = sbr.rel (%p491_p3) target bundleno = 802 (0x322), region = 56  ;;  %p613_p5 = scmp.lt.s32.totalorder (!%p491_p3), %s4336_s10, 1  ;;  %728 = vst.msk [vmem:[#allocation2] sm:$0x1] (!%p491_p3), %vm727_vm0, %v4350_v0  ;;  %729 = vst.msk [vmem:[#allocation2 + $0x18] sm:$0x1] (!%p491_p3), %vm727_vm0, %v4350_v0 }
   0xc   : > { %s4894_s15 = smov (%p40_p4, %s4892_s15), 0  ;;  %730 = vst.msk [vmem:[#allocation2 + $0x30] sm:$0x1] (!%p491_p3), %vm727_vm0, %v4350_v0  ;;  %731 = vst.msk [vmem:[#allocation2 + $0x48] sm:$0x1] (!%p491_p3), %vm727_vm0, %v4350_v0  ;;  %p615_p6 = scmp.lt.s32.totalorder (!%p491_p3), %s4440_s16, 15 }
   0xd   : > { %4880 = sst [smem:[#allocation8_spill]] %s4894_s15  ;;  %732 = vst.msk [vmem:[#allocation2 + $0x60] sm:$0x1] (!%p491_p3), %vm727_vm0, %v4350_v0  ;;  %733 = vst.msk [vmem:[#allocation2 + $0x78] sm:$0x1] (!%p491_p3), %vm727_vm0, %v4350_v0  ;;  %s3499_s17 = sadd.s32 (!%p491_p3), 4294967295, %s4440_s16 }
   0xe   : > { %734 = vst.msk [vmem:[#allocation2 + $0x11] sm:$0x1] (!%p491_p3), %vm727_vm0, %v4350_v0  ;;  %735 = vst.msk [vmem:[#allocation2 + $0x29] sm:$0x1] (!%p491_p3), %vm727_vm0, %v4350_v0  ;;  %p625_p7 = scmp.gt.s32.totalorder (!%p491_p3), %s3499_s17, 0  ;;  %p3500_p8 = scmp.lt.s32.totalorder (!%p491_p3), %s3499_s17, 15 }
   0xf   : > { %736 = vst.msk [vmem:[#allocation2 + $0x41] sm:$0x1] (!%p491_p3), %vm727_vm0, %v4350_v0  ;;  %737 = vst.msk [vmem:[#allocation2 + $0x59] sm:$0x1] (!%p491_p3), %vm727_vm0, %v4350_v0  ;;  %s641_s22 = sadd.s32 (!%p491_p3), 4, %s4440_s16  ;;  %s4882_s0 = sld [smem:[#allocation9_spill]] (!%p491_p3) }
  0x10   : > { %738 = vst.msk [vmem:[#allocation2 + $0x71] sm:$0x1] (!%p491_p3), %vm727_vm0, %v4350_v0  ;;  %739 = vst.msk [vmem:[#allocation2 + $0x89] sm:$0x1] (!%p491_p3), %vm727_vm0, %v4350_v0  ;;  %p4477_p9 = scmp.lt.s32.totalorder (!%p491_p3), %s641_s22, 15  ;;  %s4883_s3 = sld [smem:[#allocation10_spill]] (!%p491_p3) }
  0x11   : > { %p3540_p10 = scmp.le.s32.totalorder (!%p491_p3), %s4332_s30, 0 }
  0x12   : > { %s4896_s10 = smov (!%p613_p5, %s4336_s10), 1  ;;  %s4898_s22 = smov (!%p4477_p9, %s641_s22), 15 }
  0x13   : > { %s616_s18 = scalar_select %p615_p6, %s4440_s16, 15 }
  0x14   : > { %s4473_s19 = sshll.u32 %s4896_s10, 5  ;;  %s4902_s22 = smov (!%p4477_p9, %s4898_s22), 15 }
  0x15   : > { %s3495_s20 = sshll.u32 %s616_s18, 1  ;;  %s3512_s26 = sshll.u32 %s4902_s22, 1 }
  0x16   : > { %s619_s21 = sadd.s32 %s4473_s19, %s3495_s20  ;;  %s650_s29 = sadd.s32 %s3512_s26, %s4473_s19 }
  0x17   : > { %s3497_s23 = sshll.u32 %s619_s21, 3  ;;  %s3514_s24 = sshll.u32 %s650_s29, 3 }
  0x18   : > { %s621_s27 = scalar_lea.vmem %s4882_s0, %s3497_s23  ;;  %s4487_s10 = scalar_lea.vmem %s4883_s3, %s3497_s23 }
  0x19   : > { %s626_s18 = scalar_select %p625_p7, %s3499_s17, 0  ;;  %v740_v1 = vld [vmem:[%s621_s27] sm:$0xff]  ;;  %v741_v2 = vld [vmem:[%s621_s27 + $0x8] sm:$0xff]  ;;  %v742_v3 = vld [vmem:[%s621_s27 + $0x10] sm:$0xff] }
  0x1a   : > { %750 = vst.msk [vmem:[#allocation2 + $0x19] sm:$0xff] %vm749_vm1, %v740_v1  ;;  %751 = vst.msk [vmem:[#allocation2 + $0x21] sm:$0xff] %vm749_vm1, %v741_v2  ;;  %v743_v4 = vld [vmem:[%s621_s27 + $0x18] sm:$0xff]  ;;  %v744_v5 = vld [vmem:[%s621_s27 + $0x20] sm:$0xff]  ;;  %s4505_s17 = scalar_lea.vmem %s4870_s9, %s3497_s23  ;;  %s652_s12 = scalar_lea.vmem %s4863_s2, %s3514_s24 }
  0x1b   : > { %752 = vst.msk [vmem:[#allocation2 + $0x31] sm:$0xff] %vm749_vm1, %v742_v3  ;;  %v745_v6 = vld [vmem:[%s621_s27 + $0x28] sm:$0xff]  ;;  %s4900_s18 = smov (!%p3500_p8, %s626_s18), 15  ;;  %753 = vst.msk [vmem:[#allocation2 + $0x39] sm:$0xff] %vm749_vm1, %v743_v4  ;;  %v746_v7 = vld [vmem:[%s621_s27 + $0x30] sm:$0xff]  ;;  %s4523_s22 = scalar_lea.vmem %s4866_s5, %s3514_s24 }
  0x1c   : > { %754 = vst.msk [vmem:[#allocation2 + $0x49] sm:$0xff] %vm749_vm1, %v744_v5  ;;  %755 = vst.msk [vmem:[#allocation2 + $0x51] sm:$0xff] %vm749_vm1, %v745_v6  ;;  %v747_v8 = vld [vmem:[%s621_s27 + $0x38] sm:$0xff]  ;;  %s3505_s16 = sshll.u32 %s4900_s18, 1  ;;  %761 = sbr.rel (%p3540_p10) target bundleno = 35 (0x23), region = 60 }
  0x1d   : > { %756 = vst.msk [vmem:[#allocation2 + $0x61] sm:$0xff] %vm749_vm1, %v746_v7  ;;  %757 = vst.msk [vmem:[#allocation2 + $0x69] sm:$0xff] %vm749_vm1, %v747_v8  ;;  %s633_s25 = sadd.s32 %s3505_s16, %s4473_s19 }
  0x1e   : > { %s3507_s28 = sshll.u32 %s633_s25, 3 }
  0x1f   : > { %s635_s27 = scalar_lea.vmem %s4862_s1, %s3507_s28  ;;  %s4518_s13 = scalar_lea.vmem %s4865_s4, %s3507_s28 }
  0x20   : > { %v762_v9 = vld [vmem:[%s635_s27] sm:$0xff] (!%p3540_p10)  ;;  %v763_v10 = vld [vmem:[%s635_s27 + $0x8] sm:$0xff] (!%p3540_p10) }
  0x21   : > { %764 = vst.msk [vmem:[#allocation2 + $0x1] sm:$0xff] (!%p3540_p10), %vm749_vm1, %v762_v9  ;;  %765 = vst.msk [vmem:[#allocation2 + $0x9] sm:$0xff] (!%p3540_p10), %vm749_vm1, %v763_v10 }
  0x23 PF: > { %p3541_p11 = scmp.ne.s32.totalorder %s4332_s30, 0 }
  0x24   : > { %v4351_v11 = vmov (!%p3541_p11), 0.0  }
  0x25   : > { %769 = sbr.rel (%p3541_p11) target bundleno = 44 (0x2c), region = 64  ;;  %770 = vst.msk [vmem:[#allocation2 + $0x1] sm:$0xff] (!%p3541_p11), %vm749_vm1, %v4351_v11  ;;  %771 = vst.msk [vmem:[#allocation2 + $0x9] sm:$0xff] (!%p3541_p11), %vm749_vm1, %v4351_v11 }
  0x2c PF: > { %p3542_p12 = scmp.ge.s32.totalorder %s4332_s30, 3 }
  0x2d   : > { %v776_v12 = vld [vmem:[%s652_s12] sm:$0xff] (!%p3542_p12)  ;;  %v777_v13 = vld [vmem:[%s652_s12 + $0x8] sm:$0xff] (!%p3542_p12) }
  0x2e   : > { %775 = sbr.rel (%p3542_p12) target bundleno = 53 (0x35), region = 68  ;;  %779 = vst.msk [vmem:[#allocation2 + $0x79] sm:$0xff] (!%p3542_p12), %vm749_vm1, %v776_v12  ;;  %780 = vst.msk [vmem:[#allocation2 + $0x81] sm:$0xff] (!%p3542_p12), %vm749_vm1, %v777_v13 }
  0x35 PF: > { %p3543_p13 = scmp.ne.s32.totalorder %s4332_s30, 3 }
  0x36   : > { %v4352_v14 = vmov (!%p3543_p13), 0.0  }
  0x37   : > { %784 = sbr.rel (%p3543_p13) target bundleno = 62 (0x3e), region = 72  ;;  %786 = vst.msk [vmem:[#allocation2 + $0x79] sm:$0xff] (!%p3543_p13), %vm749_vm1, %v4352_v14  ;;  %787 = vst.msk [vmem:[#allocation2 + $0x81] sm:$0xff] (!%p3543_p13), %vm749_vm1, %v4352_v14 }
  0x3e PF: > { %v3544_v15 = vld [vmem:[%s4867_s6 + $0x18] sm:$0xff]  ;;  %v791_v17 = vld [vmem:[#allocation2 + $0x20] sm:$0xff]  ;;  %1950 = vst.msk [vmem:[#allocation3] sm:$0x1] %vm727_vm0, %v4350_v0  ;;  %1951 = vst.msk [vmem:[#allocation3 + $0x18] sm:$0x1] %vm727_vm0, %v4350_v0 }
  0x3f   : > { %v790_v16 = vld [vmem:[#allocation2 + $0x18] sm:$0xff]  ;;  %1952 = vst.msk [vmem:[#allocation3 + $0x30] sm:$0x1] %vm727_vm0, %v4350_v0  ;;  %1953 = vst.msk [vmem:[#allocation3 + $0x48] sm:$0x1] %vm727_vm0, %v4350_v0  ;;  %3877 = vmatprep.subr.mxu1 %v3544_v15  ;;  %v800_v18 = vld [vmem:[%s4867_s6] sm:$0xff] }
  0x40   : > { %1954 = vst.msk [vmem:[#allocation3 + $0x60] sm:$0x1] %vm727_vm0, %v4350_v0  ;;  %1955 = vst.msk [vmem:[#allocation3 + $0x78] sm:$0x1] %vm727_vm0, %v4350_v0  ;;  %3879 = vmatprep.mubr.msk.f32.mxu1 %vm749_vm1, %v790_v16  ;;  %v792_v19 = vld [vmem:[#allocation2 + $0x30] sm:$0xff]  ;;  %3878 = vmatpush3.msra.mxu1 %v3544_v15  ;;  %v793_v20 = vld [vmem:[#allocation2 + $0x38] sm:$0xff] }
  0x41   : > { %1956 = vst.msk [vmem:[#allocation3 + $0x11] sm:$0x1] %vm727_vm0, %v4350_v0  ;;  %1957 = vst.msk [vmem:[#allocation3 + $0x29] sm:$0x1] %vm727_vm0, %v4350_v0  ;;  %3880 = vmatmul.mubr.msk.f32.vlgmr.msra.gmra.mrb[0].mxu1 %vm749_vm1, %v791_v17  ;;  %3891 = vmatprep.subr.mxu1 %v800_v18  ;;  %v3561_v21 = vld [vmem:[%s4867_s6 + $0x30] sm:$0xff]  ;;  %v794_v22 = vld [vmem:[#allocation2 + $0x48] sm:$0xff] }
  0x42   : > { %1958 = vst.msk [vmem:[#allocation3 + $0x41] sm:$0x1] %vm727_vm0, %v4350_v0  ;;  %1959 = vst.msk [vmem:[#allocation3 + $0x59] sm:$0x1] %vm727_vm0, %v4350_v0  ;;  %3892 = vmatpush3.msra.mxu1 %v800_v18  ;;  %3882 = vmatprep.mubr.msk.f32.mxu1 %vm749_vm1, %v792_v19  ;;  %v795_v23 = vld [vmem:[#allocation2 + $0x50] sm:$0xff]  ;;  %v796_v24 = vld [vmem:[#allocation2 + $0x60] sm:$0xff] }
  0x43   : > { %1960 = vst.msk [vmem:[#allocation3 + $0x71] sm:$0x1] %vm727_vm0, %v4350_v0  ;;  %1961 = vst.msk [vmem:[#allocation3 + $0x89] sm:$0x1] %vm727_vm0, %v4350_v0  ;;  %3905 = vmatprep.subr.mxu1 %v3561_v21  ;;  %v797_v25 = vld [vmem:[#allocation2 + $0x68] sm:$0xff]  ;;  %v788_v26 = vld [vmem:[#allocation2] sm:$0xff] }
  0x44   : > { %v789_v27 = vld [vmem:[#allocation2 + $0x8] sm:$0xff]  ;;  %v3579_v29 = vld [vmem:[%s4867_s6 + $0x20] sm:$0xff]  ;;  %v798_v30 = vld [vmem:[#allocation2 + $0x78] sm:$0xff] }
  0x45   : > { %3883 = vmatmul.mubr.msk.f32.gmra.mrb[2].mxu1 %vm749_vm1, %v793_v20  ;;  %v3570_v28 = vld [vmem:[%s4867_s6 + $0x8] sm:$0xff]  ;;  %v799_v31 = vld [vmem:[#allocation2 + $0x80] sm:$0xff]  ;;  %v3588_v35 = vld [vmem:[%s4867_s6 + $0x38] sm:$0xff] }
  0x46   : > { %3885 = vmatprep.mubr.msk.f32.mxu1 %vm749_vm1, %v794_v22  ;;  %v1164_v32 = vld [vmem:[#allocation2 + $0x1] sm:$0xff]  ;;  %v1165_v33 = vld [vmem:[#allocation2 + $0x9] sm:$0xff]  ;;  %v1166_v34 = vld [vmem:[#allocation2 + $0x19] sm:$0xff] }
  0x47   : > { %v1167_v36 = vld [vmem:[#allocation2 + $0x21] sm:$0xff]  ;;  %v1168_v37 = vld [vmem:[#allocation2 + $0x31] sm:$0xff]  ;;  %v1169_v38 = vld [vmem:[#allocation2 + $0x39] sm:$0xff] }
  0x48   : > { %v1170_v39 = vld [vmem:[#allocation2 + $0x49] sm:$0xff]  ;;  %v1171_v40 = vld [vmem:[#allocation2 + $0x51] sm:$0xff]  ;;  %v1172_v42 = vld [vmem:[#allocation2 + $0x61] sm:$0xff] }
  0x49   : > { %3886 = vmatmul.mubr.msk.f32.gmra.mrb[4].mxu1 %vm749_vm1, %v795_v23  ;;  %v3597_v41 = vld [vmem:[%s4867_s6 + $0x10] sm:$0xff]  ;;  %v3606_v44 = vld [vmem:[%s4867_s6 + $0x28] sm:$0xff]  ;;  %v1174_v45 = vld [vmem:[#allocation2 + $0x79] sm:$0xff] }
  0x4a   : > { %3888 = vmatprep.mubr.msk.f32.mxu1 %vm749_vm1, %v796_v24  ;;  %v1173_v43 = vld [vmem:[#allocation2 + $0x69] sm:$0xff]  ;;  %v1175_v46 = vld [vmem:[#allocation2 + $0x81] sm:$0xff]  ;;  %v1561_v52 = vld [vmem:[#allocation2 + $0x32] sm:$0xff] }
  0x4b   : > { %v1557_v47 = vld [vmem:[#allocation2 + $0x2] sm:$0xff]  ;;  %v1558_v48 = vld [vmem:[#allocation2 + $0xa] sm:$0xff]  ;;  %v1559_v49 = vld [vmem:[#allocation2 + $0x1a] sm:$0xff] }
  0x4c   : > { %v3615_v50 = vld [vmem:[%s4867_s6 + $0x40] sm:$0xff]  ;;  %v1563_v54 = vld [vmem:[#allocation2 + $0x4a] sm:$0xff]  ;;  %v1564_v55 = vld [vmem:[#allocation2 + $0x52] sm:$0xff] }
  0x4d   : > { %3889 = vmatmul.mubr.msk.f32.gmra.mrb[6].mxu1 %vm749_vm1, %v797_v25  ;;  %v1560_v51 = vld [vmem:[#allocation2 + $0x22] sm:$0xff]  ;;  %v1562_v53 = vld [vmem:[#allocation2 + $0x3a] sm:$0xff]  ;;  %v1566_v57 = vld [vmem:[#allocation2 + $0x6a] sm:$0xff] }
  0x4e   : > { %3893 = vmatprep.mubr.msk.f32.mxu1 %vm749_vm1, %v788_v26  ;;  %v1565_v56 = vld [vmem:[#allocation2 + $0x62] sm:$0xff]  ;;  %v1567_v58 = vld [vmem:[#allocation2 + $0x7a] sm:$0xff]  ;;  %v1964_v62 = vld [vmem:[%s4487_s10 + $0x10] sm:$0xff] }
  0x4f   : > { %v1568_v59 = vld [vmem:[#allocation2 + $0x82] sm:$0xff]  ;;  %v1965_v63 = vld [vmem:[%s4487_s10 + $0x18] sm:$0xff]  ;;  %1973 = vst.msk [vmem:[#allocation3 + $0x31] sm:$0xff] %vm749_vm1, %v1964_v62  ;;  %v1968_v2 = vld [vmem:[%s4487_s10 + $0x30] sm:$0xff] }
  0x50   : > { %v1962_v60 = vld [vmem:[%s4487_s10] sm:$0xff]  ;;  %v1963_v61 = vld [vmem:[%s4487_s10 + $0x8] sm:$0xff]  ;;  %v1969_v3 = vld [vmem:[%s4487_s10 + $0x38] sm:$0xff]  ;;  %1974 = vst.msk [vmem:[#allocation3 + $0x39] sm:$0xff] %vm749_vm1, %v1965_v63 }
  0x51   : > { %3894 = vmatmul.mubr.msk.f32.vlgmr.msra.gmra.mrb[0].mxu1 %vm749_vm1, %v789_v27  ;;  %v1966_v0 = vld [vmem:[%s4487_s10 + $0x20] sm:$0xff]  ;;  %v1967_v1 = vld [vmem:[%s4487_s10 + $0x28] sm:$0xff]  ;;  %1971 = vst.msk [vmem:[#allocation3 + $0x19] sm:$0xff] %vm749_vm1, %v1962_v60  ;;  %1972 = vst.msk [vmem:[#allocation3 + $0x21] sm:$0xff] %vm749_vm1, %v1963_v61 }
  0x52   : > { %3906 = vmatpush3.msra.mxu1 %v3561_v21  ;;  %3896 = vmatprep.mubr.msk.f32.mxu1 %vm749_vm1, %v790_v16  ;;  %1975 = vst.msk [vmem:[#allocation3 + $0x49] sm:$0xff] %vm749_vm1, %v1966_v0  ;;  %1976 = vst.msk [vmem:[#allocation3 + $0x51] sm:$0xff] %vm749_vm1, %v1967_v1  ;;  %v1982_v12 = vld [vmem:[%s4518_s13] sm:$0xff] (!%p3540_p10)  ;;  %v1983_v13 = vld [vmem:[%s4518_s13 + $0x8] sm:$0xff] (!%p3540_p10) }
  0x53   : > { %3919 = vmatprep.subr.mxu1 %v3570_v28  ;;  %1977 = vst.msk [vmem:[#allocation3 + $0x61] sm:$0xff] %vm749_vm1, %v1968_v2  ;;  %1978 = vst.msk [vmem:[#allocation3 + $0x69] sm:$0xff] %vm749_vm1, %v1969_v3 }
  0x54   : > { %1984 = vst.msk [vmem:[#allocation3 + $0x1] sm:$0xff] (!%p3540_p10), %vm749_vm1, %v1982_v12  ;;  %1985 = vst.msk [vmem:[#allocation3 + $0x9] sm:$0xff] (!%p3540_p10), %vm749_vm1, %v1983_v13 }
  0x55   : > { %3897 = vmatmul.mubr.msk.f32.gmra.mrb[2].mxu1 %vm749_vm1, %v791_v17 }
  0x56   : > { %3899 = vmatprep.mubr.msk.f32.mxu1 %vm749_vm1, %v792_v19 }
  0x59   : > { %3900 = vmatmul.mubr.msk.f32.gmra.mrb[4].mxu1 %vm749_vm1, %v793_v20 }
  0x5a   : > { %3902 = vmatprep.mubr.msk.f32.mxu1 %vm749_vm1, %v794_v22 }
  0x5d   : > { %3903 = vmatmul.mubr.msk.f32.gmra.mrb[6].mxu1 %vm749_vm1, %v795_v23 }
  0x5e   : > { %3907 = vmatprep.mubr.msk.f32.mxu1 %vm749_vm1, %v792_v19 }
  0x61   : > { %3908 = vmatmul.mubr.msk.f32.vlgmr.msra.gmra.mrb[0].mxu1 %vm749_vm1, %v793_v20 }
  0x62   : > { %3920 = vmatpush3.msra.mxu1 %v3570_v28  ;;  %3910 = vmatprep.mubr.msk.f32.mxu1 %vm749_vm1, %v794_v22 }
  0x63   : > { %3933 = vmatprep.subr.mxu1 %v3579_v29 }
  0x65   : > { %3911 = vmatmul.mubr.msk.f32.gmra.mrb[2].mxu1 %vm749_vm1, %v795_v23 }
  0x66   : > { %3913 = vmatprep.mubr.msk.f32.mxu1 %vm749_vm1, %v796_v24 }
  0x69   : > { %3914 = vmatmul.mubr.msk.f32.gmra.mrb[4].mxu1 %vm749_vm1, %v797_v25 }
  0x6a   : > { %3916 = vmatprep.mubr.msk.f32.mxu1 %vm749_vm1, %v798_v30 }
  0x6d   : > { %3917 = vmatmul.mubr.msk.f32.gmra.mrb[6].mxu1 %vm749_vm1, %v799_v31 }
  0x6e   : > { %3921 = vmatprep.mubr.msk.f32.mxu1 %vm749_vm1, %v1164_v32 }
  0x71   : > { %3922 = vmatmul.mubr.msk.f32.vlgmr.msra.gmra.mrb[0].mxu1 %vm749_vm1, %v1165_v33 }
  0x72   : > { %3934 = vmatpush3.msra.mxu1 %v3579_v29  ;;  %3924 = vmatprep.mubr.msk.f32.mxu1 %vm749_vm1, %v1166_v34 }
  0x73   : > { %3947 = vmatprep.subr.mxu1 %v3588_v35 }
  0x75   : > { %3925 = vmatmul.mubr.msk.f32.gmra.mrb[2].mxu1 %vm749_vm1, %v1167_v36 }
  0x76   : > { %3927 = vmatprep.mubr.msk.f32.mxu1 %vm749_vm1, %v1168_v37 }
  0x79   : > { %3928 = vmatmul.mubr.msk.f32.gmra.mrb[4].mxu1 %vm749_vm1, %v1169_v38 }
  0x7a   : > { %3930 = vmatprep.mubr.msk.f32.mxu1 %vm749_vm1, %v1170_v39 }
  0x7d   : > { %3931 = vmatmul.mubr.msk.f32.gmra.mrb[6].mxu1 %vm749_vm1, %v1171_v40 }
  0x7e   : > { %3935 = vmatprep.mubr.msk.f32.mxu1 %vm749_vm1, %v1166_v34 }
  0x81   : > { %3936 = vmatmul.mubr.msk.f32.vlgmr.msra.gmra.mrb[0].mxu1 %vm749_vm1, %v1167_v36 }
  0x82   : > { %3948 = vmatpush3.msra.mxu1 %v3588_v35  ;;  %3938 = vmatprep.mubr.msk.f32.mxu1 %vm749_vm1, %v1168_v37 }
  0x83   : > { %3961 = vmatprep.subr.mxu1 %v3597_v41 }
  0x85   : > { %3939 = vmatmul.mubr.msk.f32.gmra.mrb[2].mxu1 %vm749_vm1, %v1169_v38 }
  0x86   : > { %3941 = vmatprep.mubr.msk.f32.mxu1 %vm749_vm1, %v1170_v39 }
  0x89   : > { %3942 = vmatmul.mubr.msk.f32.gmra.mrb[4].mxu1 %vm749_vm1, %v1171_v40 }
  0x8a   : > { %3944 = vmatprep.mubr.msk.f32.mxu1 %vm749_vm1, %v1172_v42 }
  0x8d   : > { %3945 = vmatmul.mubr.msk.f32.gmra.mrb[6].mxu1 %vm749_vm1, %v1173_v43 }
  0x8e   : > { %3949 = vmatprep.mubr.msk.f32.mxu1 %vm749_vm1, %v1168_v37 }
  0x91   : > { %3950 = vmatmul.mubr.msk.f32.vlgmr.msra.gmra.mrb[0].mxu1 %vm749_vm1, %v1169_v38 }
  0x92   : > { %3962 = vmatpush3.msra.mxu1 %v3597_v41  ;;  %3952 = vmatprep.mubr.msk.f32.mxu1 %vm749_vm1, %v1170_v39 }
  0x93   : > { %3975 = vmatprep.subr.mxu1 %v3606_v44 }
  0x95   : > { %3953 = vmatmul.mubr.msk.f32.gmra.mrb[2].mxu1 %vm749_vm1, %v1171_v40 }
  0x96   : > { %3955 = vmatprep.mubr.msk.f32.mxu1 %vm749_vm1, %v1172_v42 }
  0x99   : > { %3956 = vmatmul.mubr.msk.f32.gmra.mrb[4].mxu1 %vm749_vm1, %v1173_v43 }
  0x9a   : > { %3958 = vmatprep.mubr.msk.f32.mxu1 %vm749_vm1, %v1174_v45 }
  0x9d   : > { %3959 = vmatmul.mubr.msk.f32.gmra.mrb[6].mxu1 %vm749_vm1, %v1175_v46 }
  0x9e   : > { %3963 = vmatprep.mubr.msk.f32.mxu1 %vm749_vm1, %v1557_v47 }
  0xa1   : > { %3964 = vmatmul.mubr.msk.f32.vlgmr.msra.gmra.mrb[0].mxu1 %vm749_vm1, %v1558_v48 }
  0xa2   : > { %3976 = vmatpush3.msra.mxu1 %v3606_v44  ;;  %3966 = vmatprep.mubr.msk.f32.mxu1 %vm749_vm1, %v1559_v49 }
  0xa3   : > { %3989 = vmatprep.subr.mxu1 %v3615_v50 }
  0xa5   : > { %3967 = vmatmul.mubr.msk.f32.gmra.mrb[2].mxu1 %vm749_vm1, %v1560_v51 }
  0xa6   : > { %3969 = vmatprep.mubr.msk.f32.mxu1 %vm749_vm1, %v1561_v52 }
  0xa9   : > { %3970 = vmatmul.mubr.msk.f32.gmra.mrb[4].mxu1 %vm749_vm1, %v1562_v53 }
  0xaa   : > { %3972 = vmatprep.mubr.msk.f32.mxu1 %vm749_vm1, %v1563_v54 }
  0xad   : > { %3973 = vmatmul.mubr.msk.f32.gmra.mrb[6].mxu1 %vm749_vm1, %v1564_v55 }
  0xae   : > { %3977 = vmatprep.mubr.msk.f32.mxu1 %vm749_vm1, %v1559_v49 }
  0xb1   : > { %3978 = vmatmul.mubr.msk.f32.vlgmr.msra.gmra.mrb[0].mxu1 %vm749_vm1, %v1560_v51 }
  0xb2   : > { %3990 = vmatpush3.msra.mxu1 %v3615_v50  ;;  %3980 = vmatprep.mubr.msk.f32.mxu1 %vm749_vm1, %v1561_v52 }
  0xb5   : > { %3981 = vmatmul.mubr.msk.f32.gmra.mrb[2].mxu1 %vm749_vm1, %v1562_v53 }
  0xb6   : > { %3983 = vmatprep.mubr.msk.f32.mxu1 %vm749_vm1, %v1563_v54 }
  0xb9   : > { %3984 = vmatmul.mubr.msk.f32.gmra.mrb[4].mxu1 %vm749_vm1, %v1564_v55 }
  0xba   : > { %3986 = vmatprep.mubr.msk.f32.mxu1 %vm749_vm1, %v1565_v56 }
  0xbd   : > { %3987 = vmatmul.mubr.msk.f32.gmra.mrb[6].mxu1 %vm749_vm1, %v1566_v57 }
  0xbe   : > { %3991 = vmatprep.mubr.msk.f32.mxu1 %vm749_vm1, %v1561_v52 }
  0xc1   : > { %3992 = vmatmul.mubr.msk.f32.vlgmr.msra.gmra.mrb[0].mxu1 %vm749_vm1, %v1562_v53 }
  0xc2   : > { %3994 = vmatprep.mubr.msk.f32.mxu1 %vm749_vm1, %v1563_v54 }
  0xc5   : > { %3995 = vmatmul.mubr.msk.f32.gmra.mrb[2].mxu1 %vm749_vm1, %v1564_v55 }
  0xc6   : > { %3997 = vmatprep.mubr.msk.f32.mxu1 %vm749_vm1, %v1565_v56 }
  0xc9   : > { %3998 = vmatmul.mubr.msk.f32.gmra.mrb[4].mxu1 %vm749_vm1, %v1566_v57 }
  0xca   : > { %4000 = vmatprep.mubr.msk.f32.mxu1 %vm749_vm1, %v1567_v58 }
  0xcd   : > { %4001 = vmatmul.mubr.msk.f32.gmra.mrb[6].mxu1 %vm749_vm1, %v1568_v59 }
 0x194   : > { %v4684_v4 = vpop.f32.mrb[0].mxu1 }
 0x195   : > { %v4686_v5 = vpop.f32.mrb[1].mxu1 }
 0x198   : > { %v4688_v6 = vpop.f32.mrb[2].mxu1 }
 0x199   : > { %v4690_v7 = vpop.f32.mrb[3].mxu1 }
 0x19b   : > { %1981 = sbr.rel (%p3540_p10) target bundleno = 418 (0x1a2), region = 76 }
 0x19c   : > { %v4692_v8 = vpop.f32.mrb[4].mxu1 }
 0x19d   : > { %v4694_v9 = vpop.f32.mrb[5].mxu1 }
 0x1a0   : > { %v4696_v10 = vpop.f32.mrb[6].mxu1 }
 0x1a1   : > { %v4698_v11 = vpop.f32.mrb[7].mxu1 }
 0x1a2 PF: > { %1988 = sbr.rel (%p3541_p11) target bundleno = 425 (0x1a9), region = 80  ;;  %v4353_v14 = vmov (!%p3541_p11), 0.0  }
 0x1a3   : > { %1989 = vst.msk [vmem:[#allocation3 + $0x1] sm:$0xff] (!%p3541_p11), %vm749_vm1, %v4353_v14  ;;  %1990 = vst.msk [vmem:[#allocation3 + $0x9] sm:$0xff] (!%p3541_p11), %vm749_vm1, %v4353_v14 }
 0x1a9 PF: > { %1993 = sbr.rel (%p3542_p12) target bundleno = 432 (0x1b0), region = 84  ;;  %v1994_v15 = vld [vmem:[%s4523_s22] sm:$0xff] (!%p3542_p12)  ;;  %v1995_v16 = vld [vmem:[%s4523_s22 + $0x8] sm:$0xff] (!%p3542_p12) }
 0x1aa   : > { %1997 = vst.msk [vmem:[#allocation3 + $0x79] sm:$0xff] (!%p3542_p12), %vm749_vm1, %v1994_v15  ;;  %1998 = vst.msk [vmem:[#allocation3 + $0x81] sm:$0xff] (!%p3542_p12), %vm749_vm1, %v1995_v16 }
 0x1b0 PF: > { %2001 = sbr.rel (%p3543_p13) target bundleno = 439 (0x1b7), region = 88  ;;  %v4354_v17 = vmov (!%p3543_p13), 0.0  }
 0x1b1   : > { %2003 = vst.msk [vmem:[#allocation3 + $0x79] sm:$0xff] (!%p3543_p13), %vm749_vm1, %v4354_v17  ;;  %2004 = vst.msk [vmem:[#allocation3 + $0x81] sm:$0xff] (!%p3543_p13), %vm749_vm1, %v4354_v17 }
 0x1b7 PF: > { %v2017_v18 = vld [vmem:[%s4868_s7] sm:$0xff]  ;;  %v2005_v19 = vld [vmem:[#allocation3] sm:$0xff]  ;;  %v2006_v20 = vld [vmem:[#allocation3 + $0x8] sm:$0xff]  ;;  %vm3206_vm2 = vcmask 31744  }
 0x1b8   : > { %4003 = vmatprep.subr.mxu0 %v2017_v18  ;;  %4005 = vmatprep.mubr.msk.f32.mxu0 %vm749_vm1, %v2005_v19  ;;  %v3636_v21 = vld [vmem:[%s4868_s7 + $0x18] sm:$0xff]  ;;  %v2007_v22 = vld [vmem:[#allocation3 + $0x18] sm:$0xff]  ;;  %v3645_v23 = vld [vmem:[%s4868_s7 + $0x30] sm:$0xff] }
 0x1b9   : > { %4004 = vmatpush3.msra.mxu0 %v2017_v18  ;;  %v2008_v24 = vld [vmem:[#allocation3 + $0x20] sm:$0xff]  ;;  %v2009_v25 = vld [vmem:[#allocation3 + $0x30] sm:$0xff]  ;;  %v2010_v26 = vld [vmem:[#allocation3 + $0x38] sm:$0xff] }
 0x1ba   : > { %4006 = vmatmul.mubr.msk.f32.vlgmr.msra.gmra.mrb[0].mxu0 %vm749_vm1, %v2006_v20  ;;  %4017 = vmatprep.subr.mxu0 %v3636_v21  ;;  %v2011_v27 = vld [vmem:[#allocation3 + $0x48] sm:$0xff]  ;;  %v2012_v28 = vld [vmem:[#allocation3 + $0x50] sm:$0xff]  ;;  %v3654_v29 = vld [vmem:[%s4868_s7 + $0x8] sm:$0xff] }
 0x1bb   : > { %4018 = vmatpush3.msra.mxu0 %v3636_v21  ;;  %4008 = vmatprep.mubr.msk.f32.mxu0 %vm749_vm1, %v2007_v22  ;;  %v2013_v30 = vld [vmem:[#allocation3 + $0x60] sm:$0xff]  ;;  %v2014_v31 = vld [vmem:[#allocation3 + $0x68] sm:$0xff]  ;;  %v3663_v32 = vld [vmem:[%s4868_s7 + $0x20] sm:$0xff] }
 0x1bc   : > { %4031 = vmatprep.subr.mxu0 %v3645_v23  ;;  %v2015_v33 = vld [vmem:[#allocation3 + $0x78] sm:$0xff]  ;;  %v2016_v34 = vld [vmem:[#allocation3 + $0x80] sm:$0xff]  ;;  %v2398_v36 = vld [vmem:[#allocation3 + $0x9] sm:$0xff] }
 0x1bd   : > { %v2397_v35 = vld [vmem:[#allocation3 + $0x1] sm:$0xff]  ;;  %v2399_v37 = vld [vmem:[#allocation3 + $0x19] sm:$0xff]  ;;  %v2401_v40 = vld [vmem:[#allocation3 + $0x31] sm:$0xff] }
 0x1be   : > { %4009 = vmatmul.mubr.msk.f32.gmra.mrb[2].mxu0 %vm749_vm1, %v2008_v24  ;;  %v3672_v38 = vld [vmem:[%s4868_s7 + $0x38] sm:$0xff]  ;;  %v2402_v41 = vld [vmem:[#allocation3 + $0x39] sm:$0xff]  ;;  %v2404_v43 = vld [vmem:[#allocation3 + $0x51] sm:$0xff] }
 0x1bf   : > { %4011 = vmatprep.mubr.msk.f32.mxu0 %vm749_vm1, %v2009_v25  ;;  %v2400_v39 = vld [vmem:[#allocation3 + $0x21] sm:$0xff]  ;;  %v2403_v42 = vld [vmem:[#allocation3 + $0x49] sm:$0xff]  ;;  %v3690_v47 = vld [vmem:[%s4868_s7 + $0x28] sm:$0xff] }
 0x1c0   : > { %v3681_v44 = vld [vmem:[%s4868_s7 + $0x10] sm:$0xff]  ;;  %v2406_v46 = vld [vmem:[#allocation3 + $0x69] sm:$0xff]  ;;  %v2794_v55 = vld [vmem:[#allocation3 + $0x32] sm:$0xff] }
 0x1c1   : > { %v2405_v45 = vld [vmem:[#allocation3 + $0x61] sm:$0xff]  ;;  %v2407_v48 = vld [vmem:[#allocation3 + $0x79] sm:$0xff]  ;;  %v2791_v51 = vld [vmem:[#allocation3 + $0xa] sm:$0xff] }
 0x1c2   : > { %4012 = vmatmul.mubr.msk.f32.gmra.mrb[4].mxu0 %vm749_vm1, %v2010_v26  ;;  %v2408_v49 = vld [vmem:[#allocation3 + $0x81] sm:$0xff]  ;;  %v3699_v53 = vld [vmem:[%s4868_s7 + $0x40] sm:$0xff] }
 0x1c3   : > { %4014 = vmatprep.mubr.msk.f32.mxu0 %vm749_vm1, %v2011_v27  ;;  %v2790_v50 = vld [vmem:[#allocation3 + $0x2] sm:$0xff]  ;;  %v2792_v52 = vld [vmem:[#allocation3 + $0x1a] sm:$0xff]  ;;  %v2796_v57 = vld [vmem:[#allocation3 + $0x4a] sm:$0xff] }
 0x1c4   : > { %v2793_v54 = vld [vmem:[#allocation3 + $0x22] sm:$0xff]  ;;  %v2795_v56 = vld [vmem:[#allocation3 + $0x3a] sm:$0xff]  ;;  %v2797_v58 = vld [vmem:[#allocation3 + $0x52] sm:$0xff] }
 0x1c5   : > { %v2798_v59 = vld [vmem:[#allocation3 + $0x62] sm:$0xff]  ;;  %v2799_v60 = vld [vmem:[#allocation3 + $0x6a] sm:$0xff]  ;;  %v2800_v61 = vld [vmem:[#allocation3 + $0x7a] sm:$0xff] }
 0x1c6   : > { %4015 = vmatmul.mubr.msk.f32.gmra.mrb[6].mxu0 %vm749_vm1, %v2012_v28  ;;  %v2801_v62 = vld [vmem:[#allocation3 + $0x82] sm:$0xff]  ;;  %v3708_v0 = vld [vmem:[%s4869_s8] ss:$0 sm:$0xff] }
 0x1c7   : > { %4019 = vmatprep.mubr.msk.f32.mxu0 %vm749_vm1, %v2007_v22 }
 0x1ca   : > { %4020 = vmatmul.mubr.msk.f32.vlgmr.msra.gmra.mrb[0].mxu0 %vm749_vm1, %v2008_v24 }
 0x1cb   : > { %4032 = vmatpush3.msra.mxu0 %v3645_v23  ;;  %4022 = vmatprep.mubr.msk.f32.mxu0 %vm749_vm1, %v2009_v25 }
 0x1cc   : > { %4045 = vmatprep.subr.mxu0 %v3654_v29 }
 0x1ce   : > { %4023 = vmatmul.mubr.msk.f32.gmra.mrb[2].mxu0 %vm749_vm1, %v2010_v26 }
 0x1cf   : > { %4025 = vmatprep.mubr.msk.f32.mxu0 %vm749_vm1, %v2011_v27 }
 0x1d2   : > { %4026 = vmatmul.mubr.msk.f32.gmra.mrb[4].mxu0 %vm749_vm1, %v2012_v28 }
 0x1d3   : > { %4028 = vmatprep.mubr.msk.f32.mxu0 %vm749_vm1, %v2013_v30 }
 0x1d6   : > { %4029 = vmatmul.mubr.msk.f32.gmra.mrb[6].mxu0 %vm749_vm1, %v2014_v31 }
 0x1d7   : > { %4033 = vmatprep.mubr.msk.f32.mxu0 %vm749_vm1, %v2009_v25 }
 0x1da   : > { %4034 = vmatmul.mubr.msk.f32.vlgmr.msra.gmra.mrb[0].mxu0 %vm749_vm1, %v2010_v26 }
 0x1db   : > { %4046 = vmatpush3.msra.mxu0 %v3654_v29  ;;  %4036 = vmatprep.mubr.msk.f32.mxu0 %vm749_vm1, %v2011_v27 }
 0x1dc   : > { %4059 = vmatprep.subr.mxu0 %v3663_v32 }
 0x1de   : > { %4037 = vmatmul.mubr.msk.f32.gmra.mrb[2].mxu0 %vm749_vm1, %v2012_v28 }
 0x1df   : > { %4039 = vmatprep.mubr.msk.f32.mxu0 %vm749_vm1, %v2013_v30 }
 0x1e2   : > { %4040 = vmatmul.mubr.msk.f32.gmra.mrb[4].mxu0 %vm749_vm1, %v2014_v31 }
 0x1e3   : > { %4042 = vmatprep.mubr.msk.f32.mxu0 %vm749_vm1, %v2015_v33 }
 0x1e6   : > { %4043 = vmatmul.mubr.msk.f32.gmra.mrb[6].mxu0 %vm749_vm1, %v2016_v34 }
 0x1e7   : > { %4047 = vmatprep.mubr.msk.f32.mxu0 %vm749_vm1, %v2397_v35 }
 0x1ea   : > { %4048 = vmatmul.mubr.msk.f32.vlgmr.msra.gmra.mrb[0].mxu0 %vm749_vm1, %v2398_v36 }
 0x1eb   : > { %4060 = vmatpush3.msra.mxu0 %v3663_v32  ;;  %4050 = vmatprep.mubr.msk.f32.mxu0 %vm749_vm1, %v2399_v37 }
 0x1ec   : > { %4073 = vmatprep.subr.mxu0 %v3672_v38 }
 0x1ee   : > { %4051 = vmatmul.mubr.msk.f32.gmra.mrb[2].mxu0 %vm749_vm1, %v2400_v39 }
 0x1ef   : > { %4053 = vmatprep.mubr.msk.f32.mxu0 %vm749_vm1, %v2401_v40 }
 0x1f2   : > { %4054 = vmatmul.mubr.msk.f32.gmra.mrb[4].mxu0 %vm749_vm1, %v2402_v41 }
 0x1f3   : > { %4056 = vmatprep.mubr.msk.f32.mxu0 %vm749_vm1, %v2403_v42 }
 0x1f6   : > { %4057 = vmatmul.mubr.msk.f32.gmra.mrb[6].mxu0 %vm749_vm1, %v2404_v43 }
 0x1f7   : > { %4061 = vmatprep.mubr.msk.f32.mxu0 %vm749_vm1, %v2399_v37 }
 0x1fa   : > { %4062 = vmatmul.mubr.msk.f32.vlgmr.msra.gmra.mrb[0].mxu0 %vm749_vm1, %v2400_v39 }
 0x1fb   : > { %4074 = vmatpush3.msra.mxu0 %v3672_v38  ;;  %4064 = vmatprep.mubr.msk.f32.mxu0 %vm749_vm1, %v2401_v40 }
 0x1fc   : > { %4087 = vmatprep.subr.mxu0 %v3681_v44 }
 0x1fe   : > { %4065 = vmatmul.mubr.msk.f32.gmra.mrb[2].mxu0 %vm749_vm1, %v2402_v41 }
 0x1ff   : > { %4067 = vmatprep.mubr.msk.f32.mxu0 %vm749_vm1, %v2403_v42 }
 0x202   : > { %4068 = vmatmul.mubr.msk.f32.gmra.mrb[4].mxu0 %vm749_vm1, %v2404_v43 }
 0x203   : > { %4070 = vmatprep.mubr.msk.f32.mxu0 %vm749_vm1, %v2405_v45 }
 0x206   : > { %4071 = vmatmul.mubr.msk.f32.gmra.mrb[6].mxu0 %vm749_vm1, %v2406_v46 }
 0x207   : > { %4075 = vmatprep.mubr.msk.f32.mxu0 %vm749_vm1, %v2401_v40 }
 0x20a   : > { %4076 = vmatmul.mubr.msk.f32.vlgmr.msra.gmra.mrb[0].mxu0 %vm749_vm1, %v2402_v41 }
 0x20b   : > { %4088 = vmatpush3.msra.mxu0 %v3681_v44  ;;  %4078 = vmatprep.mubr.msk.f32.mxu0 %vm749_vm1, %v2403_v42 }
 0x20c   : > { %4101 = vmatprep.subr.mxu0 %v3690_v47 }
 0x20e   : > { %4079 = vmatmul.mubr.msk.f32.gmra.mrb[2].mxu0 %vm749_vm1, %v2404_v43 }
 0x20f   : > { %4081 = vmatprep.mubr.msk.f32.mxu0 %vm749_vm1, %v2405_v45 }
 0x212   : > { %4082 = vmatmul.mubr.msk.f32.gmra.mrb[4].mxu0 %vm749_vm1, %v2406_v46 }
 0x213   : > { %4084 = vmatprep.mubr.msk.f32.mxu0 %vm749_vm1, %v2407_v48 }
 0x216   : > { %4085 = vmatmul.mubr.msk.f32.gmra.mrb[6].mxu0 %vm749_vm1, %v2408_v49 }
 0x217   : > { %4089 = vmatprep.mubr.msk.f32.mxu0 %vm749_vm1, %v2790_v50 }
 0x21a   : > { %4090 = vmatmul.mubr.msk.f32.vlgmr.msra.gmra.mrb[0].mxu0 %vm749_vm1, %v2791_v51 }
 0x21b   : > { %4102 = vmatpush3.msra.mxu0 %v3690_v47  ;;  %4092 = vmatprep.mubr.msk.f32.mxu0 %vm749_vm1, %v2792_v52 }
 0x21c   : > { %4115 = vmatprep.subr.mxu0 %v3699_v53 }
 0x21e   : > { %4093 = vmatmul.mubr.msk.f32.gmra.mrb[2].mxu0 %vm749_vm1, %v2793_v54 }
 0x21f   : > { %4095 = vmatprep.mubr.msk.f32.mxu0 %vm749_vm1, %v2794_v55 }
 0x222   : > { %4096 = vmatmul.mubr.msk.f32.gmra.mrb[4].mxu0 %vm749_vm1, %v2795_v56 }
 0x223   : > { %4098 = vmatprep.mubr.msk.f32.mxu0 %vm749_vm1, %v2796_v57 }
 0x226   : > { %4099 = vmatmul.mubr.msk.f32.gmra.mrb[6].mxu0 %vm749_vm1, %v2797_v58 }
 0x227   : > { %4103 = vmatprep.mubr.msk.f32.mxu0 %vm749_vm1, %v2792_v52 }
 0x22a   : > { %4104 = vmatmul.mubr.msk.f32.vlgmr.msra.gmra.mrb[0].mxu0 %vm749_vm1, %v2793_v54 }
 0x22b   : > { %4116 = vmatpush3.msra.mxu0 %v3699_v53  ;;  %4106 = vmatprep.mubr.msk.f32.mxu0 %vm749_vm1, %v2794_v55 }
 0x22e   : > { %4107 = vmatmul.mubr.msk.f32.gmra.mrb[2].mxu0 %vm749_vm1, %v2795_v56 }
 0x22f   : > { %4109 = vmatprep.mubr.msk.f32.mxu0 %vm749_vm1, %v2796_v57 }
 0x232   : > { %4110 = vmatmul.mubr.msk.f32.gmra.mrb[4].mxu0 %vm749_vm1, %v2797_v58 }
 0x233   : > { %4112 = vmatprep.mubr.msk.f32.mxu0 %vm749_vm1, %v2798_v59 }
 0x236   : > { %4113 = vmatmul.mubr.msk.f32.gmra.mrb[6].mxu0 %vm749_vm1, %v2799_v60 }
 0x237   : > { %4117 = vmatprep.mubr.msk.f32.mxu0 %vm749_vm1, %v2794_v55 }
 0x23a   : > { %4118 = vmatmul.mubr.msk.f32.vlgmr.msra.gmra.mrb[0].mxu0 %vm749_vm1, %v2795_v56 }
 0x23b   : > { %4120 = vmatprep.mubr.msk.f32.mxu0 %vm749_vm1, %v2796_v57 }
 0x23e   : > { %4121 = vmatmul.mubr.msk.f32.gmra.mrb[2].mxu0 %vm749_vm1, %v2797_v58 }
 0x23f   : > { %4123 = vmatprep.mubr.msk.f32.mxu0 %vm749_vm1, %v2798_v59 }
 0x242   : > { %4124 = vmatmul.mubr.msk.f32.gmra.mrb[4].mxu0 %vm749_vm1, %v2799_v60 }
 0x243   : > { %4126 = vmatprep.mubr.msk.f32.mxu0 %vm749_vm1, %v2800_v61 }
 0x246   : > { %4127 = vmatmul.mubr.msk.f32.gmra.mrb[6].mxu0 %vm749_vm1, %v2801_v62 }
 0x30d   : > { %v4119_v63 = vpop.f32.mrb[0].mxu0 }
 0x30e   : > { %v4129_v1 = vadd.f32 %v4119_v63, %v4684_v4  ;;  %v3136_v2 = vpop.f32.mrb[1].mxu0 }
 0x30f   : > { %v4130_v3 = vadd.f32 %v3136_v2, %v4686_v5 }
 0x310   : > { %v3191_v12 = vadd.f32 %v4129_v1, %v3708_v0 }
 0x311   : > { %v3190_v13 = vadd.f32 %v4130_v3, %v3708_v0  ;;  %v4122_v14 = vpop.f32.mrb[2].mxu0 }
 0x312   : > { %v3199_v15 = vmax.f32 %v3191_v12, 0.0  ;;  %v4131_v16 = vadd.f32 %v4122_v14, %v4688_v6  ;;  %v3146_v17 = vpop.f32.mrb[3].mxu0 }
 0x313   : > { %v3198_v18 = vmax.f32 %v3190_v13, 0.0  ;;  %v4132_v19 = vadd.f32 %v3146_v17, %v4690_v7 }
 0x314   : > { %3208 = vst.msk [vmem:[%s4505_s17 + $0x8] sm:$0xff] %vm3206_vm2, %v3199_v15  ;;  %v3193_v20 = vadd.f32 %v4131_v16, %v3708_v0 }
 0x315   : > { %3207 = vst.msk [vmem:[%s4505_s17] sm:$0xff] %vm3206_vm2, %v3198_v18  ;;  %v3192_v4 = vadd.f32 %v4132_v19, %v3708_v0  ;;  %v4125_v5 = vpop.f32.mrb[4].mxu0 }
 0x316   : > { %v3201_v21 = vmax.f32 %v3193_v20, 0.0  ;;  %v4133_v22 = vadd.f32 %v4125_v5, %v4692_v8  ;;  %v3156_v23 = vpop.f32.mrb[5].mxu0 }
 0x317   : > { %v3200_v24 = vmax.f32 %v3192_v4, 0.0  ;;  %v4134_v6 = vadd.f32 %v3156_v23, %v4694_v9 }
 0x318   : > { %3210 = vst.msk [vmem:[%s4505_s17 + $0x18] sm:$0xff] %vm3206_vm2, %v3201_v21  ;;  %v3195_v7 = vadd.f32 %v4133_v22, %v3708_v0 }
 0x319   : > { %3209 = vst.msk [vmem:[%s4505_s17 + $0x10] sm:$0xff] %vm3206_vm2, %v3200_v24  ;;  %v3194_v25 = vadd.f32 %v4134_v6, %v3708_v0  ;;  %v4128_v26 = vpop.f32.mrb[6].mxu0 }
 0x31a   : > { %v3203_v27 = vmax.f32 %v3195_v7, 0.0  ;;  %v4135_v28 = vadd.f32 %v4128_v26, %v4696_v10  ;;  %v3166_v29 = vpop.f32.mrb[7].mxu0 }
 0x31b   : > { %v3202_v30 = vmax.f32 %v3194_v25, 0.0  ;;  %v4136_v8 = vadd.f32 %v3166_v29, %v4698_v11 }
 0x31c   : > { %3212 = vst.msk [vmem:[%s4505_s17 + $0x28] sm:$0xff] %vm3206_vm2, %v3203_v27  ;;  %v3197_v31 = vadd.f32 %v4135_v28, %v3708_v0 }
 0x31d   : > { %3211 = vst.msk [vmem:[%s4505_s17 + $0x20] sm:$0xff] %vm3206_vm2, %v3202_v30  ;;  %v3196_v9 = vadd.f32 %v4136_v8, %v3708_v0 }
 0x31e   : > { %v3205_v32 = vmax.f32 %v3197_v31, 0.0 }
 0x31f   : > { %v3204_v33 = vmax.f32 %v3196_v9, 0.0 }
 0x320   : > { %3214 = vst.msk [vmem:[%s4505_s17 + $0x38] sm:$0xff] %vm3206_vm2, %v3205_v32 }
 0x321   : > { %3213 = vst.msk [vmem:[%s4505_s17 + $0x30] sm:$0xff] %vm3206_vm2, %v3204_v33 }
 0x322 PF: > { %s4884_s23 = sld [smem:[#allocation6_spill]]  ;;  %s4885_s30 = sld [smem:[#allocation4_spill]] }
 0x323   : > { %s4886_s10 = sld [smem:[#allocation5_spill]]  ;;  %s4887_s11 = sld [smem:[#allocation7_spill]] }
 0x324   : > { %s4888_s12 = sld [smem:[#allocation8_spill]] }
 0x328   : > { %s19_s13 = sadd.s32 1, %s4884_s23  }
 0x329   : > { %p16_p0 = scmp.ge.s32.totalorder %s19_s13, 10  }
 0x32b   :  { %18 = sbr.rel (!%p16_p0) target bundleno = 4 (0x4), region = 164 }

</bundles_post_ra>
